<compile_context>
chip_gen: v5e
topology: v5e:2x2
jax: 0.10.0
libtpu: 0.0.40
codegen_flags: <defaults>
</compile_context>

<pallas_src>
import functools

import jax
import jax.numpy as jnp
from jax import lax
from jax.experimental import pallas as pl
from jax.experimental.pallas import tpu as pltpu


def _pde_erosion_kernel(x_ref, swt_ref, out_ref, *, itr, c_chunk):
    """One feature chunk of the erosion PDE.

    x_ref / out_ref: (R, N) feature-major chunk; rows [0, c_chunk) are real
        features, rows [c_chunk, R) are zero padding (they stay zero).
    swt_ref: (N, N) transposed sqrt edge weights, swt[j, i] = sqrt_w[i, j];
        0.0 where there is no edge.  Must be >= 0 for the relu fold below.
    """
    swt = swt_ref[...]                       # (N, N), resident across the whole loop
    rows, n = x_ref.shape

    def body(_, x):                          # x: (rows, N) — features on sublanes, nodes on lanes
        # One small XLU transpose per iteration puts the node axis on sublanes
        # for the "j" (neighbour) side of the difference.
        xt = jnp.transpose(x)                # (N, rows)
        ope_rows = []
        for ci in range(c_chunk):            # static unroll over the real features
            xi = x[ci:ci + 1, :]             # (1, N): x[c, i], i on lanes
            xj = xt[:, ci:ci + 1]            # (N, 1): x[c, j], j on sublanes
            # t[j, i] = sqrt_w[i, j] * (x[c, i] - x[c, j]).  Because sw >= 0,
            # sw * relu(d) == max(sw * d, 0), so the relu is folded into a single
            # clamp after the reduction (one fewer VPU op per (i, j) element).
            t = (xi - xj) * swt              # (N, N): one tile per feature, never (C, N, N)
            m = jnp.max(t, axis=0, keepdims=True)   # (1, N): reduce over j on the sublane axis
            ope_rows.append(jnp.maximum(m, 0.0))    # ||grad^- x||_inf  (>= 0)
        if rows > c_chunk:                   # zero-padded feature rows: ope = 0, stay zero
            ope_rows.append(jnp.zeros((rows - c_chunk, n), jnp.float32))
        ope = jnp.concatenate(ope_rows, axis=0)     # (rows, N)
        return x - ope                       # erosion step: f <- f - ||grad^- f||_inf

    out_ref[...] = lax.fori_loop(0, itr, body, x_ref[...], unroll=True)


def pde_erosion(signal, sqrt_w, itr, *, n_chunks=2):
    """signal: (N, C) node features; sqrt_w: (N, N) dense sqrt edge weights (>= 0)."""
    n, c = signal.shape
    itr = int(itr)
    n_chunks = max(1, min(int(n_chunks), c))
    c_chunk = -(-c // n_chunks)                      # real features per chunk (ceil)
    rows = max(8, ((c_chunk + 7) // 8) * 8)          # sublane-pad each chunk to a multiple of 8

    # Pack features: chunk k occupies rows [k*rows, k*rows + c_chunk), rest is zero.
    feats = jnp.asarray(signal, jnp.float32).T       # (C, N) feature-major (nodes on lanes)
    feats = jnp.pad(feats, ((0, n_chunks * c_chunk - c), (0, 0)))
    feats = feats.reshape(n_chunks, c_chunk, n)
    packed = jnp.pad(feats, ((0, 0), (0, rows - c_chunk), (0, 0)))
    packed = packed.reshape(n_chunks * rows, n)      # (n_chunks * rows, N)

    # One-time host-side transpose so the reduced (neighbour) axis sits on sublanes.
    swt = jnp.asarray(sqrt_w, jnp.float32).T         # swt[j, i] = sqrt_w[i, j]

    # TODO(synk): for large N (> ~2-3k nodes) the dense (N, N) weights no longer fit
    # v7x VMEM; tile sw over j with a grid axis / emit_pipeline and skip all-zero
    # blocks via a scalar-prefetched block mask.
    out_packed = pl.pallas_call(
        functools.partial(_pde_erosion_kernel, itr=itr, c_chunk=c_chunk),
        out_shape=jax.ShapeDtypeStruct((n_chunks * rows, n), jnp.float32),
        grid=(n_chunks,),
        in_specs=[
            pl.BlockSpec((rows, n), lambda k: (k, 0)),
            pl.BlockSpec((n, n), lambda k: (0, 0)),
        ],
        out_specs=pl.BlockSpec((rows, n), lambda k: (k, 0)),
        compiler_params=pltpu.CompilerParams(dimension_semantics=("parallel",)),
        cost_estimate=pl.CostEstimate(
            flops=3 * itr * c * n * n,
            transcendentals=0,
            bytes_accessed=4 * (n * n + 2 * n_chunks * rows * n),
        ),
    )(packed, swt)

    out = out_packed.reshape(n_chunks, rows, n)[:, :c_chunk, :]
    out = out.reshape(n_chunks * c_chunk, n)[:c]     # (C, N)
    return out.T                                     # back to (N, C)


def pde_erosion_ref(signal, sqrt_w, itr):
    """Pure-JAX reference mirroring the PyTorch message-passing semantics."""
    x = jnp.asarray(signal, jnp.float32)
    sw = jnp.asarray(sqrt_w, jnp.float32)
    for _ in range(itr):
        diff = x[:, None, :] - x[None, :, :]             # (N, N, C): x_i - x_j
        msg = jnp.maximum(diff, 0.0) * sw[:, :, None]    # sqrt(w_ij) * relu(.)
        ope = jnp.max(msg, axis=1)                       # max over neighbors j
        x = x - ope
    return x


if __name__ == "__main__":
    # TODO(synk): tqdm progress bar from the PyTorch forward is cosmetic and dropped.
    N, C, ITR = 128, 4, 8

    key = jax.random.PRNGKey(0)
    k_sig, k_mask, k_w = jax.random.split(key, 3)

    # Deterministic graph signal: (num_nodes, features)
    signal = jax.random.normal(k_sig, (N, C), dtype=jnp.float32)

    # Deterministic random graph: ~15% edge density, no self-loops, positive weights.
    mask = jax.random.bernoulli(k_mask, 0.15, (N, N)).astype(jnp.float32)
    mask = mask * (1.0 - jnp.eye(N, dtype=jnp.float32))
    weights = jax.random.uniform(k_w, (N, N), dtype=jnp.float32, minval=0.1, maxval=1.0)
    sqrt_w = jnp.sqrt(mask * weights)    # 0.0 where no edge; >= 0 (required by relu fold)

    out = pde_erosion(signal, sqrt_w, ITR)
    out = jax.block_until_ready(out)

    ref = pde_erosion_ref(signal, sqrt_w, ITR)
    assert out.shape == (N, C) and out.dtype == jnp.float32
    assert jnp.allclose(out, ref, atol=1e-4, rtol=1e-4), "kernel mismatch vs reference"

    print("KERNEL_OK")
</pallas_src>

<mosaic_0001>
module attributes {stable_mosaic.version = 11 : i64} {
  func.func @_pde_erosion_kernel(%arg0: i32, %arg1: memref<8x128xf32, #tpu.memory_space<vmem>>, %arg2: memref<128x128xf32, #tpu.memory_space<vmem>>, %arg3: memref<8x128xf32, #tpu.memory_space<vmem>>) attributes {dimension_semantics = [#tpu.dimension_semantics<parallel>], iteration_bounds = array<i64: 2>, scalar_prefetch = 0 : i64, scratch_operands = 0 : i64, tpu.core_type = #tpu.core_type<tc>, window_params = [{transform_indices = @transform_0, window_bounds = array<i64: 8, 128>}, {pipeline_mode = #tpu.pipeline_mode<synchronous>, transform_indices = @transform_1, window_bounds = array<i64: 128, 128>}, {transform_indices = @transform_2, window_bounds = array<i64: 8, 128>}]} {
    %c0 = arith.constant 0 : index
    %c0_0 = arith.constant 0 : index
    %0 = vector.load %arg2[%c0, %c0_0] : memref<128x128xf32, #tpu.memory_space<vmem>>, vector<128x128xf32>
    %c0_1 = arith.constant 0 : index
    %c0_2 = arith.constant 0 : index
    %1 = vector.load %arg1[%c0_1, %c0_2] : memref<8x128xf32, #tpu.memory_space<vmem>>, vector<8x128xf32>
    %c0_i32 = arith.constant 0 : i32
    %2 = tpu.transpose %1, [1, 0] : vector<8x128xf32> -> vector<128x8xf32>
    %3 = vector.extract_strided_slice %1 {offsets = [0, 0], sizes = [1, 128], strides = [1, 1]} : vector<8x128xf32> to vector<1x128xf32>
    %4 = vector.extract_strided_slice %2 {offsets = [0, 0], sizes = [128, 1], strides = [1, 1]} : vector<128x8xf32> to vector<128x1xf32>
    %5 = vector.broadcast %3 : vector<1x128xf32> to vector<128x128xf32>
    %6 = vector.broadcast %4 : vector<128x1xf32> to vector<128x128xf32>
    %7 = arith.subf %5, %6 : vector<128x128xf32>
    %8 = arith.mulf %7, %0 : vector<128x128xf32>
    %cst = arith.constant dense<0xFF800000> : vector<128xf32>
    %9 = vector.multi_reduction <maximumf>, %8, %cst [0] : vector<128x128xf32> to vector<128xf32>
    %10 = vector.shape_cast %9 : vector<128xf32> to vector<1x128xf32>
    %cst_3 = arith.constant 0.000000e+00 : f32
    %11 = vector.broadcast %cst_3 : f32 to vector<1x128xf32>
    %12 = arith.maximumf %10, %11 : vector<1x128xf32>
    %13 = vector.extract_strided_slice %1 {offsets = [1, 0], sizes = [1, 128], strides = [1, 1]} : vector<8x128xf32> to vector<1x128xf32>
    %14 = vector.extract_strided_slice %2 {offsets = [0, 1], sizes = [128, 1], strides = [1, 1]} : vector<128x8xf32> to vector<128x1xf32>
    %15 = vector.broadcast %13 : vector<1x128xf32> to vector<128x128xf32>
    %16 = vector.broadcast %14 : vector<128x1xf32> to vector<128x128xf32>
    %17 = arith.subf %15, %16 : vector<128x128xf32>
    %18 = arith.mulf %17, %0 : vector<128x128xf32>
    %cst_4 = arith.constant dense<0xFF800000> : vector<128xf32>
    %19 = vector.multi_reduction <maximumf>, %18, %cst_4 [0] : vector<128x128xf32> to vector<128xf32>
    %20 = vector.shape_cast %19 : vector<128xf32> to vector<1x128xf32>
    %cst_5 = arith.constant 0.000000e+00 : f32
    %21 = vector.broadcast %cst_5 : f32 to vector<1x128xf32>
    %22 = arith.maximumf %20, %21 : vector<1x128xf32>
    %cst_6 = arith.constant 0.000000e+00 : f32
    %23 = vector.broadcast %cst_6 : f32 to vector<6x128xf32>
    %24 = tpu.concatenate %12, %22, %23 in 0 : vector<1x128xf32>, vector<1x128xf32>, vector<6x128xf32> -> vector<8x128xf32>
    %25 = arith.subf %1, %24 : vector<8x128xf32>
    %c1_i32 = arith.constant 1 : i32
    %26 = tpu.transpose %25, [1, 0] : vector<8x128xf32> -> vector<128x8xf32>
    %27 = vector.extract_strided_slice %25 {offsets = [0, 0], sizes = [1, 128], strides = [1, 1]} : vector<8x128xf32> to vector<1x128xf32>
    %28 = vector.extract_strided_slice %26 {offsets = [0, 0], sizes = [128, 1], strides = [1, 1]} : vector<128x8xf32> to vector<128x1xf32>
    %29 = vector.broadcast %27 : vector<1x128xf32> to vector<128x128xf32>
    %30 = vector.broadcast %28 : vector<128x1xf32> to vector<128x128xf32>
    %31 = arith.subf %29, %30 : vector<128x128xf32>
    %32 = arith.mulf %31, %0 : vector<128x128xf32>
    %cst_7 = arith.constant dense<0xFF800000> : vector<128xf32>
    %33 = vector.multi_reduction <maximumf>, %32, %cst_7 [0] : vector<128x128xf32> to vector<128xf32>
    %34 = vector.shape_cast %33 : vector<128xf32> to vector<1x128xf32>
    %cst_8 = arith.constant 0.000000e+00 : f32
    %35 = vector.broadcast %cst_8 : f32 to vector<1x128xf32>
    %36 = arith.maximumf %34, %35 : vector<1x128xf32>
    %37 = vector.extract_strided_slice %25 {offsets = [1, 0], sizes = [1, 128], strides = [1, 1]} : vector<8x128xf32> to vector<1x128xf32>
    %38 = vector.extract_strided_slice %26 {offsets = [0, 1], sizes = [128, 1], strides = [1, 1]} : vector<128x8xf32> to vector<128x1xf32>
    %39 = vector.broadcast %37 : vector<1x128xf32> to vector<128x128xf32>
    %40 = vector.broadcast %38 : vector<128x1xf32> to vector<128x128xf32>
    %41 = arith.subf %39, %40 : vector<128x128xf32>
    %42 = arith.mulf %41, %0 : vector<128x128xf32>
    %cst_9 = arith.constant dense<0xFF800000> : vector<128xf32>
    %43 = vector.multi_reduction <maximumf>, %42, %cst_9 [0] : vector<128x128xf32> to vector<128xf32>
    %44 = vector.shape_cast %43 : vector<128xf32> to vector<1x128xf32>
    %cst_10 = arith.constant 0.000000e+00 : f32
    %45 = vector.broadcast %cst_10 : f32 to vector<1x128xf32>
    %46 = arith.maximumf %44, %45 : vector<1x128xf32>
    %cst_11 = arith.constant 0.000000e+00 : f32
    %47 = vector.broadcast %cst_11 : f32 to vector<6x128xf32>
    %48 = tpu.concatenate %36, %46, %47 in 0 : vector<1x128xf32>, vector<1x128xf32>, vector<6x128xf32> -> vector<8x128xf32>
    %49 = arith.subf %25, %48 : vector<8x128xf32>
    %c2_i32 = arith.constant 2 : i32
    %50 = tpu.transpose %49, [1, 0] : vector<8x128xf32> -> vector<128x8xf32>
    %51 = vector.extract_strided_slice %49 {offsets = [0, 0], sizes = [1, 128], strides = [1, 1]} : vector<8x128xf32> to vector<1x128xf32>
    %52 = vector.extract_strided_slice %50 {offsets = [0, 0], sizes = [128, 1], strides = [1, 1]} : vector<128x8xf32> to vector<128x1xf32>
    %53 = vector.broadcast %51 : vector<1x128xf32> to vector<128x128xf32>
    %54 = vector.broadcast %52 : vector<128x1xf32> to vector<128x128xf32>
    %55 = arith.subf %53, %54 : vector<128x128xf32>
    %56 = arith.mulf %55, %0 : vector<128x128xf32>
    %cst_12 = arith.constant dense<0xFF800000> : vector<128xf32>
    %57 = vector.multi_reduction <maximumf>, %56, %cst_12 [0] : vector<128x128xf32> to vector<128xf32>
    %58 = vector.shape_cast %57 : vector<128xf32> to vector<1x128xf32>
    %cst_13 = arith.constant 0.000000e+00 : f32
    %59 = vector.broadcast %cst_13 : f32 to vector<1x128xf32>
    %60 = arith.maximumf %58, %59 : vector<1x128xf32>
    %61 = vector.extract_strided_slice %49 {offsets = [1, 0], sizes = [1, 128], strides = [1, 1]} : vector<8x128xf32> to vector<1x128xf32>
    %62 = vector.extract_strided_slice %50 {offsets = [0, 1], sizes = [128, 1], strides = [1, 1]} : vector<128x8xf32> to vector<128x1xf32>
    %63 = vector.broadcast %61 : vector<1x128xf32> to vector<128x128xf32>
    %64 = vector.broadcast %62 : vector<128x1xf32> to vector<128x128xf32>
    %65 = arith.subf %63, %64 : vector<128x128xf32>
    %66 = arith.mulf %65, %0 : vector<128x128xf32>
    %cst_14 = arith.constant dense<0xFF800000> : vector<128xf32>
    %67 = vector.multi_reduction <maximumf>, %66, %cst_14 [0] : vector<128x128xf32> to vector<128xf32>
    %68 = vector.shape_cast %67 : vector<128xf32> to vector<1x128xf32>
    %cst_15 = arith.constant 0.000000e+00 : f32
    %69 = vector.broadcast %cst_15 : f32 to vector<1x128xf32>
    %70 = arith.maximumf %68, %69 : vector<1x128xf32>
    %cst_16 = arith.constant 0.000000e+00 : f32
    %71 = vector.broadcast %cst_16 : f32 to vector<6x128xf32>
    %72 = tpu.concatenate %60, %70, %71 in 0 : vector<1x128xf32>, vector<1x128xf32>, vector<6x128xf32> -> vector<8x128xf32>
    %73 = arith.subf %49, %72 : vector<8x128xf32>
    %c3_i32 = arith.constant 3 : i32
    %74 = tpu.transpose %73, [1, 0] : vector<8x128xf32> -> vector<128x8xf32>
    %75 = vector.extract_strided_slice %73 {offsets = [0, 0], sizes = [1, 128], strides = [1, 1]} : vector<8x128xf32> to vector<1x128xf32>
    %76 = vector.extract_strided_slice %74 {offsets = [0, 0], sizes = [128, 1], strides = [1, 1]} : vector<128x8xf32> to vector<128x1xf32>
    %77 = vector.broadcast %75 : vector<1x128xf32> to vector<128x128xf32>
    %78 = vector.broadcast %76 : vector<128x1xf32> to vector<128x128xf32>
    %79 = arith.subf %77, %78 : vector<128x128xf32>
    %80 = arith.mulf %79, %0 : vector<128x128xf32>
    %cst_17 = arith.constant dense<0xFF800000> : vector<128xf32>
    %81 = vector.multi_reduction <maximumf>, %80, %cst_17 [0] : vector<128x128xf32> to vector<128xf32>
    %82 = vector.shape_cast %81 : vector<128xf32> to vector<1x128xf32>
    %cst_18 = arith.constant 0.000000e+00 : f32
    %83 = vector.broadcast %cst_18 : f32 to vector<1x128xf32>
    %84 = arith.maximumf %82, %83 : vector<1x128xf32>
    %85 = vector.extract_strided_slice %73 {offsets = [1, 0], sizes = [1, 128], strides = [1, 1]} : vector<8x128xf32> to vector<1x128xf32>
    %86 = vector.extract_strided_slice %74 {offsets = [0, 1], sizes = [128, 1], strides = [1, 1]} : vector<128x8xf32> to vector<128x1xf32>
    %87 = vector.broadcast %85 : vector<1x128xf32> to vector<128x128xf32>
    %88 = vector.broadcast %86 : vector<128x1xf32> to vector<128x128xf32>
    %89 = arith.subf %87, %88 : vector<128x128xf32>
    %90 = arith.mulf %89, %0 : vector<128x128xf32>
    %cst_19 = arith.constant dense<0xFF800000> : vector<128xf32>
    %91 = vector.multi_reduction <maximumf>, %90, %cst_19 [0] : vector<128x128xf32> to vector<128xf32>
    %92 = vector.shape_cast %91 : vector<128xf32> to vector<1x128xf32>
    %cst_20 = arith.constant 0.000000e+00 : f32
    %93 = vector.broadcast %cst_20 : f32 to vector<1x128xf32>
    %94 = arith.maximumf %92, %93 : vector<1x128xf32>
    %cst_21 = arith.constant 0.000000e+00 : f32
    %95 = vector.broadcast %cst_21 : f32 to vector<6x128xf32>
    %96 = tpu.concatenate %84, %94, %95 in 0 : vector<1x128xf32>, vector<1x128xf32>, vector<6x128xf32> -> vector<8x128xf32>
    %97 = arith.subf %73, %96 : vector<8x128xf32>
    %c4_i32 = arith.constant 4 : i32
    %98 = tpu.transpose %97, [1, 0] : vector<8x128xf32> -> vector<128x8xf32>
    %99 = vector.extract_strided_slice %97 {offsets = [0, 0], sizes = [1, 128], strides = [1, 1]} : vector<8x128xf32> to vector<1x128xf32>
    %100 = vector.extract_strided_slice %98 {offsets = [0, 0], sizes = [128, 1], strides = [1, 1]} : vector<128x8xf32> to vector<128x1xf32>
    %101 = vector.broadcast %99 : vector<1x128xf32> to vector<128x128xf32>
    %102 = vector.broadcast %100 : vector<128x1xf32> to vector<128x128xf32>
    %103 = arith.subf %101, %102 : vector<128x128xf32>
    %104 = arith.mulf %103, %0 : vector<128x128xf32>
    %cst_22 = arith.constant dense<0xFF800000> : vector<128xf32>
    %105 = vector.multi_reduction <maximumf>, %104, %cst_22 [0] : vector<128x128xf32> to vector<128xf32>
    %106 = vector.shape_cast %105 : vector<128xf32> to vector<1x128xf32>
    %cst_23 = arith.constant 0.000000e+00 : f32
    %107 = vector.broadcast %cst_23 : f32 to vector<1x128xf32>
    %108 = arith.maximumf %106, %107 : vector<1x128xf32>
    %109 = vector.extract_strided_slice %97 {offsets = [1, 0], sizes = [1, 128], strides = [1, 1]} : vector<8x128xf32> to vector<1x128xf32>
    %110 = vector.extract_strided_slice %98 {offsets = [0, 1], sizes = [128, 1], strides = [1, 1]} : vector<128x8xf32> to vector<128x1xf32>
    %111 = vector.broadcast %109 : vector<1x128xf32> to vector<128x128xf32>
    %112 = vector.broadcast %110 : vector<128x1xf32> to vector<128x128xf32>
    %113 = arith.subf %111, %112 : vector<128x128xf32>
    %114 = arith.mulf %113, %0 : vector<128x128xf32>
    %cst_24 = arith.constant dense<0xFF800000> : vector<128xf32>
    %115 = vector.multi_reduction <maximumf>, %114, %cst_24 [0] : vector<128x128xf32> to vector<128xf32>
    %116 = vector.shape_cast %115 : vector<128xf32> to vector<1x128xf32>
    %cst_25 = arith.constant 0.000000e+00 : f32
    %117 = vector.broadcast %cst_25 : f32 to vector<1x128xf32>
    %118 = arith.maximumf %116, %117 : vector<1x128xf32>
    %cst_26 = arith.constant 0.000000e+00 : f32
    %119 = vector.broadcast %cst_26 : f32 to vector<6x128xf32>
    %120 = tpu.concatenate %108, %118, %119 in 0 : vector<1x128xf32>, vector<1x128xf32>, vector<6x128xf32> -> vector<8x128xf32>
    %121 = arith.subf %97, %120 : vector<8x128xf32>
    %c5_i32 = arith.constant 5 : i32
    %122 = tpu.transpose %121, [1, 0] : vector<8x128xf32> -> vector<128x8xf32>
    %123 = vector.extract_strided_slice %121 {offsets = [0, 0], sizes = [1, 128], strides = [1, 1]} : vector<8x128xf32> to vector<1x128xf32>
    %124 = vector.extract_strided_slice %122 {offsets = [0, 0], sizes = [128, 1], strides = [1, 1]} : vector<128x8xf32> to vector<128x1xf32>
    %125 = vector.broadcast %123 : vector<1x128xf32> to vector<128x128xf32>
    %126 = vector.broadcast %124 : vector<128x1xf32> to vector<128x128xf32>
    %127 = arith.subf %125, %126 : vector<128x128xf32>
    %128 = arith.mulf %127, %0 : vector<128x128xf32>
    %cst_27 = arith.constant dense<0xFF800000> : vector<128xf32>
    %129 = vector.multi_reduction <maximumf>, %128, %cst_27 [0] : vector<128x128xf32> to vector<128xf32>
    %130 = vector.shape_cast %129 : vector<128xf32> to vector<1x128xf32>
    %cst_28 = arith.constant 0.000000e+00 : f32
    %131 = vector.broadcast %cst_28 : f32 to vector<1x128xf32>
    %132 = arith.maximumf %130, %131 : vector<1x128xf32>
    %133 = vector.extract_strided_slice %121 {offsets = [1, 0], sizes = [1, 128], strides = [1, 1]} : vector<8x128xf32> to vector<1x128xf32>
    %134 = vector.extract_strided_slice %122 {offsets = [0, 1], sizes = [128, 1], strides = [1, 1]} : vector<128x8xf32> to vector<128x1xf32>
    %135 = vector.broadcast %133 : vector<1x128xf32> to vector<128x128xf32>
    %136 = vector.broadcast %134 : vector<128x1xf32> to vector<128x128xf32>
    %137 = arith.subf %135, %136 : vector<128x128xf32>
    %138 = arith.mulf %137, %0 : vector<128x128xf32>
    %cst_29 = arith.constant dense<0xFF800000> : vector<128xf32>
    %139 = vector.multi_reduction <maximumf>, %138, %cst_29 [0] : vector<128x128xf32> to vector<128xf32>
    %140 = vector.shape_cast %139 : vector<128xf32> to vector<1x128xf32>
    %cst_30 = arith.constant 0.000000e+00 : f32
    %141 = vector.broadcast %cst_30 : f32 to vector<1x128xf32>
    %142 = arith.maximumf %140, %141 : vector<1x128xf32>
    %cst_31 = arith.constant 0.000000e+00 : f32
    %143 = vector.broadcast %cst_31 : f32 to vector<6x128xf32>
    %144 = tpu.concatenate %132, %142, %143 in 0 : vector<1x128xf32>, vector<1x128xf32>, vector<6x128xf32> -> vector<8x128xf32>
    %145 = arith.subf %121, %144 : vector<8x128xf32>
    %c6_i32 = arith.constant 6 : i32
    %146 = tpu.transpose %145, [1, 0] : vector<8x128xf32> -> vector<128x8xf32>
    %147 = vector.extract_strided_slice %145 {offsets = [0, 0], sizes = [1, 128], strides = [1, 1]} : vector<8x128xf32> to vector<1x128xf32>
    %148 = vector.extract_strided_slice %146 {offsets = [0, 0], sizes = [128, 1], strides = [1, 1]} : vector<128x8xf32> to vector<128x1xf32>
    %149 = vector.broadcast %147 : vector<1x128xf32> to vector<128x128xf32>
    %150 = vector.broadcast %148 : vector<128x1xf32> to vector<128x128xf32>
    %151 = arith.subf %149, %150 : vector<128x128xf32>
    %152 = arith.mulf %151, %0 : vector<128x128xf32>
    %cst_32 = arith.constant dense<0xFF800000> : vector<128xf32>
    %153 = vector.multi_reduction <maximumf>, %152, %cst_32 [0] : vector<128x128xf32> to vector<128xf32>
    %154 = vector.shape_cast %153 : vector<128xf32> to vector<1x128xf32>
    %cst_33 = arith.constant 0.000000e+00 : f32
    %155 = vector.broadcast %cst_33 : f32 to vector<1x128xf32>
    %156 = arith.maximumf %154, %155 : vector<1x128xf32>
    %157 = vector.extract_strided_slice %145 {offsets = [1, 0], sizes = [1, 128], strides = [1, 1]} : vector<8x128xf32> to vector<1x128xf32>
    %158 = vector.extract_strided_slice %146 {offsets = [0, 1], sizes = [128, 1], strides = [1, 1]} : vector<128x8xf32> to vector<128x1xf32>
    %159 = vector.broadcast %157 : vector<1x128xf32> to vector<128x128xf32>
    %160 = vector.broadcast %158 : vector<128x1xf32> to vector<128x128xf32>
    %161 = arith.subf %159, %160 : vector<128x128xf32>
    %162 = arith.mulf %161, %0 : vector<128x128xf32>
    %cst_34 = arith.constant dense<0xFF800000> : vector<128xf32>
    %163 = vector.multi_reduction <maximumf>, %162, %cst_34 [0] : vector<128x128xf32> to vector<128xf32>
    %164 = vector.shape_cast %163 : vector<128xf32> to vector<1x128xf32>
    %cst_35 = arith.constant 0.000000e+00 : f32
    %165 = vector.broadcast %cst_35 : f32 to vector<1x128xf32>
    %166 = arith.maximumf %164, %165 : vector<1x128xf32>
    %cst_36 = arith.constant 0.000000e+00 : f32
    %167 = vector.broadcast %cst_36 : f32 to vector<6x128xf32>
    %168 = tpu.concatenate %156, %166, %167 in 0 : vector<1x128xf32>, vector<1x128xf32>, vector<6x128xf32> -> vector<8x128xf32>
    %169 = arith.subf %145, %168 : vector<8x128xf32>
    %c7_i32 = arith.constant 7 : i32
    %170 = tpu.transpose %169, [1, 0] : vector<8x128xf32> -> vector<128x8xf32>
    %171 = vector.extract_strided_slice %169 {offsets = [0, 0], sizes = [1, 128], strides = [1, 1]} : vector<8x128xf32> to vector<1x128xf32>
    %172 = vector.extract_strided_slice %170 {offsets = [0, 0], sizes = [128, 1], strides = [1, 1]} : vector<128x8xf32> to vector<128x1xf32>
    %173 = vector.broadcast %171 : vector<1x128xf32> to vector<128x128xf32>
    %174 = vector.broadcast %172 : vector<128x1xf32> to vector<128x128xf32>
    %175 = arith.subf %173, %174 : vector<128x128xf32>
    %176 = arith.mulf %175, %0 : vector<128x128xf32>
    %cst_37 = arith.constant dense<0xFF800000> : vector<128xf32>
    %177 = vector.multi_reduction <maximumf>, %176, %cst_37 [0] : vector<128x128xf32> to vector<128xf32>
    %178 = vector.shape_cast %177 : vector<128xf32> to vector<1x128xf32>
    %cst_38 = arith.constant 0.000000e+00 : f32
    %179 = vector.broadcast %cst_38 : f32 to vector<1x128xf32>
    %180 = arith.maximumf %178, %179 : vector<1x128xf32>
    %181 = vector.extract_strided_slice %169 {offsets = [1, 0], sizes = [1, 128], strides = [1, 1]} : vector<8x128xf32> to vector<1x128xf32>
    %182 = vector.extract_strided_slice %170 {offsets = [0, 1], sizes = [128, 1], strides = [1, 1]} : vector<128x8xf32> to vector<128x1xf32>
    %183 = vector.broadcast %181 : vector<1x128xf32> to vector<128x128xf32>
    %184 = vector.broadcast %182 : vector<128x1xf32> to vector<128x128xf32>
    %185 = arith.subf %183, %184 : vector<128x128xf32>
    %186 = arith.mulf %185, %0 : vector<128x128xf32>
    %cst_39 = arith.constant dense<0xFF800000> : vector<128xf32>
    %187 = vector.multi_reduction <maximumf>, %186, %cst_39 [0] : vector<128x128xf32> to vector<128xf32>
    %188 = vector.shape_cast %187 : vector<128xf32> to vector<1x128xf32>
    %cst_40 = arith.constant 0.000000e+00 : f32
    %189 = vector.broadcast %cst_40 : f32 to vector<1x128xf32>
    %190 = arith.maximumf %188, %189 : vector<1x128xf32>
    %cst_41 = arith.constant 0.000000e+00 : f32
    %191 = vector.broadcast %cst_41 : f32 to vector<6x128xf32>
    %192 = tpu.concatenate %180, %190, %191 in 0 : vector<1x128xf32>, vector<1x128xf32>, vector<6x128xf32> -> vector<8x128xf32>
    %193 = arith.subf %169, %192 : vector<8x128xf32>
    %c0_42 = arith.constant 0 : index
    %c0_43 = arith.constant 0 : index
    %194 = vector.load %arg3[%c0_42, %c0_43] : memref<8x128xf32, #tpu.memory_space<vmem>>, vector<8x128xf32>
    tpu.vector_store %arg3[%c0_42, %c0_43], %193 {strides = array<i32>} : memref<8x128xf32, #tpu.memory_space<vmem>>, vector<8x128xf32>,
    return
  }
  func.func @transform_0(%arg0: i32) -> (i32, i32) {
    %c0_i32 = arith.constant 0 : i32
    %c0_i32_0 = arith.constant 0 : i32
    return %arg0, %c0_i32 : i32, i32
  }
  func.func @transform_1(%arg0: i32) -> (i32, i32) {
    %c0_i32 = arith.constant 0 : i32
    %c0_i32_0 = arith.constant 0 : i32
    %c0_i32_1 = arith.constant 0 : i32
    return %c0_i32, %c0_i32_0 : i32, i32
  }
  func.func @transform_2(%arg0: i32) -> (i32, i32) {
    %c0_i32 = arith.constant 0 : i32
    %c0_i32_0 = arith.constant 0 : i32
    return %arg0, %c0_i32 : i32, i32
  }
}

</mosaic_0001>

<bundles_post_ra>
// kernel: tpu_custom_call.1
= control target key start
LH: loop header
LB: loop body
LE: loop exit
PB: predicated region body
PF: predicated region fallthrough
CT: control target
= control target key end

     0   :  { %7 = vsyncpa [#allocation3], 0  ;;  %s4421_s0 = inlined_call_operand.hbm [shape: f32[16,128], index: 0, kind: input, shape index: {}]   ;;  %s4422_s1 = inlined_call_operand.hbm [shape: f32[128,128], index: 1, kind: input, shape index: {}]   ;;  %s4423_s2 = inlined_call_operand.hbm [shape: f32[16,128], index: 2, kind: output, shape index: {}]  }
   0x1   :  { %9 = vsyncpa [#allocation3 + $0x1], 0 }
   0x2   :  { %10 = vsyncpa [#allocation6], 0 }
   0x3   :  { %11 = vsyncpa [#allocation4], 0 }
   0x4   :  { %13 = vsyncpa [#allocation4 + $0x1], 0  ;;  %s3045_s9 = smov 0   ;;  %s3047_s10 = smov 0  }
   0x5   :  { %s3049_s11 = smov 0   ;;  %s3051_s12 = smov 0  }
   0x6 LB: > { %s108_s15 = sshll.u32 %s4422_s1, 4  ;;  %s3069_s16 = sadd.s32 4294967295, %s3023_s12   ;;  %s3023_s12 = sphi %s3051_s12, %s4433_s12   ;;  %s3019_s11 = sphi %s3049_s11, %s4432_s11   ;;  %s3015_s10 = sphi %s3047_s10, %s4431_s10   ;;  %s3011_s9 = sphi %s3045_s9, %s4430_s9   ;;  %s109_s15 = int_to_ptr.hbm [resolvable:$true] %s108_s15 }
   0x7   : > { %p2607_p0 = scmp.ge.s32.totalorder %s3023_s12, 1  ;;  %p40_p1 = scmp.eq.s32.totalorder %s3069_s16, 0 }
   0x8   : > { %p97_p2 = scmp.lt.s32.totalorder %s3023_s12, 3  ;;  %s3025_s18 = smov [#allocation5]  }
   0x9   : > { %s110_s19 = sshll.u32 %s3025_s18, 4  ;;  %s3026_s20 = smov 128   ;;  %s111_s19 = int_to_ptr.vmem [resolvable:$true] %s110_s19 }
   0xa   : > { %p3074_p3 = pnand %p2607_p0, %p97_p2  ;;  %s3027_s21 = smov 8  }
   0xb   : > { %s2606_s22 = sadd.s32 4294967294, %s3023_s12   ;;  %s3085_s23 = sadd.s32 1, %s3023_s12  }
   0xc   : > { %p2628_p4 = pneg %p3074_p3  ;;  %s26_s24 = sadd.s32 1, %s3019_s11 }
   0xd   : > { %s23_s25 = ssub.s32 %s3023_s12, %s3085_s23  ;;  %p33_p7 = scmp.ne.s32.totalorder %s3019_s11, %s3015_s10 }
   0xe   : > { %p2629_p6 = pnand %p2628_p4, %p40_p1  ;;  %p24_p8 = scmp.eq.s32.totalorder %s23_s25, 0 }
   0xf   : > { %p34_p9 = scmp.eq.s32.totalorder %s3023_s12, 0  ;;  %p39_p10 = scmp.ne.s32.totalorder %s3015_s10, %s3011_s9 }
  0x10   : > { %2631 = dma.hbm_to_vmem [thread:$0]  (!%p2629_p6), %s109_s15, 2048, %s111_s19, [#allocation6], %s3026_s20, %s3026_s20, %s3027_s21  }
  0x11   : > { %p84_p11 = scmp.eq.s32.totalorder %s3069_s16, 1  ;;  %p3101_p12 = por %p40_p1, %p39_p10 }
  0x12   : > { %s3097_s26 = scalar_select %p24_p8, %s3019_s11, %s26_s24  }
  0x13   : > { %p3105_p13 = por %p84_p11, %p33_p7  ;;  %p90_p0 = scmp.eq.s32.totalorder %s2606_s22, 1 }
  0x14   : > { %p35_p2 = por %p34_p9, %p33_p7  ;;  %s124_s29 = sand.u32 1, %s3019_s11  }
  0x15   : > { %p3110_p4 = por %p90_p0, %p39_p10  ;;  %p2641_p6 = scmp.lt.s32.totalorder %s3023_s12, 2 }
  0x16   : > { %s2610_s3 = sshll.u32 %s124_s29, 3  ;;  %s2611_s4 = sshll.u32 %s3023_s12, 3 }
  0x17   : > { %s132_s7 = scalar_lea.hbm %s4421_s0, %s2611_s4  ;;  %s128_s13 = scalar_lea.vmem [#allocation2], %s2610_s3 }
  0x18   : > { %s134_s8 = sshll.u32 %s132_s7, 4  ;;  %s136_s14 = sshll.u32 %s128_s13, 4  ;;  %s135_s8 = int_to_ptr.hbm [resolvable:$true] %s134_s8  ;;  %s137_s14 = int_to_ptr.vmem [resolvable:$true] %s136_s14 }
  0x19   : > { %p3119_p8 = pnand %p2641_p6, %p35_p2  ;;  %s125_s18 = scalar_lea.sflag [#allocation3], %s124_s29 }
  0x1a   : > { %s2923_s19 = sshra.s32 %s135_s8, 4  ;;  %s2930_s24 = scalar_lea.hbm %s4421_s0, 16  ;;  %s2924_s19 = int_to_ptr.hbm [resolvable:$true] %s2923_s19 }
  0x1b   : > { %s2925_s20 = scalar_lea.hbm %s2924_s19, 8  ;;  %p2927_p9 = pneg %p3119_p8 }
  0x1c   : > { %p2926_p7 = scmp.ne.s32.totalorder %s2924_s19, %s2925_s20  ;;  %p2931_p0 = scmp.lt.s32.totalorder %s2924_s19, %s4421_s0 }
  0x1d   : > { %p2932_p2 = scmp.lt.s32.totalorder %s2930_s24, %s2925_s20 }
  0x1e   : > { %p2928_p10 = pnand %p2927_p9, %p2926_p7 }
  0x1f   : > { %p2933_p6 = por %p2932_p2, %p2931_p0 }
  0x20   : > { %p2929_p11 = pneg %p2928_p10 }
  0x22   : > { %p2934_p5 = pnand %p2933_p6, %p2929_p11 }
  0x24   : > { %2937 = shalt.err (!%p2934_p5)
}
  0x25   : > { %2635 = dma.hbm_to_vmem [thread:$0]  (!%p3119_p8), %s135_s8, 128, %s137_s14, %s125_s18  }
  0x26   : > { %145 = sbr.rel (%p3074_p3) target bundleno = 3830 (0xef6), region = 28  ;;  %s3136_s29 = sand.u32 (!%p3074_p3), 1, %s3015_s10  }
  0x27   : > { %s2613_s4 = sshll.u32 (!%p3074_p3), %s3136_s29, 3  ;;  %s148_s5 = scalar_lea.sflag (!%p3074_p3), [#allocation3], %s3136_s29 }
  0x28   : > { %s151_s6 = scalar_lea.vmem (!%p3074_p3), [#allocation2], %s2613_s4 }
  0x2b   : > { %2998 = dma.done.wait (%p3101_p12), %s148_s5, 128  }
  0x2c   : > { %3000 = vsyncadd (%p3101_p12), %s148_s5, 4294967168 }
  0x2d   : > { %3002 = dma.done.wait (%p40_p1), [#allocation6], 2048  }
  0x2e   : > { %3004 = vsyncadd (%p40_p1), [#allocation6], 4294965248  ;;  %v3028_v0 = vmov 1   ;;  %v3151_v1 = vld [vmem:[%s151_s6] sm:$0xff]  ;;  %v3029_v2 = vmov 0   ;;  %v3196_v27 = vld [vmem:[#allocation5] sm:$0xff] }
  0x2f   : > { %2683 = vset.pattern.permute.xlu2 %v3028_v0  ;;  %195 = vxpose.xlu0.b32.start.end [1/1] (short) %v3151_v1, 128  ;;  %v3190_v23 = vperm.slane %v3151_v1, 1  ;;  %v3200_v30 = vld [vmem:[#allocation5 + $0x20] sm:$0xff]  ;;  %v3235_v53 = vperm.slane %v3151_v1, 0  ;;  %v3239_v56 = vld [vmem:[#allocation5 + $0x10] sm:$0xff]  ;;  %v3245_v60 = vld [vmem:[#allocation5 + $0x18] sm:$0xff]  ;;  %vm481_vm0 = vcmask 1040384  }
  0x30   : > { %2684 = vset.pattern.permute.xlu1 %v3029_v2  ;;  %v3247_v61 = vld [vmem:[#allocation5 + $0x30] sm:$0xff]  ;;  %vm483_vm1 = vcmask 1041408   ;;  %s2617_s17 = sshll.u32 %s3069_s16, 3  ;;  %s177_s13 = scalar_lea.vmem [#allocation7], %s2613_s4 }
  0x31   : > { %s2521_s8 = scalar_lea.hbm %s4423_s2, %s2617_s17  ;;  %s2523_s14 = sshll.u32 %s177_s13, 4  ;;  %s2524_s14 = int_to_ptr.vmem [resolvable:$true] %s2523_s14 }
  0x32   : > { %s2525_s15 = sshll.u32 %s2521_s8, 4  ;;  %s2511_s16 = scalar_lea.sflag [#allocation4], %s3136_s29  ;;  %s2526_s15 = int_to_ptr.hbm [resolvable:$true] %s2525_s15 }
  0x33   : > { %s2967_s18 = sshra.s32 %s2526_s15, 4  ;;  %s2973_s22 = scalar_lea.hbm %s4423_s2, 16  ;;  %s2968_s18 = int_to_ptr.hbm [resolvable:$true] %s2967_s18 }
  0x34   : > { %s2969_s19 = scalar_lea.hbm %s2968_s18, 8  ;;  %p2974_p12 = scmp.lt.s32.totalorder %s2968_s18, %s4423_s2 }
  0x35   : > { %p2970_p1 = scmp.ne.s32.totalorder %s2968_s18, %s2969_s19  ;;  %p2975_p8 = scmp.lt.s32.totalorder %s2973_s22, %s2969_s19 }
  0x37   : > { %p2971_p3 = pnand %p2970_p1, %p3105_p13  ;;  %p2976_p7 = por %p2975_p8, %p2974_p12 }
  0x39   : > { %p2972_p5 = pneg %p2971_p3 }
  0x3b   : > { %p2977_p9 = pnand %p2976_p7, %p2972_p5 }
  0x96   : > { %2682 = vset.pattern.permute.xlu0 %v3029_v2 }
  0xd3   : > { %v211_v3 = vpop.trf.xlu0 }
  0xd4   : > { %364 = vperm.xlu2 %2683, %v211_v3  }
  0xdb   : > { %v212_v4 = vpop.trf.xlu0 }
  0xdc   : > { %235 = vperm.xlu1 %2684, %v212_v4  }
  0xe3   : > { %v213_v5 = vpop.trf.xlu0 }
  0xe4   : > { %2685 = vset.pattern.permute.xlu1 %v3028_v0  ;;  %372 = vperm.xlu2 %2683, %v213_v5  }
  0xe5   : > { %368 = vperm.xlu1 %2685, %v212_v4  }
  0xeb   : > { %v214_v6 = vpop.trf.xlu0 }
  0xec   : > { %2687 = vset.pattern.permute.xlu2 %v3029_v2 }
  0xed   : > { %2686 = vset.pattern.permute.xlu1 %v3029_v2  ;;  %245 = vperm.xlu2 %2687, %v214_v6  }
  0xee   : > { %240 = vperm.xlu1 %2686, %v213_v5  }
  0xf3   : > { %v215_v7 = vpop.trf.xlu0 }
  0xf5   : > { %250 = vperm.xlu2 %2687, %v215_v7  }
  0xf6   : > { %2688 = vset.pattern.permute.xlu1 %v3028_v0 }
  0xf7   : > { %376 = vperm.xlu1 %2688, %v214_v6   ;;  %v3257_v6 = vld [vmem:[#allocation5 + $0x28] sm:$0xff] }
  0xfb   : > { %v216_v8 = vpop.trf.xlu0 }
  0xfd   : > { %2689 = vset.pattern.permute.xlu2 %v3028_v0 }
  0xfe   : > { %380 = vperm.xlu2 %2689, %v215_v7  }
  0xff   : > { %2690 = vset.pattern.permute.xlu1 %v3029_v2 }
 0x100   : > { %255 = vperm.xlu1 %2690, %v216_v8  }
 0x103   : > { %v217_v9 = vpop.trf.xlu0 }
 0x106   : > { %2692 = vset.pattern.permute.xlu2 %v3029_v2 }
 0x107   : > { %260 = vperm.xlu2 %2692, %v217_v9  }
 0x108   : > { %2691 = vset.pattern.permute.xlu1 %v3028_v0 }
 0x109   : > { %384 = vperm.xlu1 %2691, %v216_v8  }
 0x10b   : > { %v218_v10 = vpop.trf.xlu0 }
 0x10f   : > { %2693 = vset.pattern.permute.xlu2 %v3028_v0 }
 0x110   : > { %388 = vperm.xlu2 %2693, %v217_v9   ;;  %v3263_v9 = vld [vmem:[#allocation5 + $0x8] sm:$0xff] }
 0x111   : > { %2694 = vset.pattern.permute.xlu1 %v3029_v2 }
 0x112   : > { %265 = vperm.xlu1 %2694, %v218_v10  }
 0x113   : > { %v219_v11 = vpop.trf.xlu0 }
 0x115   : > { %230 = vperm.xlu0 %2682, %v211_v3  }
 0x118   : > { %2696 = vset.pattern.permute.xlu2 %v3029_v2 }
 0x119   : > { %270 = vperm.xlu2 %2696, %v219_v11  }
 0x11a   : > { %2695 = vset.pattern.permute.xlu1 %v3028_v0 }
 0x11b   : > { %392 = vperm.xlu1 %2695, %v218_v10   ;;  %v220_v12 = vpop.trf.xlu0  ;;  %v3265_v10 = vld [vmem:[#allocation5 + $0x38] sm:$0xff] }
 0x11d   : > { %2715 = vset.pattern.permute.xlu0 %v3028_v0 }
 0x121   : > { %2697 = vset.pattern.permute.xlu2 %v3028_v0 }
 0x122   : > { %396 = vperm.xlu2 %2697, %v219_v11  }
 0x123   : > { %2698 = vset.pattern.permute.xlu1 %v3029_v2  ;;  %v221_v13 = vpop.trf.xlu0 }
 0x124   : > { %275 = vperm.xlu1 %2698, %v220_v12  }
 0x12a   : > { %2700 = vset.pattern.permute.xlu2 %v3029_v2 }
 0x12b   : > { %280 = vperm.xlu2 %2700, %v221_v13   ;;  %v222_v14 = vpop.trf.xlu0 }
 0x12c   : > { %2699 = vset.pattern.permute.xlu1 %v3028_v0 }
 0x12d   : > { %400 = vperm.xlu1 %2699, %v220_v12  }
 0x12e   : > { %v365_v15 = vpop.permute.xlu2 %364 }
 0x12f   : > { %v427_v24 = vsub.f32 %v3190_v23, %v365_v15 }
 0x131   : > { %v3203_v31 = vmul.f32 %v427_v24, %v3196_v27 }
 0x133   : > { %2701 = vset.pattern.permute.xlu2 %v3028_v0  ;;  %v223_v16 = vpop.trf.xlu0 }
 0x134   : > { %404 = vperm.xlu2 %2701, %v221_v13  }
 0x135   : > { %2702 = vset.pattern.permute.xlu1 %v3029_v2 }
 0x136   : > { %285 = vperm.xlu1 %2702, %v222_v14  }
 0x13b   : > { %v224_v18 = vpop.trf.xlu0 }
 0x13c   : > { %2704 = vset.pattern.permute.xlu2 %v3029_v2 }
 0x13d   : > { %290 = vperm.xlu2 %2704, %v223_v16  }
 0x13e   : > { %2703 = vset.pattern.permute.xlu1 %v3028_v0  ;;  %v3177_v17 = vpop.permute.xlu2 %372 }
 0x13f   : > { %408 = vperm.xlu1 %2703, %v222_v14   ;;  %v429_v55 = vsub.f32 %v3190_v23, %v3177_v17  ;;  %v3272_v17 = vld [vmem:[#allocation5 + $0x48] sm:$0xff] }
 0x141   : > { %v3261_v8 = vmul.f32 %v429_v55, %v3239_v56 }
 0x143   : > { %v225_v20 = vpop.trf.xlu0 }
 0x145   : > { %2705 = vset.pattern.permute.xlu2 %v3028_v0 }
 0x146   : > { %412 = vperm.xlu2 %2705, %v223_v16  }
 0x147   : > { %2706 = vset.pattern.permute.xlu1 %v3029_v2  ;;  %v3181_v19 = vpop.permute.xlu2 %245 }
 0x148   : > { %295 = vperm.xlu1 %2706, %v224_v18   ;;  %v311_v57 = vsub.f32 %v3235_v53, %v3181_v19  ;;  %v3275_v19 = vld [vmem:[#allocation5 + $0x50] sm:$0xff] }
 0x14a   : > { %v327_v13 = vmul.f32 %v311_v57, %v3245_v60  ;;  %v3302_v57 = vld [vmem:[#allocation5 + $0x60] sm:$0xff] }
 0x14b   : > { %v226_v26 = vpop.trf.xlu0 }
 0x14e   : > { %v3183_v21 = vpop.permute.xlu1 %235  ;;  %2708 = vset.pattern.permute.xlu2 %v3029_v2 }
 0x14f   : > { %300 = vperm.xlu2 %2708, %v225_v20   ;;  %v3186_v22 = vpop.permute.xlu2 %250  ;;  %v309_v4 = vsub.f32 %v3235_v53, %v3183_v21 }
 0x150   : > { %2707 = vset.pattern.permute.xlu1 %v3028_v0  ;;  %v312_v5 = vsub.f32 %v3235_v53, %v3186_v22 }
 0x151   : > { %416 = vperm.xlu1 %2707, %v224_v18   ;;  %v325_v24 = vmul.f32 %v309_v4, %v3263_v9 }
 0x157   : > { %v3193_v25 = vpop.permute.xlu1 %368  ;;  %2709 = vset.pattern.permute.xlu2 %v3028_v0 }
 0x158   : > { %v381_v28 = vpop.permute.xlu2 %380  ;;  %420 = vperm.xlu2 %2709, %v225_v20  }
 0x159   : > { %v431_v29 = vsub.f32 %v3190_v23, %v381_v28  ;;  %2710 = vset.pattern.permute.xlu1 %v3029_v2 }
 0x15a   : > { %305 = vperm.xlu1 %2710, %v226_v26  }
 0x15b   : > { %v3206_v32 = vmul.f32 %v431_v29, %v3200_v30 }
 0x15d   : > { %v459_v33 = vmax.f32 %v3203_v31, %v3206_v32 }
 0x160   : > { %v241_v34 = vpop.permute.xlu1 %240 }
 0x161   : > { %v261_v37 = vpop.permute.xlu2 %260  ;;  %v310_v58 = vsub.f32 %v3235_v53, %v241_v34  ;;  %v3285_v34 = vld [vmem:[#allocation5 + $0x58] sm:$0xff] }
 0x162   : > { %2711 = vset.pattern.permute.xlu1 %v3028_v0  ;;  %v314_v59 = vsub.f32 %v3235_v53, %v261_v37  ;;  %v428_v37 = vsub.f32 %v3190_v23, %v3193_v25  ;;  %v3304_v25 = vld [vmem:[#allocation5 + $0x70] sm:$0xff] }
 0x163   : > { %424 = vperm.xlu1 %2711, %v226_v26   ;;  %v326_v14 = vmul.f32 %v310_v58, %v3239_v56  ;;  %v328_v26 = vmul.f32 %v312_v5, %v3200_v30 }
 0x164   : > { %v330_v15 = vmul.f32 %v314_v59, %v3247_v61 }
 0x169   : > { %v3211_v35 = vpop.permute.xlu1 %376 }
 0x16a   : > { %v3216_v39 = vpop.permute.xlu2 %388 }
 0x16b   : > { %2712 = vset.pattern.permute.xlu1 %v3029_v2 }
 0x172   : > { %v256_v36 = vpop.permute.xlu1 %255 }
 0x173   : > { %v3218_v41 = vpop.permute.xlu2 %270  ;;  %v313_v62 = vsub.f32 %v3235_v53, %v256_v36  ;;  %v3287_v36 = vld [vmem:[#allocation5 + $0x68] sm:$0xff] }
 0x174   : > { %v316_v28 = vsub.f32 %v3235_v53, %v3218_v41  ;;  %v430_v41 = vsub.f32 %v3190_v23, %v3211_v35 }
 0x175   : > { %v329_v18 = vmul.f32 %v313_v62, %v3257_v6 }
 0x177   : > { %v341_v58 = vmax.f32 %v325_v24, %v329_v18 }
 0x17b   : > { %v3214_v38 = vpop.permute.xlu1 %384 }
 0x17c   : > { %v3222_v43 = vpop.permute.xlu2 %396  ;;  %v432_v35 = vsub.f32 %v3190_v23, %v3214_v38 }
 0x17d   : > { %v435_v18 = vsub.f32 %v3190_v23, %v3222_v43 }
 0x184   : > { %v266_v40 = vpop.permute.xlu1 %265 }
 0x185   : > { %v281_v45 = vpop.permute.xlu2 %280  ;;  %v315_v7 = vsub.f32 %v3235_v53, %v266_v40  ;;  %v3291_v40 = vld [vmem:[#allocation5 + $0x40] sm:$0xff] }
 0x186   : > { %v318_v16 = vsub.f32 %v3235_v53, %v281_v45 }
 0x187   : > { %v231_v54 = vpop.permute.xlu0 %230  ;;  %v331_v29 = vmul.f32 %v315_v7, %v3265_v10  ;;  %v3313_v7 = vld [vmem:[#allocation5 + $0x78] sm:$0xff] }
 0x188   : > { %v308_v63 = vsub.f32 %v3235_v53, %v231_v54  ;;  %v433_v54 = vsub.f32 %v3190_v23, %v3216_v39  ;;  %v334_v55 = vmul.f32 %v318_v16, %v3275_v19 }
 0x189   : > { %v343_v4 = vmax.f32 %v327_v13, %v331_v29 }
 0x18a   : > { %v324_v20 = vmul.f32 %v308_v63, %v3196_v27  ;;  %v332_v63 = vmul.f32 %v316_v28, %v3291_v40  ;;  %v449_v16 = vmul.f32 %v433_v54, %v3247_v61 }
 0x18c   : > { %v340_v59 = vmax.f32 %v324_v20, %v328_v26  ;;  %v448_v26 = vmul.f32 %v432_v35, %v3257_v6 }
 0x18d   : > { %v3220_v42 = vpop.permute.xlu1 %392 }
 0x18e   : > { %v3226_v47 = vpop.permute.xlu2 %404  ;;  %v434_v39 = vsub.f32 %v3190_v23, %v3220_v42  ;;  %v344_v42 = vmax.f32 %v340_v59, %v332_v63  ;;  %v461_v63 = vmax.f32 %v3261_v8, %v449_v16 }
 0x190   : > { %v450_v29 = vmul.f32 %v434_v39, %v3265_v10 }
 0x196   : > { %v276_v44 = vpop.permute.xlu1 %275 }
 0x197   : > { %v3228_v49 = vpop.permute.xlu2 %290  ;;  %v317_v11 = vsub.f32 %v3235_v53, %v276_v44 }
 0x198   : > { %v320_v45 = vsub.f32 %v3235_v53, %v3228_v49 }
 0x199   : > { %v333_v44 = vmul.f32 %v317_v11, %v3272_v17 }
 0x19b   : > { %v345_v11 = vmax.f32 %v341_v58, %v333_v44 }
 0x19f   : > { %v3224_v46 = vpop.permute.xlu1 %400 }
 0x1a0   : > { %v3232_v52 = vpop.permute.xlu2 %412  ;;  %v436_v13 = vsub.f32 %v3190_v23, %v3224_v46 }
 0x1a1   : > { %v439_v54 = vsub.f32 %v3190_v23, %v3232_v52 }
 0x1a8   : > { %v286_v48 = vpop.permute.xlu1 %285 }
 0x1a9   : > { %v301_v12 = vpop.permute.xlu2 %300  ;;  %v319_v21 = vsub.f32 %v3235_v53, %v286_v48 }
 0x1aa   : > { %v322_v48 = vsub.f32 %v3235_v53, %v301_v12  ;;  %v336_v12 = vmul.f32 %v320_v45, %v3302_v57 }
 0x1ab   : > { %v335_v62 = vmul.f32 %v319_v21, %v3285_v34 }
 0x1ac   : > { %v348_v46 = vmax.f32 %v344_v42, %v336_v12 }
 0x1ad   : > { %v347_v20 = vmax.f32 %v343_v4, %v335_v62 }
 0x1b1   : > { %v3230_v50 = vpop.permute.xlu1 %408 }
 0x1b2   : > { %v421_v21 = vpop.permute.xlu2 %420  ;;  %v438_v28 = vsub.f32 %v3190_v23, %v3230_v50  ;;  %v451_v50 = vmul.f32 %v435_v18, %v3291_v40 }
 0x1b4   : > { %v463_v12 = vmax.f32 %v459_v33, %v451_v50 }
 0x1ba   : > { %v296_v51 = vpop.permute.xlu1 %295 }
 0x1bb   : > { %v321_v22 = vsub.f32 %v3235_v53, %v296_v51  ;;  %v342_v51 = vmax.f32 %v326_v14, %v330_v15  ;;  %v338_v14 = vmul.f32 %v322_v48, %v3304_v25  ;;  %v444_v48 = vmul.f32 %v428_v37, %v3263_v9 }
 0x1bd   : > { %v337_v49 = vmul.f32 %v321_v22, %v3287_v36  ;;  %v346_v38 = vmax.f32 %v342_v51, %v334_v55  ;;  %v452_v51 = vmul.f32 %v436_v13, %v3272_v17  ;;  %v446_v55 = vmul.f32 %v430_v41, %v3245_v60 }
 0x1be   : > { %v460_v59 = vmax.f32 %v444_v48, %v448_v26 }
 0x1bf   : > { %v349_v22 = vmax.f32 %v345_v11, %v337_v49  ;;  %v350_v44 = vmax.f32 %v346_v38, %v338_v14  ;;  %v454_v49 = vmul.f32 %v438_v28, %v3285_v34  ;;  %v462_v35 = vmax.f32 %v446_v55, %v450_v29 }
 0x1c0   : > { %v464_v39 = vmax.f32 %v460_v59, %v452_v51 }
 0x1c1   : > { %v352_v58 = vmax.f32 %v348_v46, %v349_v22  ;;  %v466_v18 = vmax.f32 %v462_v35, %v454_v49 }
 0x1c3   : > { %v3251_v3 = vpop.permute.xlu1 %416 }
 0x1c4   : > { %v440_v43 = vsub.f32 %v3190_v23, %v3251_v3 }
 0x1c6   : > { %v456_v37 = vmul.f32 %v440_v43, %v3287_v36 }
 0x1c8   : > { %v468_v38 = vmax.f32 %v464_v39, %v456_v37 }
 0x1cc   : > { %v306_v5 = vpop.permute.xlu1 %305 }
 0x1cd   : > { %v323_v15 = vsub.f32 %v3235_v53, %v306_v5  ;;  %v437_v53 = vsub.f32 %v3190_v23, %v3226_v47  ;;  %v441_v47 = vsub.f32 %v3190_v23, %v421_v21  ;;  %v455_v5 = vmul.f32 %v439_v54, %v3302_v57 }
 0x1cf   : > { %v339_v24 = vmul.f32 %v323_v15, %v3313_v7  ;;  %v453_v62 = vmul.f32 %v437_v53, %v3275_v19  ;;  %v457_v41 = vmul.f32 %v441_v47, %v3304_v25  ;;  %v467_v13 = vmax.f32 %v463_v12, %v455_v5 }
 0x1d1   : > { %v351_v45 = vmax.f32 %v347_v20, %v339_v24  ;;  %v465_v15 = vmax.f32 %v461_v63, %v453_v62  ;;  %v471_v21 = vmax.f32 %v467_v13, %v468_v38 }
 0x1d3   : > { %v353_v3 = vmax.f32 %v350_v44, %v351_v45  ;;  %v469_v42 = vmax.f32 %v465_v15, %v457_v41 }
 0x1d5   : > { %v354_v4 = vmax.f32 %v352_v58, %v353_v3  ;;  %v425_v52 = vpop.permute.xlu1 %424 }
 0x1d6   : > { %v442_v11 = vsub.f32 %v3190_v23, %v425_v52 }
 0x1d7   : > { %v355_v14 = vrot.slane %v354_v4, 4 }
 0x1d8   : > { %v458_v8 = vmul.f32 %v442_v11, %v3313_v7 }
 0x1d9   : > { %v356_v16 = vmax.f32 %v354_v4, %v355_v14 }
 0x1da   : > { %v470_v20 = vmax.f32 %v466_v18, %v458_v8 }
 0x1db   : > { %v357_v22 = vrot.slane %v356_v16, 2 }
 0x1dc   : > { %v472_v24 = vmax.f32 %v469_v42, %v470_v20 }
 0x1dd   : > { %v358_v53 = vmax.f32 %v356_v16, %v357_v22 }
 0x1de   : > { %v473_v26 = vmax.f32 %v471_v21, %v472_v24 }
 0x1df   : > { %v359_v43 = vrot.slane %v358_v53, 1 }
 0x1e0   : > { %v474_v23 = vrot.slane %v473_v26, 4 }
 0x1e1   : > { %v360_v29 = vmax.f32 %v358_v53, %v359_v43 }
 0x1e2   : > { %v475_v28 = vmax.f32 %v473_v26, %v474_v23 }
 0x1e3   : > { %v361_v44 = vmax.f32 %v360_v29, 0.0 }
 0x1e4   : > { %v476_v31 = vrot.slane %v475_v28, 2 }
 0x1e6   : > { %v477_v32 = vmax.f32 %v475_v28, %v476_v31 }
 0x1e8   : > { %v478_v33 = vrot.slane %v477_v32, 1 }
 0x1ea   : > { %v479_v46 = vmax.f32 %v477_v32, %v478_v33 }
 0x1ec   : > { %v480_v45 = vmax.f32 %v479_v46, 0.0 }
 0x1ee   : > { %v482_v48 = vsel %vm481_vm0, %v361_v44, %v480_v45 }
 0x1ef   : > { %v484_v51 = vsel %vm483_vm1, %v482_v48, 0.0 }
 0x1f0   : > { %v3353_v54 = vsub.f32 %v3151_v1, %v484_v51 }
 0x1f2   : > { %486 = vxpose.xlu2.b32.start.end [1/1] (short) %v3353_v54, 128  ;;  %v518_v45 = vperm.slane %v3353_v54, 0  ;;  %v3405_v51 = vperm.slane %v3353_v54, 1 }
 0x254   : > { %2719 = vset.pattern.permute.xlu2 %v3029_v2 }
 0x28b   : > { %v502_v47 = vpop.trf.xlu2 }
 0x28c   : > { %521 = vperm.xlu1 %2712, %v502_v47  }
 0x293   : > { %v503_v55 = vpop.trf.xlu2 }
 0x294   : > { %2713 = vset.pattern.permute.xlu1 %v3028_v0  ;;  %659 = vperm.xlu0 %2715, %v503_v55  }
 0x295   : > { %655 = vperm.xlu1 %2713, %v502_v47  }
 0x29b   : > { %v504_v50 = vpop.trf.xlu2 }
 0x29d   : > { %2714 = vset.pattern.permute.xlu1 %v3029_v2 }
 0x29e   : > { %526 = vperm.xlu1 %2714, %v503_v55  }
 0x2a3   : > { %v505_v58 = vpop.trf.xlu2 }
 0x2a6   : > { %531 = vperm.xlu1 %2714, %v504_v50  }
 0x2ab   : > { %v506_v3 = vpop.trf.xlu2 }
 0x2ac   : > { %671 = vperm.xlu0 %2715, %v506_v3  }
 0x2ae   : > { %2716 = vset.pattern.permute.xlu1 %v3028_v0 }
 0x2af   : > { %663 = vperm.xlu1 %2716, %v504_v50  }
 0x2b3   : > { %v507_v1 = vpop.trf.xlu2 }
 0x2b7   : > { %2717 = vset.pattern.permute.xlu1 %v3029_v2 }
 0x2b8   : > { %536 = vperm.xlu1 %2717, %v505_v58  }
 0x2bb   : > { %v508_v59 = vpop.trf.xlu2 }
 0x2bc   : > { %679 = vperm.xlu0 %2715, %v508_v59  }
 0x2c0   : > { %2718 = vset.pattern.permute.xlu1 %v3028_v0 }
 0x2c1   : > { %667 = vperm.xlu1 %2718, %v505_v58  }
 0x2c3   : > { %v509_v62 = vpop.trf.xlu2 }
 0x2c9   : > { %2720 = vset.pattern.permute.xlu1 %v3029_v2 }
 0x2ca   : > { %546 = vperm.xlu1 %2720, %v507_v1  }
 0x2cb   : > { %v510_v49 = vpop.trf.xlu2 }
 0x2cc   : > { %687 = vperm.xlu0 %2715, %v510_v49  }
 0x2d2   : > { %2721 = vset.pattern.permute.xlu1 %v3028_v0 }
 0x2d3   : > { %541 = vperm.xlu2 %2719, %v506_v3   ;;  %675 = vperm.xlu1 %2721, %v507_v1   ;;  %v511_v37 = vpop.trf.xlu2 }
 0x2db   : > { %2722 = vset.pattern.permute.xlu1 %v3029_v2  ;;  %v512_v63 = vpop.trf.xlu2  ;;  %2734 = vset.pattern.permute.xlu2 %v3028_v0 }
 0x2dc   : > { %551 = vperm.xlu1 %2722, %v508_v59   ;;  %695 = vperm.xlu0 %2715, %v512_v63  }
 0x2e3   : > { %v513_v35 = vpop.trf.xlu2 }
 0x2e4   : > { %556 = vperm.xlu1 %2722, %v509_v62  }
 0x2eb   : > { %v514_v4 = vpop.trf.xlu2 }
 0x2ec   : > { %2723 = vset.pattern.permute.xlu1 %v3028_v0  ;;  %703 = vperm.xlu0 %2715, %v514_v4  }
 0x2ed   : > { %683 = vperm.xlu1 %2723, %v509_v62  }
 0x2f3   : > { %v515_v52 = vpop.trf.xlu2 }
 0x2f5   : > { %2724 = vset.pattern.permute.xlu1 %v3029_v2 }
 0x2f6   : > { %561 = vperm.xlu1 %2724, %v510_v49  }
 0x2fb   : > { %v516_v39 = vpop.trf.xlu2 }
 0x2fc   : > { %711 = vperm.xlu0 %2715, %v516_v39  }
 0x2fe   : > { %v522_v5 = vpop.permute.xlu1 %521  ;;  %566 = vperm.xlu1 %2724, %v511_v37  }
 0x2ff   : > { %v599_v47 = vsub.f32 %v518_v45, %v522_v5 }
 0x301   : > { %v615_v1 = vmul.f32 %v599_v47, %v3196_v27 }
 0x303   : > { %v517_v41 = vpop.trf.xlu2 }
 0x304   : > { %2731 = vset.pattern.permute.xlu0 %v3029_v2 }
 0x305   : > { %596 = vperm.xlu0 %2731, %v517_v41  }
 0x306   : > { %2725 = vset.pattern.permute.xlu1 %v3028_v0  ;;  %v660_v24 = vpop.permute.xlu0 %659 }
 0x307   : > { %v656_v11 = vpop.permute.xlu1 %655  ;;  %691 = vperm.xlu1 %2725, %v511_v37   ;;  %v719_v55 = vsub.f32 %v3405_v51, %v660_v24 }
 0x308   : > { %v718_v58 = vsub.f32 %v3405_v51, %v656_v11 }
 0x30a   : > { %v3420_v11 = vmul.f32 %v718_v58, %v3196_v27 }
 0x30f   : > { %2726 = vset.pattern.permute.xlu1 %v3029_v2 }
 0x310   : > { %v3371_v12 = vpop.permute.xlu1 %526  ;;  %571 = vperm.xlu1 %2726, %v512_v63  }
 0x311   : > { %v600_v59 = vsub.f32 %v518_v45, %v3371_v12 }
 0x318   : > { %v3373_v14 = vpop.permute.xlu1 %531  ;;  %576 = vperm.xlu1 %2726, %v513_v35  }
 0x319   : > { %v601_v37 = vsub.f32 %v518_v45, %v3373_v14  ;;  %v616_v14 = vmul.f32 %v600_v59, %v3263_v9 }
 0x31b   : > { %v617_v47 = vmul.f32 %v601_v37, %v3239_v56 }
 0x31e   : > { %v672_v53 = vpop.permute.xlu0 %671 }
 0x31f   : > { %v722_v63 = vsub.f32 %v3405_v51, %v672_v53 }
 0x320   : > { %2727 = vset.pattern.permute.xlu1 %v3028_v0 }
 0x321   : > { %v3376_v15 = vpop.permute.xlu1 %663  ;;  %699 = vperm.xlu1 %2727, %v513_v35  }
 0x329   : > { %2728 = vset.pattern.permute.xlu1 %v3029_v2 }
 0x32a   : > { %v3379_v18 = vpop.permute.xlu1 %536  ;;  %581 = vperm.xlu1 %2728, %v514_v4  }
 0x32d   : > { %v542_v50 = vpop.permute.xlu2 %541 }
 0x32e   : > { %v680_v28 = vpop.permute.xlu0 %679  ;;  %v603_v35 = vsub.f32 %v518_v45, %v542_v50 }
 0x32f   : > { %v724_v12 = vsub.f32 %v3405_v51, %v680_v28 }
 0x332   : > { %586 = vperm.xlu1 %2728, %v515_v52  }
 0x333   : > { %v3381_v38 = vpop.permute.xlu1 %667 }
 0x33a   : > { %2729 = vset.pattern.permute.xlu1 %v3028_v0 }
 0x33b   : > { %707 = vperm.xlu1 %2729, %v515_v52   ;;  %v3416_v52 = vmul.f32 %v719_v55, %v3263_v9 }
 0x33c   : > { %v547_v8 = vpop.permute.xlu1 %546 }
 0x33d   : > { %v604_v3 = vsub.f32 %v518_v45, %v547_v8 }
 0x33e   : > { %v3393_v31 = vpop.permute.xlu0 %687 }
 0x33f   : > { %v620_v8 = vmul.f32 %v604_v3, %v3257_v6 }
 0x341   : > { %v632_v3 = vmax.f32 %v616_v14, %v620_v8  ;;  %v726_v14 = vsub.f32 %v3405_v51, %v3393_v31 }
 0x343   : > { %2730 = vset.pattern.permute.xlu1 %v3029_v2 }
 0x344   : > { %591 = vperm.xlu1 %2730, %v516_v39   ;;  %v602_v39 = vsub.f32 %v518_v45, %v3379_v18  ;;  %v3428_v18 = vmul.f32 %v722_v63, %v3200_v30 }
 0x345   : > { %v3385_v16 = vpop.permute.xlu1 %675 }
 0x346   : > { %v618_v28 = vmul.f32 %v602_v39, %v3245_v60  ;;  %v721_v39 = vsub.f32 %v3405_v51, %v3381_v38 }
 0x34c   : > { %2732 = vset.pattern.permute.xlu1 %v3028_v0 }
 0x34d   : > { %715 = vperm.xlu1 %2732, %v517_v41  }
 0x34e   : > { %v552_v13 = vpop.permute.xlu1 %551  ;;  %v3397_v33 = vpop.permute.xlu0 %695 }
 0x34f   : > { %v605_v4 = vsub.f32 %v518_v45, %v552_v13 }
 0x355   : > { %2733 = vset.pattern.permute.xlu1 %v3029_v2 }
 0x356   : > { %v557_v42 = vpop.permute.xlu1 %556 }
 0x357   : > { %v606_v62 = vsub.f32 %v518_v45, %v557_v42 }
 0x359   : > { %v622_v24 = vmul.f32 %v606_v62, %v3265_v10 }
 0x35b   : > { %v634_v62 = vmax.f32 %v618_v28, %v622_v24 }
 0x35e   : > { %v3399_v46 = vpop.permute.xlu0 %703 }
 0x35f   : > { %v3389_v20 = vpop.permute.xlu1 %683 }
 0x360   : > { %v725_v24 = vsub.f32 %v3405_v51, %v3389_v20 }
 0x368   : > { %v562_v21 = vpop.permute.xlu1 %561 }
 0x369   : > { %v607_v42 = vsub.f32 %v518_v45, %v562_v21 }
 0x36b   : > { %v623_v59 = vmul.f32 %v607_v42, %v3291_v40 }
 0x36e   : > { %v3402_v48 = vpop.permute.xlu0 %711 }
 0x370   : > { %v567_v22 = vpop.permute.xlu1 %566 }
 0x371   : > { %v608_v5 = vsub.f32 %v518_v45, %v567_v22  ;;  %v619_v22 = vmul.f32 %v603_v35, %v3200_v30 }
 0x373   : > { %v624_v21 = vmul.f32 %v608_v5, %v3272_v17 }
 0x377   : > { %v597_v55 = vpop.permute.xlu0 %596 }
 0x378   : > { %v614_v37 = vsub.f32 %v518_v45, %v597_v55 }
 0x379   : > { %v3391_v26 = vpop.permute.xlu1 %691 }
 0x37a   : > { %v727_v38 = vsub.f32 %v3405_v51, %v3391_v26  ;;  %v730_v26 = vsub.f32 %v3405_v51, %v3399_v46 }
 0x382   : > { %v572_v23 = vpop.permute.xlu1 %571 }
 0x383   : > { %v609_v13 = vsub.f32 %v518_v45, %v572_v23  ;;  %v720_v23 = vsub.f32 %v3405_v51, %v3376_v15 }
 0x385   : > { %v625_v63 = vmul.f32 %v609_v13, %v3275_v19  ;;  %v630_v13 = vmul.f32 %v614_v37, %v3313_v7 }
 0x38a   : > { %v577_v43 = vpop.permute.xlu1 %576 }
 0x38b   : > { %v610_v41 = vsub.f32 %v518_v45, %v577_v43  ;;  %v621_v43 = vmul.f32 %v605_v4, %v3247_v61  ;;  %v631_v4 = vmax.f32 %v615_v1, %v619_v22 }
 0x38d   : > { %v626_v50 = vmul.f32 %v610_v41, %v3285_v34  ;;  %v633_v5 = vmax.f32 %v617_v47, %v621_v43  ;;  %v636_v41 = vmax.f32 %v632_v3, %v624_v21  ;;  %v635_v1 = vmax.f32 %v631_v4, %v623_v59 }
 0x38e   : > { %v736_v21 = vmul.f32 %v720_v23, %v3239_v56  ;;  %v742_v3 = vmul.f32 %v726_v14, %v3291_v40 }
 0x393   : > { %v3395_v32 = vpop.permute.xlu1 %699 }
 0x394   : > { %v729_v31 = vsub.f32 %v3405_v51, %v3395_v32  ;;  %v737_v32 = vmul.f32 %v721_v39, %v3245_v60 }
 0x396   : > { %v745_v37 = vmul.f32 %v729_v31, %v3285_v34 }
 0x39c   : > { %v582_v29 = vpop.permute.xlu1 %581 }
 0x39d   : > { %v611_v58 = vsub.f32 %v518_v45, %v582_v29  ;;  %v723_v29 = vsub.f32 %v3405_v51, %v3385_v16  ;;  %v637_v16 = vmax.f32 %v633_v5, %v625_v63  ;;  %v750_v63 = vmax.f32 %v3420_v11, %v3428_v18 }
 0x39f   : > { %v627_v8 = vmul.f32 %v611_v58, %v3302_v57  ;;  %v739_v22 = vmul.f32 %v723_v29, %v3257_v6  ;;  %v732_v58 = vsub.f32 %v3405_v51, %v3402_v48 }
 0x3a1   : > { %v639_v55 = vmax.f32 %v635_v1, %v627_v8  ;;  %v751_v46 = vmax.f32 %v3416_v52, %v739_v22  ;;  %v748_v5 = vmul.f32 %v732_v58, %v3304_v25 }
 0x3a4   : > { %v587_v44 = vpop.permute.xlu1 %586 }
 0x3a5   : > { %v612_v53 = vsub.f32 %v518_v45, %v587_v44  ;;  %v740_v44 = vmul.f32 %v724_v12, %v3247_v61  ;;  %v638_v12 = vmax.f32 %v634_v62, %v626_v50  ;;  %v741_v50 = vmul.f32 %v725_v24, %v3265_v10 }
 0x3a7   : > { %v628_v35 = vmul.f32 %v612_v53, %v3287_v36  ;;  %v642_v43 = vmax.f32 %v638_v12, %v630_v13  ;;  %v752_v48 = vmax.f32 %v736_v21, %v740_v44  ;;  %v753_v29 = vmax.f32 %v737_v32, %v741_v50 }
 0x3a9   : > { %v640_v53 = vmax.f32 %v636_v41, %v628_v35  ;;  %v746_v35 = vmul.f32 %v730_v26, %v3302_v57  ;;  %v754_v41 = vmax.f32 %v750_v63, %v742_v3 }
 0x3ab   : > { %v758_v11 = vmax.f32 %v754_v41, %v746_v35 }
 0x3ad   : > { %v3411_v49 = vpop.permute.xlu1 %707 }
 0x3ae   : > { %v731_v20 = vsub.f32 %v3405_v51, %v3411_v49  ;;  %v643_v49 = vmax.f32 %v639_v55, %v640_v53 }
 0x3b0   : > { %v747_v23 = vmul.f32 %v731_v20, %v3287_v36 }
 0x3b6   : > { %v592_v15 = vpop.permute.xlu1 %591 }
 0x3b7   : > { %v613_v42 = vsub.f32 %v518_v45, %v592_v15  ;;  %v728_v45 = vsub.f32 %v3405_v51, %v3397_v33  ;;  %v743_v33 = vmul.f32 %v727_v38, %v3272_v17 }
 0x3b9   : > { %v629_v47 = vmul.f32 %v613_v42, %v3304_v25  ;;  %v744_v62 = vmul.f32 %v728_v45, %v3275_v19  ;;  %v755_v15 = vmax.f32 %v751_v46, %v743_v33  ;;  %v757_v42 = vmax.f32 %v753_v29, %v745_v37 }
 0x3bb   : > { %v641_v28 = vmax.f32 %v637_v16, %v629_v47  ;;  %v756_v8 = vmax.f32 %v752_v48, %v744_v62  ;;  %v759_v14 = vmax.f32 %v755_v15, %v747_v23 }
 0x3bd   : > { %v644_v59 = vmax.f32 %v641_v28, %v642_v43  ;;  %v760_v18 = vmax.f32 %v756_v8, %v748_v5  ;;  %v762_v38 = vmax.f32 %v758_v11, %v759_v14 }
 0x3bf   : > { %v645_v4 = vmax.f32 %v643_v49, %v644_v59  ;;  %v716_v39 = vpop.permute.xlu1 %715 }
 0x3c0   : > { %v733_v52 = vsub.f32 %v3405_v51, %v716_v39 }
 0x3c1   : > { %v646_v12 = vrot.slane %v645_v4, 4 }
 0x3c2   : > { %v749_v24 = vmul.f32 %v733_v52, %v3313_v7 }
 0x3c3   : > { %v647_v1 = vmax.f32 %v645_v4, %v646_v12 }
 0x3c4   : > { %v761_v44 = vmax.f32 %v757_v42, %v749_v24 }
 0x3c5   : > { %v648_v13 = vrot.slane %v647_v1, 2 }
 0x3c6   : > { %v763_v16 = vmax.f32 %v760_v18, %v761_v44 }
 0x3c7   : > { %v649_v47 = vmax.f32 %v647_v1, %v648_v13 }
 0x3c8   : > { %v764_v53 = vmax.f32 %v762_v38, %v763_v16 }
 0x3c9   : > { %v650_v31 = vrot.slane %v649_v47, 1 }
 0x3ca   : > { %v765_v22 = vrot.slane %v764_v53, 4 }
 0x3cb   : > { %v651_v43 = vmax.f32 %v649_v47, %v650_v31 }
 0x3cc   : > { %v766_v45 = vmax.f32 %v764_v53, %v765_v22 }
 0x3cd   : > { %v652_v28 = vmax.f32 %v651_v43, 0.0 }
 0x3ce   : > { %v767_v51 = vrot.slane %v766_v45, 2 }
 0x3d0   : > { %v768_v20 = vmax.f32 %v766_v45, %v767_v51 }
 0x3d2   : > { %v769_v26 = vrot.slane %v768_v20, 1 }
 0x3d4   : > { %v770_v55 = vmax.f32 %v768_v20, %v769_v26 }
 0x3d6   : > { %v771_v21 = vmax.f32 %v770_v55, 0.0 }
 0x3d8   : > { %v772_v50 = vsel %vm481_vm0, %v652_v28, %v771_v21 }
 0x3d9   : > { %v773_v58 = vsel %vm483_vm1, %v772_v50, 0.0 }
 0x3da   : > { %v3483_v33 = vsub.f32 %v3353_v54, %v773_v58 }
 0x3dc   : > { %775 = vxpose.xlu0.b32.start.end [1/1] (short) %v3483_v33, 128  ;;  %v3514_v14 = vperm.slane %v3483_v33, 0  ;;  %v3522_v13 = vperm.slane %v3483_v33, 1 }
 0x480   : > { %v791_v32 = vpop.trf.xlu0 }
 0x481   : > { %944 = vperm.xlu2 %2734, %v791_v32   ;;  %810 = vperm.xlu1 %2733, %v791_v32  }
 0x488   : > { %v792_v3 = vpop.trf.xlu0 }
 0x489   : > { %815 = vperm.xlu1 %2733, %v792_v3  }
 0x490   : > { %v793_v49 = vpop.trf.xlu0 }
 0x491   : > { %2735 = vset.pattern.permute.xlu1 %v3028_v0  ;;  %952 = vperm.xlu2 %2734, %v793_v49  }
 0x492   : > { %948 = vperm.xlu1 %2735, %v792_v3  }
 0x498   : > { %v794_v59 = vpop.trf.xlu0 }
 0x49a   : > { %2736 = vset.pattern.permute.xlu1 %v3029_v2 }
 0x49b   : > { %820 = vperm.xlu1 %2736, %v793_v49  }
 0x4a0   : > { %v795_v46 = vpop.trf.xlu0 }
 0x4a1   : > { %960 = vperm.xlu2 %2734, %v795_v46  }
 0x4a3   : > { %825 = vperm.xlu1 %2736, %v794_v59  }
 0x4a8   : > { %v796_v54 = vpop.trf.xlu0 }
 0x4ab   : > { %2737 = vset.pattern.permute.xlu1 %v3028_v0 }
 0x4ac   : > { %956 = vperm.xlu1 %2737, %v794_v59  }
 0x4b0   : > { %v797_v62 = vpop.trf.xlu0 }
 0x4b1   : > { %968 = vperm.xlu2 %2734, %v797_v62  }
 0x4b4   : > { %2738 = vset.pattern.permute.xlu1 %v3029_v2 }
 0x4b5   : > { %835 = vperm.xlu1 %2738, %v796_v54  }
 0x4b8   : > { %v798_v37 = vpop.trf.xlu0 }
 0x4bd   : > { %2739 = vset.pattern.permute.xlu1 %v3028_v0 }
 0x4be   : > { %964 = vperm.xlu1 %2739, %v796_v54  }
 0x4c0   : > { %v799_v23 = vpop.trf.xlu0 }
 0x4c1   : > { %976 = vperm.xlu2 %2734, %v799_v23  }
 0x4c2   : > { %830 = vperm.xlu0 %2731, %v795_v46  }
 0x4c6   : > { %2740 = vset.pattern.permute.xlu1 %v3029_v2 }
 0x4c7   : > { %840 = vperm.xlu1 %2740, %v797_v62  }
 0x4c8   : > { %v800_v63 = vpop.trf.xlu0 }
 0x4c9   : > { %2744 = vset.pattern.permute.xlu2 %v3029_v2 }
 0x4ca   : > { %2757 = vset.pattern.permute.xlu0 %v3028_v0 }
 0x4cf   : > { %845 = vperm.xlu1 %2740, %v798_v37  }
 0x4d0   : > { %v801_v48 = vpop.trf.xlu0 }
 0x4d1   : > { %860 = vperm.xlu2 %2744, %v801_v48  }
 0x4d7   : > { %2741 = vset.pattern.permute.xlu1 %v3028_v0 }
 0x4d8   : > { %972 = vperm.xlu1 %2741, %v798_v37   ;;  %v802_v35 = vpop.trf.xlu0 }
 0x4d9   : > { %2745 = vset.pattern.permute.xlu2 %v3028_v0 }
 0x4da   : > { %984 = vperm.xlu2 %2745, %v801_v48  }
 0x4db   : > { %v945_v20 = vpop.permute.xlu2 %944 }
 0x4e0   : > { %2742 = vset.pattern.permute.xlu1 %v3029_v2  ;;  %v803_v4 = vpop.trf.xlu0 }
 0x4e1   : > { %850 = vperm.xlu1 %2742, %v799_v23  }
 0x4e2   : > { %2748 = vset.pattern.permute.xlu2 %v3029_v2 }
 0x4e3   : > { %870 = vperm.xlu2 %2748, %v803_v4  }
 0x4e8   : > { %v804_v39 = vpop.trf.xlu0 }
 0x4e9   : > { %855 = vperm.xlu1 %2742, %v800_v63  }
 0x4eb   : > { %2749 = vset.pattern.permute.xlu2 %v3028_v0  ;;  %v3531_v43 = vpop.permute.xlu2 %952 }
 0x4ec   : > { %992 = vperm.xlu2 %2749, %v803_v4  }
 0x4f0   : > { %v805_v29 = vpop.trf.xlu0 }
 0x4f1   : > { %2743 = vset.pattern.permute.xlu1 %v3028_v0 }
 0x4f2   : > { %980 = vperm.xlu1 %2743, %v800_v63  }
 0x4f3   : > { %v811_v5 = vpop.permute.xlu1 %810 }
 0x4f4   : > { %2752 = vset.pattern.permute.xlu2 %v3029_v2  ;;  %v888_v37 = vsub.f32 %v3514_v14, %v811_v5 }
 0x4f5   : > { %880 = vperm.xlu2 %2752, %v805_v29  }
 0x4f8   : > { %v806_v8 = vpop.trf.xlu0 }
 0x4fa   : > { %2746 = vset.pattern.permute.xlu1 %v3029_v2 }
 0x4fb   : > { %v816_v15 = vpop.permute.xlu1 %815  ;;  %865 = vperm.xlu1 %2746, %v802_v35   ;;  %v961_v55 = vpop.permute.xlu2 %960 }
 0x4fc   : > { %v889_v24 = vsub.f32 %v3514_v14, %v816_v15 }
 0x4fd   : > { %2753 = vset.pattern.permute.xlu2 %v3028_v0 }
 0x4fe   : > { %1000 = vperm.xlu2 %2753, %v805_v29   ;;  %v905_v18 = vmul.f32 %v889_v24, %v3263_v9 }
 0x503   : > { %2747 = vset.pattern.permute.xlu1 %v3028_v0 }
 0x504   : > { %v949_v52 = vpop.permute.xlu1 %948  ;;  %988 = vperm.xlu1 %2747, %v802_v35   ;;  %v904_v35 = vmul.f32 %v888_v37, %v3196_v27 }
 0x505   : > { %v1008_v16 = vsub.f32 %v3522_v13, %v949_v52 }
 0x507   : > { %v1024_v22 = vmul.f32 %v1008_v16, %v3263_v9  ;;  %v1007_v16 = vsub.f32 %v3522_v13, %v945_v20 }
 0x50b   : > { %v3535_v21 = vpop.permute.xlu2 %968 }
 0x50c   : > { %2750 = vset.pattern.permute.xlu1 %v3029_v2 }
 0x50d   : > { %v3505_v41 = vpop.permute.xlu1 %820  ;;  %875 = vperm.xlu1 %2750, %v804_v39  }
 0x515   : > { %v3507_v12 = vpop.permute.xlu1 %825  ;;  %2751 = vset.pattern.permute.xlu1 %v3028_v0 }
 0x516   : > { %996 = vperm.xlu1 %2751, %v804_v39  }
 0x51b   : > { %v977_v58 = vpop.permute.xlu2 %976 }
 0x51e   : > { %v3510_v42 = vpop.permute.xlu1 %956  ;;  %2754 = vset.pattern.permute.xlu1 %v3029_v2 }
 0x51f   : > { %885 = vperm.xlu1 %2754, %v806_v8  }
 0x527   : > { %v836_v1 = vpop.permute.xlu1 %835  ;;  %2755 = vset.pattern.permute.xlu1 %v3028_v0 }
 0x528   : > { %v893_v11 = vsub.f32 %v3514_v14, %v836_v1  ;;  %1004 = vperm.xlu1 %2755, %v806_v8   ;;  %v1011_v1 = vsub.f32 %v3522_v13, %v961_v55  ;;  %v1023_v55 = vmul.f32 %v1007_v16, %v3196_v27 }
 0x52a   : > { %v909_v44 = vmul.f32 %v893_v11, %v3257_v6 }
 0x52b   : > { %v861_v3 = vpop.permute.xlu2 %860 }
 0x52c   : > { %v921_v38 = vmax.f32 %v905_v18, %v909_v44 }
 0x530   : > { %v965_v53 = vpop.permute.xlu1 %964  ;;  %2756 = vset.pattern.permute.xlu1 %v3029_v2 }
 0x531   : > { %v1012_v47 = vsub.f32 %v3522_v13, %v965_v53  ;;  %v1015_v53 = vsub.f32 %v3522_v13, %v977_v58 }
 0x533   : > { %v1028_v45 = vmul.f32 %v1012_v47, %v3257_v6 }
 0x534   : > { %v3537_v9 = vpop.permute.xlu2 %984  ;;  %v831_v59 = vpop.permute.xlu0 %830 }
 0x535   : > { %v1040_v31 = vmax.f32 %v1024_v22, %v1028_v45  ;;  %v892_v46 = vsub.f32 %v3514_v14, %v831_v59 }
 0x537   : > { %v908_v63 = vmul.f32 %v892_v46, %v3200_v30  ;;  %v1031_v46 = vmul.f32 %v1015_v53, %v3291_v40 }
 0x539   : > { %v841_v51 = vpop.permute.xlu1 %840  ;;  %v920_v39 = vmax.f32 %v904_v35, %v908_v63 }
 0x53d   : > { %v871_v54 = vpop.permute.xlu2 %870 }
 0x53e   : > { %v900_v29 = vsub.f32 %v3514_v14, %v871_v54  ;;  %v894_v54 = vsub.f32 %v3514_v14, %v841_v51 }
 0x540   : > { %v916_v11 = vmul.f32 %v900_v29, %v3302_v57  ;;  %v910_v51 = vmul.f32 %v894_v54, %v3247_v61 }
 0x541   : > { %v3529_v26 = vpop.permute.xlu1 %845 }
 0x546   : > { %v993_v8 = vpop.permute.xlu2 %992 }
 0x54a   : > { %v3533_v28 = vpop.permute.xlu1 %972 }
 0x54f   : > { %v881_v63 = vpop.permute.xlu2 %880 }
 0x550   : > { %v902_v29 = vsub.f32 %v3514_v14, %v881_v63 }
 0x553   : > { %v851_v50 = vpop.permute.xlu1 %850 }
 0x554   : > { %v896_v23 = vsub.f32 %v3514_v14, %v851_v50  ;;  %v1027_v50 = vmul.f32 %v1011_v1, %v3200_v30  ;;  %v890_v30 = vsub.f32 %v3514_v14, %v3505_v41  ;;  %v898_v41 = vsub.f32 %v3514_v14, %v861_v3 }
 0x555   : > { %v1013_v3 = vsub.f32 %v3522_v13, %v3535_v21 }
 0x556   : > { %v912_v4 = vmul.f32 %v896_v23, %v3291_v40  ;;  %v1039_v37 = vmax.f32 %v1023_v55, %v1027_v50  ;;  %v895_v23 = vsub.f32 %v3514_v14, %v3529_v26  ;;  %v914_v61 = vmul.f32 %v898_v41, %v3275_v19  ;;  %v3601_v50 = vld [vmem:[#allocation5 + $0x10] sm:$0xff] }
 0x558   : > { %v924_v24 = vmax.f32 %v920_v39, %v912_v4  ;;  %v1043_v27 = vmax.f32 %v1039_v37, %v1031_v46  ;;  %v906_v39 = vmul.f32 %v890_v30, %v3239_v56  ;;  %v911_v26 = vmul.f32 %v895_v23, %v3265_v10  ;;  %v1001_v1 = vpop.permute.xlu2 %1000 }
 0x55a   : > { %v928_v22 = vmax.f32 %v924_v24, %v916_v11  ;;  %v1014_v24 = vsub.f32 %v3522_v13, %v3533_v28  ;;  %v3596_v28 = vld [vmem:[#allocation5 + $0x30] sm:$0xff] }
 0x55b   : > { %v856_v32 = vpop.permute.xlu1 %855 }
 0x55c   : > { %v897_v48 = vsub.f32 %v3514_v14, %v856_v32  ;;  %v1019_v32 = vsub.f32 %v3522_v13, %v993_v8  ;;  %v918_v8 = vmul.f32 %v902_v29, %v3304_v25 }
 0x55e   : > { %v913_v15 = vmul.f32 %v897_v48, %v3272_v17  ;;  %v1035_v58 = vmul.f32 %v1019_v32, %v3302_v57  ;;  %v3604_v32 = vld [vmem:[#allocation5 + $0x18] sm:$0xff] }
 0x560   : > { %v925_v18 = vmax.f32 %v921_v38, %v913_v15  ;;  %v1047_v35 = vmax.f32 %v1043_v27, %v1035_v58  ;;  %v922_v15 = vmax.f32 %v906_v39, %v910_v51 }
 0x564   : > { %v981_v49 = vpop.permute.xlu1 %980 }
 0x565   : > { %v1016_v47 = vsub.f32 %v3522_v13, %v981_v49 }
 0x567   : > { %v1032_v38 = vmul.f32 %v1016_v47, %v3272_v17  ;;  %v891_v17 = vsub.f32 %v3514_v14, %v3507_v12  ;;  %v1029_v47 = vmul.f32 %v3596_v28, %v1013_v3 }
 0x569   : > { %v1044_v48 = vmax.f32 %v1040_v31, %v1032_v38 }
 0x56d   : > { %v866_v6 = vpop.permute.xlu1 %865 }
 0x56e   : > { %v899_v57 = vsub.f32 %v3514_v14, %v866_v6 }
 0x570   : > { %v915_v12 = vmul.f32 %v899_v57, %v3285_v34 }
 0x576   : > { %v3540_v62 = vpop.permute.xlu1 %988 }
 0x577   : > { %v1018_v21 = vsub.f32 %v3522_v13, %v3540_v62 }
 0x579   : > { %v1034_v55 = vmul.f32 %v1018_v21, %v3285_v34 }
 0x57f   : > { %v876_v52 = vpop.permute.xlu1 %875 }
 0x580   : > { %v901_v5 = vsub.f32 %v3514_v14, %v876_v52 }
 0x582   : > { %v917_v44 = vmul.f32 %v901_v5, %v3287_v36  ;;  %v926_v5 = vmax.f32 %v922_v15, %v914_v61 }
 0x584   : > { %v929_v45 = vmax.f32 %v925_v18, %v917_v44  ;;  %v1009_v18 = vsub.f32 %v3522_v13, %v3531_v43  ;;  %v1010_v44 = vsub.f32 %v3522_v13, %v3510_v42  ;;  %v930_v16 = vmax.f32 %v926_v5, %v918_v8 }
 0x586   : > { %v932_v59 = vmax.f32 %v928_v22, %v929_v45  ;;  %v1030_v22 = vmul.f32 %v1014_v24, %v3265_v10  ;;  %v1021_v45 = vsub.f32 %v3522_v13, %v1001_v1  ;;  %v1025_v42 = vmul.f32 %v3601_v50, %v1009_v18 }
 0x588   : > { %v997_v20 = vpop.permute.xlu1 %996  ;;  %v1041_v54 = vmax.f32 %v1025_v42, %v1029_v47  ;;  %v1037_v10 = vmul.f32 %v1021_v45, %v3304_v25 }
 0x589   : > { %v1020_v49 = vsub.f32 %v3522_v13, %v997_v20 }
 0x58b   : > { %v1036_v40 = vmul.f32 %v1020_v49, %v3287_v36  ;;  %v907_v36 = vmul.f32 %v891_v17, %v3245_v60 }
 0x58d   : > { %v1048_v4 = vmax.f32 %v1044_v48, %v1036_v40  ;;  %v923_v6 = vmax.f32 %v907_v36, %v911_v26 }
 0x58f   : > { %v1051_v31 = vmax.f32 %v1047_v35, %v1048_v4  ;;  %v927_v60 = vmax.f32 %v923_v6, %v915_v12 }
 0x591   : > { %v886_v52 = vpop.permute.xlu1 %885 }
 0x592   : > { %v903_v56 = vsub.f32 %v3514_v14, %v886_v52  ;;  %v1017_v14 = vsub.f32 %v3522_v13, %v3537_v9  ;;  %v1026_v9 = vmul.f32 %v3604_v32, %v1010_v44 }
 0x594   : > { %v919_v11 = vmul.f32 %v903_v56, %v3313_v7  ;;  %v1033_v62 = vmul.f32 %v1017_v14, %v3275_v19  ;;  %v1042_v20 = vmax.f32 %v1026_v9, %v1030_v22 }
 0x596   : > { %v931_v53 = vmax.f32 %v927_v60, %v919_v11  ;;  %v1045_v49 = vmax.f32 %v1041_v54, %v1033_v62  ;;  %v1046_v30 = vmax.f32 %v1042_v20, %v1034_v55 }
 0x598   : > { %v933_v43 = vmax.f32 %v930_v16, %v931_v53  ;;  %v1049_v27 = vmax.f32 %v1045_v49, %v1037_v10 }
 0x59a   : > { %v934_v46 = vmax.f32 %v932_v59, %v933_v43  ;;  %v1005_v38 = vpop.permute.xlu1 %1004 }
 0x59b   : > { %v1022_v37 = vsub.f32 %v3522_v13, %v1005_v38 }
 0x59c   : > { %v935_v58 = vrot.slane %v934_v46, 4 }
 0x59d   : > { %v1038_v23 = vmul.f32 %v1022_v37, %v3313_v7 }
 0x59e   : > { %v936_v63 = vmax.f32 %v934_v46, %v935_v58 }
 0x59f   : > { %v1050_v48 = vmax.f32 %v1046_v30, %v1038_v23 }
 0x5a0   : > { %v937_v40 = vrot.slane %v936_v63, 2 }
 0x5a1   : > { %v1052_v19 = vmax.f32 %v1049_v27, %v1050_v48 }
 0x5a2   : > { %v938_v34 = vmax.f32 %v936_v63, %v937_v40 }
 0x5a3   : > { %v1053_v17 = vmax.f32 %v1051_v31, %v1052_v19  ;;  %v3675_v19 = vld [vmem:[#allocation5 + $0x38] sm:$0xff] }
 0x5a4   : > { %v939_v57 = vrot.slane %v938_v34, 1 }
 0x5a5   : > { %v1054_v59 = vrot.slane %v1053_v17, 4 }
 0x5a6   : > { %v940_v25 = vmax.f32 %v938_v34, %v939_v57 }
 0x5a7   : > { %v1055_v51 = vmax.f32 %v1053_v17, %v1054_v59 }
 0x5a8   : > { %v941_v41 = vmax.f32 %v940_v25, 0.0 }
 0x5a9   : > { %v1056_v35 = vrot.slane %v1055_v51, 2 }
 0x5ab   : > { %v1057_v4 = vmax.f32 %v1055_v51, %v1056_v35  ;;  %v3683_v51 = vld [vmem:[#allocation5 + $0x20] sm:$0xff] }
 0x5ad   : > { %v1058_v39 = vrot.slane %v1057_v4, 1 }
 0x5af   : > { %v1059_v13 = vmax.f32 %v1057_v4, %v1058_v39  ;;  %v3686_v4 = vld [vmem:[#allocation5] sm:$0xff] }
 0x5b1   : > { %v1060_v26 = vmax.f32 %v1059_v13, 0.0 }
 0x5b3   : > { %v1061_v29 = vsel %vm481_vm0, %v941_v41, %v1060_v26  ;;  %v3690_v26 = vld [vmem:[#allocation5 + $0x40] sm:$0xff] }
 0x5b4   : > { %v1062_v7 = vsel %vm483_vm1, %v1061_v29, 0.0 }
 0x5b5   : > { %v3615_v36 = vsub.f32 %v3483_v33, %v1062_v7 }
 0x5b7   : > { %1064 = vxpose.xlu2.b32.start.end [1/1] (short) %v3615_v36, 128  ;;  %v3643_v43 = vperm.slane %v3615_v36, 0  ;;  %v3657_v54 = vperm.slane %v3615_v36, 1 }
 0x619   : > { %2763 = vset.pattern.permute.xlu2 %v3029_v2 }
 0x650   : > { %v1080_v31 = vpop.trf.xlu2 }
 0x651   : > { %1233 = vperm.xlu0 %2757, %v1080_v31   ;;  %1099 = vperm.xlu1 %2756, %v1080_v31  }
 0x658   : > { %v1081_v15 = vpop.trf.xlu2 }
 0x659   : > { %1104 = vperm.xlu1 %2756, %v1081_v15  }
 0x660   : > { %v1082_v12 = vpop.trf.xlu2 }
 0x661   : > { %2758 = vset.pattern.permute.xlu1 %v3028_v0 }
 0x662   : > { %1237 = vperm.xlu1 %2758, %v1081_v15  }
 0x668   : > { %v1083_v52 = vpop.trf.xlu2 }
 0x669   : > { %1245 = vperm.xlu0 %2757, %v1083_v52  }
 0x66a   : > { %2759 = vset.pattern.permute.xlu1 %v3029_v2 }
 0x66b   : > { %1109 = vperm.xlu1 %2759, %v1082_v12  }
 0x670   : > { %v1084_v33 = vpop.trf.xlu2 }
 0x673   : > { %2760 = vset.pattern.permute.xlu1 %v3028_v0 }
 0x674   : > { %1241 = vperm.xlu1 %2760, %v1082_v12  }
 0x678   : > { %v1085_v61 = vpop.trf.xlu2 }
 0x679   : > { %1253 = vperm.xlu0 %2757, %v1085_v61  }
 0x67c   : > { %2761 = vset.pattern.permute.xlu1 %v3029_v2 }
 0x67d   : > { %1114 = vperm.xlu1 %2761, %v1083_v52  }
 0x680   : > { %v1086_v6 = vpop.trf.xlu2 }
 0x685   : > { %1119 = vperm.xlu1 %2761, %v1084_v33  }
 0x688   : > { %v1087_v8 = vpop.trf.xlu2 }
 0x689   : > { %1261 = vperm.xlu0 %2757, %v1087_v8  }
 0x68d   : > { %2762 = vset.pattern.permute.xlu1 %v3028_v0 }
 0x68e   : > { %1249 = vperm.xlu1 %2762, %v1084_v33  }
 0x690   : > { %v1088_v56 = vpop.trf.xlu2 }
 0x696   : > { %2764 = vset.pattern.permute.xlu1 %v3029_v2 }
 0x697   : > { %1129 = vperm.xlu1 %2764, %v1086_v6  }
 0x698   : > { %1124 = vperm.xlu2 %2763, %v1085_v61   ;;  %v1089_v3 = vpop.trf.xlu2 }
 0x699   : > { %1269 = vperm.xlu0 %2757, %v1089_v3  }
 0x69f   : > { %2765 = vset.pattern.permute.xlu1 %v3028_v0 }
 0x6a0   : > { %1257 = vperm.xlu1 %2765, %v1086_v6   ;;  %v1090_v24 = vpop.trf.xlu2  ;;  %2780 = vset.pattern.permute.xlu2 %v3028_v0 }
 0x6a8   : > { %2766 = vset.pattern.permute.xlu1 %v3029_v2  ;;  %v1091_v5 = vpop.trf.xlu2 }
 0x6a9   : > { %1134 = vperm.xlu1 %2766, %v1087_v8   ;;  %1277 = vperm.xlu0 %2757, %v1091_v5  }
 0x6b0   : > { %v1092_v1 = vpop.trf.xlu2 }
 0x6b1   : > { %1139 = vperm.xlu1 %2766, %v1088_v56  }
 0x6b8   : > { %v1093_v60 = vpop.trf.xlu2 }
 0x6b9   : > { %2767 = vset.pattern.permute.xlu1 %v3028_v0  ;;  %1285 = vperm.xlu0 %2757, %v1093_v60  }
 0x6ba   : > { %1265 = vperm.xlu1 %2767, %v1088_v56  }
 0x6c0   : > { %v1094_v11 = vpop.trf.xlu2 }
 0x6c1   : > { %2773 = vset.pattern.permute.xlu0 %v3029_v2 }
 0x6c2   : > { %2768 = vset.pattern.permute.xlu1 %v3029_v2  ;;  %1169 = vperm.xlu0 %2773, %v1094_v11  }
 0x6c3   : > { %v1100_v18 = vpop.permute.xlu1 %1099  ;;  %1144 = vperm.xlu1 %2768, %v1089_v3   ;;  %v1234_v13 = vpop.permute.xlu0 %1233 }
 0x6c4   : > { %v1177_v34 = vsub.f32 %v3643_v43, %v1100_v18  ;;  %v1296_v15 = vsub.f32 %v3657_v54, %v1234_v13 }
 0x6c6   : > { %v1193_v25 = vmul.f32 %v3686_v4, %v1177_v34  ;;  %v1312_v33 = vmul.f32 %v3686_v4, %v1296_v15 }
 0x6c8   : > { %v1095_v44 = vpop.trf.xlu2 }
 0x6ca   : > { %2776 = vset.pattern.permute.xlu0 %v3028_v0 }
 0x6cb   : > { %v3632_v14 = vpop.permute.xlu1 %1104  ;;  %1149 = vperm.xlu1 %2768, %v1090_v24   ;;  %1293 = vperm.xlu0 %2776, %v1095_v44  }
 0x6d3   : > { %2769 = vset.pattern.permute.xlu1 %v3028_v0  ;;  %2777 = vset.pattern.permute.xlu0 %v3029_v2 }
 0x6d4   : > { %v3636_v21 = vpop.permute.xlu1 %1237  ;;  %1273 = vperm.xlu1 %2769, %v1090_v24  }
 0x6db   : > { %v1246_v56 = vpop.permute.xlu0 %1245 }
 0x6dc   : > { %2770 = vset.pattern.permute.xlu1 %v3029_v2 }
 0x6dd   : > { %v1110_v16 = vpop.permute.xlu1 %1109  ;;  %1154 = vperm.xlu1 %2770, %v1091_v5  }
 0x6de   : > { %v1179_v42 = vsub.f32 %v3643_v43, %v1110_v16 }
 0x6e0   : > { %v3649_v55 = vmul.f32 %v3601_v50, %v1179_v42 }
 0x6e5   : > { %1159 = vperm.xlu1 %2770, %v1092_v1  }
 0x6e6   : > { %v1242_v53 = vpop.permute.xlu1 %1241 }
 0x6e7   : > { %v1298_v20 = vsub.f32 %v3657_v54, %v1242_v53 }
 0x6e9   : > { %v3662_v58 = vmul.f32 %v3601_v50, %v1298_v20 }
 0x6eb   : > { %v1254_v5 = vpop.permute.xlu0 %1253 }
 0x6ed   : > { %2771 = vset.pattern.permute.xlu1 %v3028_v0 }
 0x6ee   : > { %1281 = vperm.xlu1 %2771, %v1092_v1  }
 0x6ef   : > { %v1115_v47 = vpop.permute.xlu1 %1114 }
 0x6f0   : > { %v1180_v23 = vsub.f32 %v3643_v43, %v1115_v47 }
 0x6f2   : > { %v3672_v48 = vmul.f32 %v3604_v32, %v1180_v23  ;;  %v1125_v23 = vpop.permute.xlu2 %1124 }
 0x6f6   : > { %2772 = vset.pattern.permute.xlu1 %v3029_v2 }
 0x6f7   : > { %v1120_v22 = vpop.permute.xlu1 %1119  ;;  %1164 = vperm.xlu1 %2772, %v1093_v60  }
 0x6f8   : > { %v1181_v40 = vsub.f32 %v3643_v43, %v1120_v22  ;;  %v1301_v22 = vsub.f32 %v3657_v54, %v1254_v5 }
 0x6fa   : > { %v1197_v57 = vmul.f32 %v3683_v51, %v1181_v40 }
 0x6fb   : > { %v1262_v60 = vpop.permute.xlu0 %1261 }
 0x6fc   : > { %v1209_v41 = vmax.f32 %v1193_v25, %v1197_v57  ;;  %v1182_v25 = vsub.f32 %v3643_v43, %v1125_v23 }
 0x6ff   : > { %2774 = vset.pattern.permute.xlu1 %v3028_v0 }
 0x700   : > { %v1250_v45 = vpop.permute.xlu1 %1249  ;;  %1289 = vperm.xlu1 %2774, %v1094_v11  }
 0x701   : > { %v1300_v7 = vsub.f32 %v3657_v54, %v1250_v45  ;;  %v1297_v45 = vsub.f32 %v3657_v54, %v3636_v21  ;;  %v3719_v21 = vld [vmem:[#allocation5 + $0x68] sm:$0xff] }
 0x703   : > { %v1316_v12 = vmul.f32 %v3683_v51, %v1300_v7  ;;  %v1178_v7 = vsub.f32 %v3643_v43, %v3632_v14  ;;  %v1303_v14 = vsub.f32 %v3657_v54, %v1262_v60 }
 0x705   : > { %v1328_v6 = vmax.f32 %v1312_v33, %v1316_v12 }
 0x708   : > { %2775 = vset.pattern.permute.xlu1 %v3029_v2 }
 0x709   : > { %v1130_v9 = vpop.permute.xlu1 %1129  ;;  %1174 = vperm.xlu1 %2775, %v1095_v44  }
 0x70a   : > { %v1183_v62 = vsub.f32 %v3643_v43, %v1130_v9  ;;  %v3709_v9 = vld [vmem:[#allocation5 + $0x28] sm:$0xff] }
 0x70b   : > { %v1270_v18 = vpop.permute.xlu0 %1269  ;;  %v1198_v33 = vmul.f32 %v3709_v9, %v1182_v25  ;;  %v3748_v25 = vld [vmem:[#allocation5 + $0x50] sm:$0xff] }
 0x70c   : > { %v3652_v46 = vmul.f32 %v3596_v28, %v1183_v62  ;;  %v1305_v42 = vsub.f32 %v3657_v54, %v1270_v18  ;;  %v1317_v62 = vmul.f32 %v3709_v9, %v1301_v22 }
 0x70e   : > { %v1211_v38 = vmax.f32 %v3649_v55, %v3652_v46 }
 0x712   : > { %v1258_v10 = vpop.permute.xlu1 %1257 }
 0x713   : > { %v1302_v37 = vsub.f32 %v3657_v54, %v1258_v10  ;;  %v3713_v10 = vld [vmem:[#allocation5 + $0x8] sm:$0xff] }
 0x715   : > { %v3665_v49 = vmul.f32 %v3596_v28, %v1302_v37  ;;  %v1313_v37 = vmul.f32 %v3713_v10, %v1297_v45 }
 0x717   : > { %v1330_v30 = vmax.f32 %v3662_v58, %v3665_v49  ;;  %v1329_v34 = vmax.f32 %v1313_v37, %v1317_v62  ;;  %v1299_v62 = vsub.f32 %v3657_v54, %v1246_v56 }
 0x719   : > { %v1315_v60 = vmul.f32 %v3604_v32, %v1299_v62 }
 0x71b   : > { %v1135_v63 = vpop.permute.xlu1 %1134  ;;  %v1278_v16 = vpop.permute.xlu0 %1277 }
 0x71c   : > { %v1184_v27 = vsub.f32 %v3643_v43, %v1135_v63  ;;  %v3716_v63 = vld [vmem:[#allocation5 + $0x48] sm:$0xff] }
 0x71e   : > { %v3678_v17 = vmul.f32 %v3675_v19, %v1184_v27  ;;  %v1321_v27 = vmul.f32 %v3716_v63, %v1305_v42 }
 0x720   : > { %v1212_v59 = vmax.f32 %v3672_v48, %v3678_v17  ;;  %v1333_v13 = vmax.f32 %v1329_v34, %v1321_v27  ;;  %v1319_v27 = vmul.f32 %v3675_v19, %v1303_v14 }
 0x723   : > { %v1140_v35 = vpop.permute.xlu1 %1139 }
 0x724   : > { %v1185_v39 = vsub.f32 %v3643_v43, %v1140_v35 }
 0x726   : > { %v1201_v29 = vmul.f32 %v3690_v26, %v1185_v39 }
 0x728   : > { %v3694_v31 = vmax.f32 %v1209_v41, %v1201_v29  ;;  %v3724_v41 = vld [vmem:[#allocation5 + $0x60] sm:$0xff] }
 0x72b   : > { %v1286_v47 = vpop.permute.xlu0 %1285 }
 0x72c   : > { %v1266_v52 = vpop.permute.xlu1 %1265  ;;  %v1309_v20 = vsub.f32 %v3657_v54, %v1286_v47 }
 0x72d   : > { %v1304_v61 = vsub.f32 %v3657_v54, %v1266_v52 }
 0x72e   : > { %v1325_v57 = vmul.f32 %v3719_v21, %v1309_v20 }
 0x72f   : > { %v1320_v8 = vmul.f32 %v3690_v26, %v1304_v61 }
 0x730   : > { %v1337_v12 = vmax.f32 %v1333_v13, %v1325_v57  ;;  %v3745_v57 = vld [vmem:[#allocation5 + $0x58] sm:$0xff] }
 0x731   : > { %v1332_v3 = vmax.f32 %v1328_v6, %v1320_v8  ;;  %v1194_v8 = vmul.f32 %v3713_v10, %v1178_v7  ;;  %v3751_v13 = vld [vmem:[#allocation5 + $0x78] sm:$0xff] }
 0x733   : > { %v1210_v47 = vmax.f32 %v1194_v8, %v1198_v33 }
 0x734   : > { %v1170_v39 = vpop.permute.xlu0 %1169 }
 0x735   : > { %v1145_v24 = vpop.permute.xlu1 %1144 }
 0x736   : > { %v1186_v15 = vsub.f32 %v3643_v43, %v1145_v24 }
 0x738   : > { %v1202_v5 = vmul.f32 %v3716_v63, %v1186_v15 }
 0x73a   : > { %v1214_v24 = vmax.f32 %v1210_v47, %v1202_v5  ;;  %v1191_v47 = vsub.f32 %v3643_v43, %v1170_v39 }
 0x73d   : > { %v3701_v1 = vpop.permute.xlu1 %1149  ;;  %v1294_v42 = vpop.permute.xlu0 %1293 }
 0x73e   : > { %v1187_v7 = vsub.f32 %v3643_v43, %v3701_v1 }
 0x746   : > { %v1274_v11 = vpop.permute.xlu1 %1273 }
 0x747   : > { %v1306_v20 = vsub.f32 %v3657_v54, %v1274_v11  ;;  %v1331_v11 = vmax.f32 %v1315_v60, %v1319_v27 }
 0x749   : > { %v1322_v56 = vmul.f32 %v3748_v25, %v1306_v20 }
 0x74f   : > { %v3703_v44 = vpop.permute.xlu1 %1154 }
 0x757   : > { %v1160_v53 = vpop.permute.xlu1 %1159 }
 0x758   : > { %v1189_v61 = vsub.f32 %v3643_v43, %v1160_v53  ;;  %v1307_v53 = vsub.f32 %v3657_v54, %v1278_v16 }
 0x75a   : > { %v1205_v22 = vmul.f32 %v3724_v41, %v1189_v61  ;;  %v1188_v61 = vsub.f32 %v3643_v43, %v3703_v44 }
 0x75c   : > { %v1217_v37 = vmax.f32 %v3694_v31, %v1205_v22  ;;  %v1204_v1 = vmul.f32 %v3745_v57, %v1188_v61 }
 0x75e   : > { %v1216_v14 = vmax.f32 %v1212_v59, %v1204_v1 }
 0x760   : > { %v1282_v40 = vpop.permute.xlu1 %1281 }
 0x761   : > { %v1308_v35 = vsub.f32 %v3657_v54, %v1282_v40  ;;  %v1311_v40 = vsub.f32 %v3657_v54, %v1294_v42 }
 0x763   : > { %v1324_v29 = vmul.f32 %v3724_v41, %v1308_v35  ;;  %v1323_v35 = vmul.f32 %v3745_v57, %v1307_v53  ;;  %v1327_v31 = vmul.f32 %v3751_v13, %v1311_v40 }
 0x765   : > { %v1336_v52 = vmax.f32 %v1332_v3, %v1324_v29  ;;  %v1335_v15 = vmax.f32 %v1331_v11, %v1323_v35 }
 0x767   : > { %v1340_v6 = vmax.f32 %v1336_v52, %v1337_v12  ;;  %v1334_v12 = vmax.f32 %v1330_v30, %v1322_v56  ;;  %v3760_v52 = vld [vmem:[#allocation5 + $0x70] sm:$0xff]  ;;  %v1339_v8 = vmax.f32 %v1335_v15, %v1327_v31 }
 0x768   : > { %v1207_v44 = vmul.f32 %v3760_v52, %v1191_v47 }
 0x769   : > { %v1165_v18 = vpop.permute.xlu1 %1164 }
 0x76a   : > { %v1190_v45 = vsub.f32 %v3643_v43, %v1165_v18  ;;  %v1203_v18 = vmul.f32 %v3748_v25, %v1187_v7 }
 0x76c   : > { %v1206_v3 = vmul.f32 %v3719_v21, %v1190_v45  ;;  %v1215_v58 = vmax.f32 %v1211_v38, %v1203_v18 }
 0x76e   : > { %v1218_v23 = vmax.f32 %v1214_v24, %v1206_v3  ;;  %v1219_v42 = vmax.f32 %v1215_v58, %v1207_v44 }
 0x770   : > { %v1221_v34 = vmax.f32 %v1217_v37, %v1218_v23 }
 0x772   : > { %v1290_v16 = vpop.permute.xlu1 %1289 }
 0x773   : > { %v1310_v29 = vsub.f32 %v3657_v54, %v1290_v16 }
 0x775   : > { %v1326_v33 = vmul.f32 %v3760_v52, %v1310_v29 }
 0x777   : > { %v1338_v5 = vmax.f32 %v1334_v12, %v1326_v33 }
 0x779   : > { %v1341_v54 = vmax.f32 %v1338_v5, %v1339_v8 }
 0x77b   : > { %v1342_v22 = vmax.f32 %v1340_v6, %v1341_v54  ;;  %v1175_v45 = vpop.permute.xlu1 %1174 }
 0x77c   : > { %v1192_v49 = vsub.f32 %v3643_v43, %v1175_v45 }
 0x77d   : > { %v1343_v30 = vrot.slane %v1342_v22, 4 }
 0x77e   : > { %v1208_v24 = vmul.f32 %v3751_v13, %v1192_v49 }
 0x77f   : > { %v1344_v39 = vmax.f32 %v1342_v22, %v1343_v30 }
 0x780   : > { %v1220_v3 = vmax.f32 %v1216_v14, %v1208_v24 }
 0x781   : > { %v1345_v6 = vrot.slane %v1344_v39, 2 }
 0x782   : > { %v1222_v62 = vmax.f32 %v1219_v42, %v1220_v3 }
 0x783   : > { %v1346_v20 = vmax.f32 %v1344_v39, %v1345_v6 }
 0x784   : > { %v1223_v53 = vmax.f32 %v1221_v34, %v1222_v62 }
 0x785   : > { %v1347_v38 = vrot.slane %v1346_v20, 1 }
 0x786   : > { %v1224_v55 = vrot.slane %v1223_v53, 4 }
 0x787   : > { %v1348_v27 = vmax.f32 %v1346_v20, %v1347_v38 }
 0x788   : > { %v1225_v46 = vmax.f32 %v1223_v53, %v1224_v55 }
 0x789   : > { %v1349_v48 = vmax.f32 %v1348_v27, 0.0 }
 0x78a   : > { %v1226_v43 = vrot.slane %v1225_v46, 2 }
 0x78c   : > { %v1227_v37 = vmax.f32 %v1225_v46, %v1226_v43 }
 0x78e   : > { %v1228_v23 = vrot.slane %v1227_v37, 1 }
 0x790   : > { %v1229_v40 = vmax.f32 %v1227_v37, %v1228_v23 }
 0x792   : > { %v1230_v60 = vmax.f32 %v1229_v40, 0.0 }
 0x794   : > { %v1350_v17 = vsel %vm481_vm0, %v1230_v60, %v1349_v48 }
 0x795   : > { %v1351_v59 = vsel %vm483_vm1, %v1350_v17, 0.0 }
 0x796   : > { %v3780_v35 = vsub.f32 %v3615_v36, %v1351_v59 }
 0x798   : > { %1353 = vxpose.xlu1.b32.start.end [1/1] (short) %v3780_v35, 128  ;;  %v3832_v17 = vperm.slane %v3780_v35, 1  ;;  %v1385_v59 = vperm.slane %v3780_v35, 0 }
 0x83c   : > { %v1369_v34 = vpop.trf.xlu1 }
 0x83d   : > { %1388 = vperm.xlu0 %2777, %v1369_v34  }
 0x844   : > { %v1370_v56 = vpop.trf.xlu1 }
 0x845   : > { %2778 = vset.pattern.permute.xlu0 %v3028_v0  ;;  %1526 = vperm.xlu2 %2780, %v1370_v56  }
 0x846   : > { %1522 = vperm.xlu0 %2778, %v1369_v34  }
 0x84c   : > { %v1371_v16 = vpop.trf.xlu1 }
 0x84d   : > { %1530 = vperm.xlu2 %2780, %v1371_v16  }
 0x84e   : > { %2779 = vset.pattern.permute.xlu0 %v3029_v2 }
 0x84f   : > { %1393 = vperm.xlu0 %2779, %v1370_v56  }
 0x854   : > { %v1372_v11 = vpop.trf.xlu1 }
 0x857   : > { %1398 = vperm.xlu0 %2779, %v1371_v16  }
 0x85c   : > { %v1373_v31 = vpop.trf.xlu1 }
 0x85d   : > { %1538 = vperm.xlu2 %2780, %v1373_v31  }
 0x85f   : > { %1403 = vperm.xlu0 %2779, %v1372_v11  }
 0x864   : > { %v1374_v36 = vpop.trf.xlu1 }
 0x867   : > { %2781 = vset.pattern.permute.xlu0 %v3028_v0 }
 0x868   : > { %1534 = vperm.xlu0 %2781, %v1372_v11  }
 0x86a   : > { %1413 = vperm.xlu1 %2775, %v1374_v36  }
 0x86c   : > { %v1375_v29 = vpop.trf.xlu1 }
 0x86d   : > { %1546 = vperm.xlu2 %2780, %v1375_v29  }
 0x870   : > { %2782 = vset.pattern.permute.xlu0 %v3029_v2 }
 0x871   : > { %1408 = vperm.xlu0 %2782, %v1373_v31  }
 0x872   : > { %2802 = vset.pattern.permute.xlu1 %v3028_v0 }
 0x874   : > { %v1376_v7 = vpop.trf.xlu1 }
 0x879   : > { %2783 = vset.pattern.permute.xlu0 %v3028_v0 }
 0x87a   : > { %1542 = vperm.xlu0 %2783, %v1374_v36  }
 0x87c   : > { %v1377_v15 = vpop.trf.xlu1 }
 0x87d   : > { %1554 = vperm.xlu2 %2780, %v1377_v15  }
 0x882   : > { %2784 = vset.pattern.permute.xlu0 %v3029_v2 }
 0x883   : > { %1418 = vperm.xlu0 %2784, %v1375_v29  }
 0x884   : > { %v1378_v12 = vpop.trf.xlu1 }
 0x88b   : > { %1423 = vperm.xlu0 %2784, %v1376_v7  }
 0x88c   : > { %v1379_v33 = vpop.trf.xlu1 }
 0x88d   : > { %1562 = vperm.xlu2 %2780, %v1379_v33  }
 0x893   : > { %2785 = vset.pattern.permute.xlu0 %v3028_v0 }
 0x894   : > { %1550 = vperm.xlu0 %2785, %v1376_v7   ;;  %v1380_v61 = vpop.trf.xlu1 }
 0x895   : > { %2789 = vset.pattern.permute.xlu2 %v3029_v2 }
 0x896   : > { %1443 = vperm.xlu2 %2789, %v1380_v61  }
 0x89c   : > { %2786 = vset.pattern.permute.xlu0 %v3029_v2  ;;  %v1381_v8 = vpop.trf.xlu1 }
 0x89d   : > { %1428 = vperm.xlu0 %2786, %v1377_v15  }
 0x89e   : > { %2792 = vset.pattern.permute.xlu2 %v3028_v0 }
 0x89f   : > { %1570 = vperm.xlu2 %2792, %v1381_v8   ;;  %v1527_v44 = vpop.permute.xlu2 %1526 }
 0x8a0   : > { %v1586_v34 = vsub.f32 %v3832_v17, %v1527_v44 }
 0x8a2   : > { %v3837_v36 = vmul.f32 %v3713_v10, %v1586_v34 }
 0x8a4   : > { %v1382_v5 = vpop.trf.xlu1 }
 0x8a5   : > { %1433 = vperm.xlu0 %2786, %v1378_v12  }
 0x8a7   : > { %2793 = vset.pattern.permute.xlu2 %v3029_v2  ;;  %v3815_v24 = vpop.permute.xlu2 %1530 }
 0x8a8   : > { %1453 = vperm.xlu2 %2793, %v1382_v5  }
 0x8ac   : > { %v1383_v18 = vpop.trf.xlu1 }
 0x8ad   : > { %2787 = vset.pattern.permute.xlu0 %v3028_v0 }
 0x8ae   : > { %1558 = vperm.xlu0 %2787, %v1378_v12   ;;  %v1587_v12 = vsub.f32 %v3832_v17, %v3815_v24 }
 0x8af   : > { %v1389_v54 = vpop.permute.xlu0 %1388 }
 0x8b0   : > { %2796 = vset.pattern.permute.xlu2 %v3028_v0  ;;  %v1466_v16 = vsub.f32 %v1385_v59, %v1389_v54 }
 0x8b1   : > { %1578 = vperm.xlu2 %2796, %v1383_v18  }
 0x8b4   : > { %v1384_v47 = vpop.trf.xlu1 }
 0x8b6   : > { %2788 = vset.pattern.permute.xlu0 %v3029_v2 }
 0x8b7   : > { %1438 = vperm.xlu0 %2788, %v1379_v33   ;;  %v1539_v42 = vpop.permute.xlu2 %1538 }
 0x8b8   : > { %v3798_v1 = vpop.permute.xlu0 %1522  ;;  %v1589_v29 = vsub.f32 %v3832_v17, %v1539_v42 }
 0x8b9   : > { %2797 = vset.pattern.permute.xlu2 %v3029_v2 }
 0x8ba   : > { %1463 = vperm.xlu2 %2797, %v1384_v47  }
 0x8bf   : > { %2790 = vset.pattern.permute.xlu0 %v3028_v0 }
 0x8c0   : > { %1566 = vperm.xlu0 %2790, %v1380_v61  }
 0x8c1   : > { %v3802_v22 = vpop.permute.xlu0 %1393 }
 0x8c2   : > { %v1467_v33 = vsub.f32 %v1385_v59, %v3802_v22  ;;  %v3853_v22 = vmul.f32 %v3683_v51, %v1589_v29 }
 0x8c7   : > { %v1547_v6 = vpop.permute.xlu2 %1546 }
 0x8c8   : > { %2791 = vset.pattern.permute.xlu0 %v3029_v2  ;;  %v1591_v44 = vsub.f32 %v3832_v17, %v1547_v6 }
 0x8c9   : > { %v3805_v45 = vpop.permute.xlu0 %1398  ;;  %1448 = vperm.xlu0 %2791, %v1381_v8  }
 0x8d1   : > { %v1404_v58 = vpop.permute.xlu0 %1403  ;;  %2794 = vset.pattern.permute.xlu0 %v3028_v0 }
 0x8d2   : > { %1574 = vperm.xlu0 %2794, %v1382_v5   ;;  %v1469_v61 = vsub.f32 %v1385_v59, %v1404_v58  ;;  %v1482_v5 = vmul.f32 %v3686_v4, %v1466_v16 }
 0x8d7   : > { %v3819_v53 = vpop.permute.xlu2 %1554 }
 0x8da   : > { %v3808_v49 = vpop.permute.xlu0 %1534  ;;  %2795 = vset.pattern.permute.xlu0 %v3029_v2 }
 0x8db   : > { %1458 = vperm.xlu0 %2795, %v1383_v18   ;;  %v1585_v18 = vsub.f32 %v3832_v17, %v3798_v1  ;;  %v1483_v1 = vmul.f32 %v3713_v10, %v1467_v33 }
 0x8dc   : > { %v1414_v56 = vpop.permute.xlu1 %1413 }
 0x8dd   : > { %v1471_v11 = vsub.f32 %v1385_v59, %v1414_v56 }
 0x8df   : > { %v1487_v42 = vmul.f32 %v3709_v9, %v1471_v11 }
 0x8e3   : > { %v1409_v30 = vpop.permute.xlu0 %1408  ;;  %2798 = vset.pattern.permute.xlu0 %v3028_v0 }
 0x8e4   : > { %1582 = vperm.xlu0 %2798, %v1384_v47   ;;  %v1470_v7 = vsub.f32 %v1385_v59, %v1409_v30  ;;  %v1468_v30 = vsub.f32 %v1385_v59, %v3805_v45  ;;  %v1601_v45 = vmul.f32 %v3686_v4, %v1585_v18 }
 0x8e6   : > { %v1486_v58 = vmul.f32 %v3683_v51, %v1470_v7  ;;  %v1484_v29 = vmul.f32 %v3601_v50, %v1468_v30 }
 0x8e7   : > { %v3821_v55 = vpop.permute.xlu2 %1562 }
 0x8e8   : > { %v1498_v7 = vmax.f32 %v1482_v5, %v1486_v58 }
 0x8ec   : > { %v3812_v14 = vpop.permute.xlu0 %1542  ;;  %2799 = vset.pattern.permute.xlu0 %v3029_v2 }
 0x8ed   : > { %v1590_v18 = vsub.f32 %v3832_v17, %v3812_v14 }
 0x8f0   : > { %v1444_v38 = vpop.permute.xlu2 %1443 }
 0x8f5   : > { %v1419_v39 = vpop.permute.xlu0 %1418 }
 0x8f6   : > { %v1472_v8 = vsub.f32 %v1385_v59, %v1419_v39 }
 0x8f8   : > { %v1488_v6 = vmul.f32 %v3596_v28, %v1472_v8  ;;  %v1593_v8 = vsub.f32 %v3832_v17, %v3819_v53 }
 0x8f9   : > { %v3825_v37 = vpop.permute.xlu2 %1570 }
 0x8fd   : > { %v1424_v3 = vpop.permute.xlu0 %1423 }
 0x8fe   : > { %v1473_v31 = vsub.f32 %v1385_v59, %v1424_v3 }
 0x900   : > { %v1489_v3 = vmul.f32 %v3675_v19, %v1473_v31  ;;  %v1607_v31 = vmul.f32 %v3596_v28, %v1591_v44 }
 0x902   : > { %v1454_v40 = vpop.permute.xlu2 %1453 }
 0x903   : > { %v1479_v33 = vsub.f32 %v1385_v59, %v1454_v40  ;;  %v1588_v40 = vsub.f32 %v3832_v17, %v3808_v49 }
 0x905   : > { %v1495_v14 = vmul.f32 %v3719_v21, %v1479_v33 }
 0x906   : > { %v3817_v62 = vpop.permute.xlu0 %1550 }
 0x90b   : > { %v3829_v48 = vpop.permute.xlu2 %1578 }
 0x90f   : > { %v1429_v20 = vpop.permute.xlu0 %1428 }
 0x910   : > { %v1474_v54 = vsub.f32 %v1385_v59, %v1429_v20  ;;  %v1485_v20 = vmul.f32 %v3604_v32, %v1469_v61 }
 0x912   : > { %v1490_v56 = vmul.f32 %v3690_v26, %v1474_v54 }
 0x914   : > { %v1464_v24 = vpop.permute.xlu2 %1463  ;;  %v1502_v44 = vmax.f32 %v1498_v7, %v1490_v56  ;;  %v1603_v56 = vmul.f32 %v3601_v50, %v1587_v12  ;;  %v1617_v12 = vmax.f32 %v1601_v45, %v3853_v22 }
 0x915   : > { %v1481_v16 = vsub.f32 %v1385_v59, %v1464_v24 }
 0x916   : > { %v1619_v33 = vmax.f32 %v1603_v56, %v1607_v31 }
 0x917   : > { %v1434_v46 = vpop.permute.xlu0 %1433  ;;  %v1497_v30 = vmul.f32 %v3751_v13, %v1481_v16 }
 0x918   : > { %v1475_v47 = vsub.f32 %v1385_v59, %v1434_v46  ;;  %v1477_v46 = vsub.f32 %v1385_v59, %v1444_v38 }
 0x91a   : > { %v1491_v11 = vmul.f32 %v3716_v63, %v1475_v47  ;;  %v1493_v54 = vmul.f32 %v3745_v57, %v1477_v46  ;;  %v1500_v47 = vmax.f32 %v1484_v29, %v1488_v6  ;;  %v1604_v29 = vmul.f32 %v3604_v32, %v1588_v40 }
 0x920   : > { %v3823_v43 = vpop.permute.xlu0 %1558 }
 0x921   : > { %v1594_v53 = vsub.f32 %v3832_v17, %v3823_v43  ;;  %v1597_v43 = vsub.f32 %v3832_v17, %v3825_v37 }
 0x929   : > { %v1439_v23 = vpop.permute.xlu0 %1438 }
 0x92a   : > { %v1476_v39 = vsub.f32 %v1385_v59, %v1439_v23  ;;  %v1499_v23 = vmax.f32 %v1483_v1, %v1487_v42  ;;  %v1595_v1 = vsub.f32 %v3832_v17, %v3821_v55  ;;  %v1599_v55 = vsub.f32 %v3832_v17, %v3829_v48 }
 0x92b   : > { %v1613_v48 = vmul.f32 %v3724_v41, %v1597_v43 }
 0x92c   : > { %v1492_v61 = vmul.f32 %v3748_v25, %v1476_v39  ;;  %v1503_v42 = vmax.f32 %v1499_v23, %v1491_v11  ;;  %v1610_v11 = vmul.f32 %v3716_v63, %v1594_v53  ;;  %v1611_v37 = vmul.f32 %v3748_v25, %v1595_v1 }
 0x92d   : > { %v1615_v32 = vmul.f32 %v3760_v52, %v1599_v55 }
 0x92e   : > { %v1504_v58 = vmax.f32 %v1500_v47, %v1492_v61  ;;  %v1507_v46 = vmax.f32 %v1503_v42, %v1495_v14 }
 0x932   : > { %v3827_v27 = vpop.permute.xlu0 %1566 }
 0x933   : > { %v1596_v49 = vsub.f32 %v3832_v17, %v3827_v27  ;;  %v1609_v27 = vmul.f32 %v3690_v26, %v1593_v8 }
 0x935   : > { %v1612_v7 = vmul.f32 %v3745_v57, %v1596_v49  ;;  %v1621_v47 = vmax.f32 %v1617_v12, %v1609_v27 }
 0x937   : > { %v1625_v22 = vmax.f32 %v1621_v47, %v1613_v48 }
 0x93b   : > { %v1449_v60 = vpop.permute.xlu0 %1448 }
 0x93c   : > { %v1478_v34 = vsub.f32 %v1385_v59, %v1449_v60  ;;  %v1501_v60 = vmax.f32 %v1485_v20, %v1489_v3  ;;  %v1592_v3 = vsub.f32 %v3832_v17, %v3817_v62 }
 0x93e   : > { %v1494_v38 = vmul.f32 %v3724_v41, %v1478_v34  ;;  %v1505_v24 = vmax.f32 %v1501_v60, %v1493_v54  ;;  %v1608_v16 = vmul.f32 %v3675_v19, %v1592_v3 }
 0x940   : > { %v1506_v39 = vmax.f32 %v1502_v44, %v1494_v38  ;;  %v1509_v20 = vmax.f32 %v1505_v24, %v1497_v30  ;;  %v1620_v8 = vmax.f32 %v1604_v29, %v1608_v16 }
 0x942   : > { %v1624_v44 = vmax.f32 %v1620_v8, %v1612_v7 }
 0x944   : > { %v3840_v15 = vpop.permute.xlu0 %1574 }
 0x945   : > { %v1598_v62 = vsub.f32 %v3832_v17, %v3840_v15  ;;  %v1510_v15 = vmax.f32 %v1506_v39, %v1507_v46 }
 0x947   : > { %v1614_v50 = vmul.f32 %v3719_v21, %v1598_v62 }
 0x94d   : > { %v1459_v28 = vpop.permute.xlu0 %1458 }
 0x94e   : > { %v1480_v5 = vsub.f32 %v1385_v59, %v1459_v28  ;;  %v1606_v59 = vmul.f32 %v3709_v9, %v1590_v18 }
 0x950   : > { %v1496_v34 = vmul.f32 %v3760_v52, %v1480_v5  ;;  %v1618_v60 = vmax.f32 %v3837_v36, %v1606_v59  ;;  %v1623_v36 = vmax.f32 %v1619_v33, %v1611_v37 }
 0x952   : > { %v1508_v6 = vmax.f32 %v1504_v58, %v1496_v34  ;;  %v1622_v18 = vmax.f32 %v1618_v60, %v1610_v11  ;;  %v1627_v45 = vmax.f32 %v1623_v36, %v1615_v32 }
 0x954   : > { %v1511_v23 = vmax.f32 %v1508_v6, %v1509_v20  ;;  %v1626_v30 = vmax.f32 %v1622_v18, %v1614_v50 }
 0x956   : > { %v1512_v61 = vmax.f32 %v1510_v15, %v1511_v23  ;;  %v1583_v38 = vpop.permute.xlu0 %1582  ;;  %v1629_v40 = vmax.f32 %v1625_v22, %v1626_v30 }
 0x957   : > { %v1600_v54 = vsub.f32 %v3832_v17, %v1583_v38 }
 0x958   : > { %v1513_v28 = vrot.slane %v1512_v61, 4 }
 0x959   : > { %v1616_v42 = vmul.f32 %v3751_v13, %v1600_v54 }
 0x95a   : > { %v1514_v5 = vmax.f32 %v1512_v61, %v1513_v28 }
 0x95b   : > { %v1628_v31 = vmax.f32 %v1624_v44, %v1616_v42 }
 0x95c   : > { %v1515_v3 = vrot.slane %v1514_v5, 2 }
 0x95d   : > { %v1630_v24 = vmax.f32 %v1627_v45, %v1628_v31 }
 0x95e   : > { %v1516_v14 = vmax.f32 %v1514_v5, %v1515_v3 }
 0x95f   : > { %v1631_v53 = vmax.f32 %v1629_v40, %v1630_v24 }
 0x960   : > { %v1517_v34 = vrot.slane %v1516_v14, 1 }
 0x961   : > { %v1632_v58 = vrot.slane %v1631_v53, 4 }
 0x962   : > { %v1518_v59 = vmax.f32 %v1516_v14, %v1517_v34  ;;  %v3961_v34 = vld [vmem:[#allocation5 + $0x30] sm:$0xff] }
 0x963   : > { %v1633_v39 = vmax.f32 %v1631_v53, %v1632_v58  ;;  %v3956_v58 = vld [vmem:[#allocation5 + $0x10] sm:$0xff] }
 0x964   : > { %v1519_v43 = vmax.f32 %v1518_v59, 0.0 }
 0x965   : > { %v1634_v17 = vrot.slane %v1633_v39, 2 }
 0x967   : > { %v1635_v1 = vmax.f32 %v1633_v39, %v1634_v17 }
 0x969   : > { %v1636_v49 = vrot.slane %v1635_v1, 1 }
 0x96b   : > { %v1637_v62 = vmax.f32 %v1635_v1, %v1636_v49 }
 0x96d   : > { %v1638_v20 = vmax.f32 %v1637_v62, 0.0 }
 0x96f   : > { %v1639_v46 = vsel %vm481_vm0, %v1519_v43, %v1638_v20 }
 0x970   : > { %v1640_v6 = vsel %vm483_vm1, %v1639_v46, 0.0 }
 0x971   : > { %v3908_v56 = vsub.f32 %v3780_v35, %v1640_v6  ;;  %v3974_v6 = vld [vmem:[#allocation5 + $0x18] sm:$0xff] }
 0x973   : > { %1642 = vxpose.xlu2.b32.start.end [1/1] (short) %v3908_v56, 128  ;;  %v3937_v44 = vperm.slane %v3908_v56, 1  ;;  %v3950_v40 = vperm.slane %v3908_v56, 0 }
 0xa0c   : > { %v1658_v16 = vpop.trf.xlu2 }
 0xa0d   : > { %1677 = vperm.xlu0 %2799, %v1658_v16  }
 0xa14   : > { %v1659_v55 = vpop.trf.xlu2 }
 0xa15   : > { %2800 = vset.pattern.permute.xlu0 %v3028_v0  ;;  %1815 = vperm.xlu1 %2802, %v1659_v55  }
 0xa16   : > { %1811 = vperm.xlu0 %2800, %v1658_v16  }
 0xa1c   : > { %v1660_v11 = vpop.trf.xlu2 }
 0xa1d   : > { %1819 = vperm.xlu1 %2802, %v1660_v11  }
 0xa1e   : > { %2801 = vset.pattern.permute.xlu0 %v3029_v2 }
 0xa1f   : > { %1682 = vperm.xlu0 %2801, %v1659_v55  }
 0xa24   : > { %v1661_v27 = vpop.trf.xlu2 }
 0xa27   : > { %1687 = vperm.xlu0 %2801, %v1660_v11  }
 0xa2c   : > { %v1662_v29 = vpop.trf.xlu2 }
 0xa2d   : > { %1827 = vperm.xlu1 %2802, %v1662_v29  }
 0xa2f   : > { %2803 = vset.pattern.permute.xlu0 %v3028_v0 }
 0xa30   : > { %1823 = vperm.xlu0 %2803, %v1661_v27  }
 0xa34   : > { %v1663_v35 = vpop.trf.xlu2 }
 0xa38   : > { %2804 = vset.pattern.permute.xlu0 %v3029_v2 }
 0xa39   : > { %1697 = vperm.xlu0 %2804, %v1662_v29  }
 0xa3c   : > { %v1664_v15 = vpop.trf.xlu2 }
 0xa3d   : > { %1835 = vperm.xlu1 %2802, %v1664_v15  }
 0xa41   : > { %1702 = vperm.xlu0 %2804, %v1663_v35  }
 0xa44   : > { %v1665_v23 = vpop.trf.xlu2 }
 0xa49   : > { %2805 = vset.pattern.permute.xlu0 %v3028_v0 }
 0xa4a   : > { %1831 = vperm.xlu0 %2805, %v1663_v35  }
 0xa4c   : > { %v1666_v37 = vpop.trf.xlu2 }
 0xa4d   : > { %1843 = vperm.xlu1 %2802, %v1666_v37  }
 0xa52   : > { %2806 = vset.pattern.permute.xlu0 %v3029_v2 }
 0xa53   : > { %1707 = vperm.xlu0 %2806, %v1664_v15  }
 0xa54   : > { %1692 = vperm.xlu2 %2797, %v1661_v27   ;;  %v1667_v60 = vpop.trf.xlu2 }
 0xa5b   : > { %1712 = vperm.xlu0 %2806, %v1665_v23  }
 0xa5c   : > { %v1668_v7 = vpop.trf.xlu2  ;;  %2821 = vset.pattern.permute.xlu2 %v3028_v0 }
 0xa5d   : > { %1851 = vperm.xlu1 %2802, %v1668_v7  }
 0xa63   : > { %2807 = vset.pattern.permute.xlu0 %v3028_v0 }
 0xa64   : > { %1839 = vperm.xlu0 %2807, %v1665_v23   ;;  %v1669_v50 = vpop.trf.xlu2 }
 0xa65   : > { %2811 = vset.pattern.permute.xlu1 %v3029_v2 }
 0xa66   : > { %1732 = vperm.xlu1 %2811, %v1669_v50  }
 0xa6c   : > { %2808 = vset.pattern.permute.xlu0 %v3029_v2  ;;  %v1670_v12 = vpop.trf.xlu2 }
 0xa6d   : > { %1717 = vperm.xlu0 %2808, %v1666_v37  }
 0xa6e   : > { %2814 = vset.pattern.permute.xlu1 %v3028_v0 }
 0xa6f   : > { %1859 = vperm.xlu1 %2814, %v1670_v12  }
 0xa74   : > { %v1671_v33 = vpop.trf.xlu2 }
 0xa75   : > { %1722 = vperm.xlu0 %2808, %v1667_v60  }
 0xa77   : > { %2815 = vset.pattern.permute.xlu1 %v3029_v2 }
 0xa78   : > { %1742 = vperm.xlu1 %2815, %v1671_v33  }
 0xa7c   : > { %v1672_v48 = vpop.trf.xlu2 }
 0xa7d   : > { %2809 = vset.pattern.permute.xlu0 %v3028_v0 }
 0xa7e   : > { %1847 = vperm.xlu0 %2809, %v1667_v60  }
 0xa7f   : > { %v3924_v61 = vpop.permute.xlu0 %1677 }
 0xa80   : > { %2818 = vset.pattern.permute.xlu1 %v3028_v0 }
 0xa81   : > { %1867 = vperm.xlu1 %2818, %v1672_v48  }
 0xa84   : > { %v1673_v38 = vpop.trf.xlu2 }
 0xa86   : > { %2810 = vset.pattern.permute.xlu0 %v3029_v2 }
 0xa87   : > { %1727 = vperm.xlu0 %2810, %v1668_v7   ;;  %v1816_v36 = vpop.permute.xlu1 %1815 }
 0xa88   : > { %v3928_v8 = vpop.permute.xlu0 %1811  ;;  %v1875_v30 = vsub.f32 %v3937_v44, %v1816_v36 }
 0xa89   : > { %2819 = vset.pattern.permute.xlu1 %v3029_v2 }
 0xa8a   : > { %1752 = vperm.xlu1 %2819, %v1673_v38   ;;  %v3942_v22 = vmul.f32 %v3713_v10, %v1875_v30 }
 0xa8f   : > { %2812 = vset.pattern.permute.xlu0 %v3028_v0  ;;  %v3953_v24 = vpop.permute.xlu1 %1819 }
 0xa90   : > { %1855 = vperm.xlu0 %2812, %v1669_v50  }
 0xa91   : > { %v1683_v32 = vpop.permute.xlu0 %1682 }
 0xa98   : > { %2813 = vset.pattern.permute.xlu0 %v3029_v2 }
 0xa99   : > { %v1688_v18 = vpop.permute.xlu0 %1687  ;;  %1737 = vperm.xlu0 %2813, %v1670_v12  }
 0xa9a   : > { %v1757_v3 = vsub.f32 %v3950_v40, %v1688_v18 }
 0xa9c   : > { %v3959_v39 = vmul.f32 %v3956_v58, %v1757_v3 }
 0xa9f   : > { %v1828_v59 = vpop.permute.xlu1 %1827 }
 0xaa1   : > { %2816 = vset.pattern.permute.xlu0 %v3028_v0 }
 0xaa2   : > { %v1824_v54 = vpop.permute.xlu0 %1823  ;;  %1863 = vperm.xlu0 %2816, %v1671_v33  }
 0xaa3   : > { %v1877_v62 = vsub.f32 %v3937_v44, %v1824_v54  ;;  %v1755_v54 = vsub.f32 %v3950_v40, %v3924_v61 }
 0xaa5   : > { %v3977_v16 = vmul.f32 %v3974_v6, %v1877_v62 }
 0xaaa   : > { %2817 = vset.pattern.permute.xlu0 %v3029_v2 }
 0xaab   : > { %v1698_v47 = vpop.permute.xlu0 %1697  ;;  %1747 = vperm.xlu0 %2817, %v1672_v48   ;;  %v1756_v48 = vsub.f32 %v3950_v40, %v1683_v32  ;;  %v1771_v32 = vmul.f32 %v3686_v4, %v1755_v54 }
 0xaaf   : > { %v3971_v43 = vpop.permute.xlu1 %1835 }
 0xab3   : > { %v1703_v28 = vpop.permute.xlu0 %1702  ;;  %2820 = vset.pattern.permute.xlu0 %v3028_v0 }
 0xab4   : > { %1871 = vperm.xlu0 %2820, %v1673_v38   ;;  %v1760_v50 = vsub.f32 %v3950_v40, %v1703_v28  ;;  %v1759_v38 = vsub.f32 %v3950_v40, %v1698_v47 }
 0xab6   : > { %v1776_v36 = vmul.f32 %v3709_v9, %v1760_v50  ;;  %v1775_v28 = vmul.f32 %v3683_v51, %v1759_v38  ;;  %v1874_v50 = vsub.f32 %v3937_v44, %v3928_v8  ;;  %v1693_v8 = vpop.permute.xlu2 %1692 }
 0xab8   : > { %v1787_v62 = vmax.f32 %v1771_v32, %v1775_v28 }
 0xabc   : > { %v1832_v42 = vpop.permute.xlu0 %1831 }
 0xabd   : > { %v1879_v5 = vsub.f32 %v3937_v44, %v1832_v42  ;;  %v1772_v42 = vmul.f32 %v3713_v10, %v1756_v48  ;;  %v1878_v10 = vsub.f32 %v3937_v44, %v1828_v59  ;;  %v1890_v59 = vmul.f32 %v3686_v4, %v1874_v50 }
 0xabf   : > { %v3945_v45 = vmul.f32 %v3709_v9, %v1879_v5  ;;  %v1844_v27 = vpop.permute.xlu1 %1843  ;;  %v1788_v47 = vmax.f32 %v1772_v42, %v1776_v36  ;;  %v1894_v54 = vmul.f32 %v3683_v51, %v1878_v10 }
 0xac1   : > { %v1907_v31 = vmax.f32 %v3942_v22, %v3945_v45 }
 0xac5   : > { %v1708_v53 = vpop.permute.xlu0 %1707 }
 0xac6   : > { %v1761_v14 = vsub.f32 %v3950_v40, %v1708_v53 }
 0xac8   : > { %v3964_v17 = vmul.f32 %v3961_v34, %v1761_v14 }
 0xaca   : > { %v1789_v1 = vmax.f32 %v3959_v39, %v3964_v17 }
 0xacd   : > { %v3968_v49 = vpop.permute.xlu0 %1712 }
 0xace   : > { %v1762_v32 = vsub.f32 %v3950_v40, %v3968_v49 }
 0xacf   : > { %v3984_v35 = vpop.permute.xlu1 %1851 }
 0xad0   : > { %v1884_v50 = vsub.f32 %v3937_v44, %v3984_v35 }
 0xad2   : > { %v1900_v17 = vmul.f32 %v3748_v25, %v1884_v50 }
 0xad6   : > { %v1840_v20 = vpop.permute.xlu0 %1839 }
 0xad7   : > { %v1881_v46 = vsub.f32 %v3937_v44, %v1840_v20 }
 0xad8   : > { %v1733_v23 = vpop.permute.xlu1 %1732 }
 0xad9   : > { %v3980_v55 = vmul.f32 %v3675_v19, %v1881_v46 }
 0xadb   : > { %v1909_v11 = vmax.f32 %v3977_v16, %v3980_v55 }
 0xadf   : > { %v1718_v29 = vpop.permute.xlu0 %1717 }
 0xae0   : > { %v1763_v30 = vsub.f32 %v3950_v40, %v1718_v29 }
 0xae1   : > { %v1860_v60 = vpop.permute.xlu1 %1859 }
 0xae2   : > { %v1779_v53 = vmul.f32 %v3690_v26, %v1763_v30  ;;  %v1886_v36 = vsub.f32 %v3937_v44, %v1860_v60 }
 0xae4   : > { %v1791_v29 = vmax.f32 %v1787_v62, %v1779_v53  ;;  %v1778_v62 = vmul.f32 %v3675_v19, %v1762_v32 }
 0xae7   : > { %v1723_v15 = vpop.permute.xlu0 %1722 }
 0xae8   : > { %v1764_v18 = vsub.f32 %v3950_v40, %v1723_v15 }
 0xaea   : > { %v1743_v33 = vpop.permute.xlu1 %1742  ;;  %v1780_v5 = vmul.f32 %v3716_v63, %v1764_v18 }
 0xaeb   : > { %v1768_v3 = vsub.f32 %v3950_v40, %v1743_v33  ;;  %v1882_v33 = vsub.f32 %v3937_v44, %v1844_v27  ;;  %v1902_v27 = vmul.f32 %v3724_v41, %v1886_v36 }
 0xaec   : > { %v1792_v61 = vmax.f32 %v1788_v47, %v1780_v5  ;;  %v1766_v47 = vsub.f32 %v3950_v40, %v1733_v23 }
 0xaed   : > { %v1784_v9 = vmul.f32 %v3719_v21, %v1768_v3  ;;  %v1898_v42 = vmul.f32 %v3690_v26, %v1882_v33  ;;  %v1906_v3 = vmax.f32 %v1890_v59, %v1894_v54 }
 0xaee   : > { %v1782_v22 = vmul.f32 %v3745_v57, %v1766_v47 }
 0xaef   : > { %v1796_v38 = vmax.f32 %v1792_v61, %v1784_v9  ;;  %v1910_v51 = vmax.f32 %v1906_v3, %v1898_v42 }
 0xaf0   : > { %v1848_v37 = vpop.permute.xlu0 %1847 }
 0xaf1   : > { %v1883_v48 = vsub.f32 %v3937_v44, %v1848_v37 }
 0xaf3   : > { %v1868_v46 = vpop.permute.xlu1 %1867  ;;  %v1899_v28 = vmul.f32 %v3716_v63, %v1883_v48  ;;  %v1758_v63 = vsub.f32 %v3950_v40, %v1693_v8 }
 0xaf5   : > { %v1911_v60 = vmax.f32 %v1907_v31, %v1899_v28  ;;  %v1774_v9 = vmul.f32 %v3974_v6, %v1758_v63 }
 0xaf7   : > { %v1790_v31 = vmax.f32 %v1774_v9, %v1778_v62 }
 0xaf9   : > { %v1728_v7 = vpop.permute.xlu0 %1727  ;;  %v1794_v10 = vmax.f32 %v1790_v31, %v1782_v22 }
 0xafa   : > { %v1765_v53 = vsub.f32 %v3950_v40, %v1728_v7  ;;  %v1880_v7 = vsub.f32 %v3937_v44, %v3971_v43 }
 0xafc   : > { %v1753_v4 = vpop.permute.xlu1 %1752  ;;  %v1781_v45 = vmul.f32 %v3748_v25, %v1765_v53  ;;  %v1896_v43 = vmul.f32 %v3961_v34, %v1880_v7 }
 0xafd   : > { %v1770_v49 = vsub.f32 %v3950_v40, %v1753_v4 }
 0xafe   : > { %v1793_v19 = vmax.f32 %v1789_v1, %v1781_v45 }
 0xb02   : > { %v3987_v12 = vpop.permute.xlu0 %1855 }
 0xb03   : > { %v1885_v33 = vsub.f32 %v3937_v44, %v3987_v12 }
 0xb05   : > { %v1901_v1 = vmul.f32 %v3745_v57, %v1885_v33 }
 0xb0b   : > { %v1738_v14 = vpop.permute.xlu0 %1737 }
 0xb0c   : > { %v1767_v20 = vsub.f32 %v3950_v40, %v1738_v14 }
 0xb0e   : > { %v1783_v15 = vmul.f32 %v3724_v41, %v1767_v20  ;;  %v1914_v41 = vmax.f32 %v1910_v51, %v1902_v27  ;;  %v1786_v20 = vmul.f32 %v3751_v13, %v1770_v49 }
 0xb10   : > { %v1795_v18 = vmax.f32 %v1791_v29, %v1783_v15  ;;  %v1876_v15 = vsub.f32 %v3937_v44, %v3953_v24 }
 0xb12   : > { %v1799_v30 = vmax.f32 %v1795_v18, %v1796_v38  ;;  %v1888_v38 = vsub.f32 %v3937_v44, %v1868_v46  ;;  %v1892_v39 = vmul.f32 %v3956_v58, %v1876_v15  ;;  %v1913_v46 = vmax.f32 %v1909_v11, %v1901_v1 }
 0xb14   : > { %v1864_v5 = vpop.permute.xlu0 %1863  ;;  %v1908_v36 = vmax.f32 %v1892_v39, %v1896_v43  ;;  %v1904_v35 = vmul.f32 %v3760_v52, %v1888_v38  ;;  %v4089_v43 = vld [vmem:[#allocation5 + $0x20] sm:$0xff] }
 0xb15   : > { %v1887_v37 = vsub.f32 %v3937_v44, %v1864_v5 }
 0xb16   : > { %v1912_v42 = vmax.f32 %v1908_v36, %v1900_v17 }
 0xb17   : > { %v1903_v26 = vmul.f32 %v3719_v21, %v1887_v37 }
 0xb18   : > { %v1916_v3 = vmax.f32 %v1912_v42, %v1904_v35 }
 0xb19   : > { %v1915_v14 = vmax.f32 %v1911_v60, %v1903_v26 }
 0xb1b   : > { %v1918_v61 = vmax.f32 %v1914_v41, %v1915_v14 }
 0xb1d   : > { %v1748_v21 = vpop.permute.xlu0 %1747 }
 0xb1e   : > { %v1769_v23 = vsub.f32 %v3950_v40, %v1748_v21  ;;  %v1798_v40 = vmax.f32 %v1794_v10, %v1786_v20 }
 0xb20   : > { %v1785_v29 = vmul.f32 %v3760_v52, %v1769_v23 }
 0xb22   : > { %v1797_v48 = vmax.f32 %v1793_v19, %v1785_v29 }
 0xb24   : > { %v1800_v18 = vmax.f32 %v1797_v48, %v1798_v40  ;;  %v4084_v40 = vld [vmem:[#allocation5] sm:$0xff] }
 0xb26   : > { %v1801_v24 = vmax.f32 %v1799_v30, %v1800_v18  ;;  %v1872_v54 = vpop.permute.xlu0 %1871 }
 0xb27   : > { %v1889_v12 = vsub.f32 %v3937_v44, %v1872_v54 }
 0xb28   : > { %v1802_v59 = vrot.slane %v1801_v24, 4 }
 0xb29   : > { %v1905_v28 = vmul.f32 %v3751_v13, %v1889_v12 }
 0xb2a   : > { %v1803_v5 = vmax.f32 %v1801_v24, %v1802_v59 }
 0xb2b   : > { %v1917_v25 = vmax.f32 %v1913_v46, %v1905_v28 }
 0xb2c   : > { %v1804_v8 = vrot.slane %v1803_v5, 2 }
 0xb2d   : > { %v1919_v57 = vmax.f32 %v1916_v3, %v1917_v25 }
 0xb2e   : > { %v1805_v27 = vmax.f32 %v1803_v5, %v1804_v8 }
 0xb2f   : > { %v1920_v30 = vmax.f32 %v1918_v61, %v1919_v57 }
 0xb30   : > { %v1806_v52 = vrot.slane %v1805_v27, 1 }
 0xb31   : > { %v1921_v37 = vrot.slane %v1920_v30, 4 }
 0xb32   : > { %v1807_v60 = vmax.f32 %v1805_v27, %v1806_v52 }
 0xb33   : > { %v1922_v32 = vmax.f32 %v1920_v30, %v1921_v37 }
 0xb34   : > { %v1808_v63 = vmax.f32 %v1807_v60, 0.0 }
 0xb35   : > { %v1923_v51 = vrot.slane %v1922_v32, 2 }
 0xb37   : > { %v1924_v44 = vmax.f32 %v1922_v32, %v1923_v51 }
 0xb39   : > { %v1925_v4 = vrot.slane %v1924_v44, 1 }
 0xb3b   : > { %v1926_v26 = vmax.f32 %v1924_v44, %v1925_v4 }
 0xb3d   : > { %v1927_v16 = vmax.f32 %v1926_v26, 0.0 }
 0xb3f   : > { %v1928_v55 = vsel %vm481_vm0, %v1808_v63, %v1927_v16 }
 0xb40   : > { %v1929_v13 = vsel %vm483_vm1, %v1928_v55, 0.0 }
 0xb41   : > { %v4059_v11 = vsub.f32 %v3908_v56, %v1929_v13 }
 0xb43   : > { %1931 = vxpose.xlu1.b32.start.end [1/1] (short) %v4059_v11, 128  ;;  %v4080_v29 = vperm.slane %v4059_v11, 1  ;;  %v4103_v54 = vperm.slane %v4059_v11, 0 }
 0xbe7   : > { %v1947_v47 = vpop.trf.xlu1 }
 0xbe8   : > { %2100 = vperm.xlu2 %2821, %v1947_v47  }
 0xbef   : > { %v1948_v53 = vpop.trf.xlu1 }
 0xbf0   : > { %2104 = vperm.xlu0 %2820, %v1948_v53  }
 0xbf7   : > { %v1949_v41 = vpop.trf.xlu1 }
 0xbf8   : > { %2108 = vperm.xlu2 %2821, %v1949_v41  }
 0xbff   : > { %v1950_v14 = vpop.trf.xlu1 }
 0xc00   : > { %2112 = vperm.xlu2 %2821, %v1950_v14  }
 0xc07   : > { %v1951_v62 = vpop.trf.xlu1 }
 0xc08   : > { %2116 = vperm.xlu0 %2820, %v1951_v62  }
 0xc0f   : > { %v1952_v49 = vpop.trf.xlu1 }
 0xc10   : > { %2822 = vset.pattern.permute.xlu0 %v3029_v2  ;;  %2120 = vperm.xlu2 %2821, %v1952_v49  }
 0xc11   : > { %1966 = vperm.xlu0 %2822, %v1947_v47   ;;  %v4144_v47 = vld [vmem:[#allocation5 + $0x38] sm:$0xff] }
 0xc15   : > { %1991 = vperm.xlu1 %2819, %v1952_v49  }
 0xc17   : > { %v1953_v56 = vpop.trf.xlu1 }
 0xc19   : > { %1971 = vperm.xlu0 %2822, %v1948_v53  }
 0xc1d   : > { %2840 = vset.pattern.permute.xlu1 %v3028_v0 }
 0xc1f   : > { %v1954_v61 = vpop.trf.xlu1 }
 0xc20   : > { %2128 = vperm.xlu2 %2821, %v1954_v61  }
 0xc21   : > { %1976 = vperm.xlu0 %2822, %v1949_v41  }
 0xc27   : > { %v1955_v9 = vpop.trf.xlu1 }
 0xc29   : > { %1981 = vperm.xlu0 %2822, %v1950_v14  }
 0xc2f   : > { %v1956_v22 = vpop.trf.xlu1 }
 0xc30   : > { %2136 = vperm.xlu2 %2821, %v1956_v22  }
 0xc31   : > { %1986 = vperm.xlu0 %2822, %v1951_v62  }
 0xc37   : > { %v1957_v45 = vpop.trf.xlu1 }
 0xc38   : > { %2827 = vset.pattern.permute.xlu2 %v3029_v2 }
 0xc39   : > { %1996 = vperm.xlu0 %2822, %v1953_v56   ;;  %2016 = vperm.xlu2 %2827, %v1957_v45  }
 0xc3f   : > { %v1958_v21 = vpop.trf.xlu1 }
 0xc41   : > { %2823 = vset.pattern.permute.xlu0 %v3028_v0  ;;  %2830 = vset.pattern.permute.xlu2 %v3028_v0 }
 0xc42   : > { %2124 = vperm.xlu0 %2823, %v1953_v56   ;;  %2144 = vperm.xlu2 %2830, %v1958_v21   ;;  %v2101_v19 = vpop.permute.xlu2 %2100 }
 0xc43   : > { %v2163_v15 = vsub.f32 %v4080_v29, %v2101_v19 }
 0xc45   : > { %v4087_v48 = vmul.f32 %v4084_v40, %v2163_v15  ;;  %v4160_v15 = vld [vmem:[#allocation5 + $0x28] sm:$0xff] }
 0xc47   : > { %v1959_v31 = vpop.trf.xlu1 }
 0xc4a   : > { %2824 = vset.pattern.permute.xlu0 %v3029_v2  ;;  %2831 = vset.pattern.permute.xlu2 %v3029_v2 }
 0xc4b   : > { %2001 = vperm.xlu0 %2824, %v1954_v61   ;;  %2026 = vperm.xlu2 %2831, %v1959_v31  }
 0xc4f   : > { %v1960_v20 = vpop.trf.xlu1 }
 0xc52   : > { %v2109_v36 = vpop.permute.xlu2 %2108 }
 0xc53   : > { %2006 = vperm.xlu0 %2824, %v1955_v9   ;;  %2834 = vset.pattern.permute.xlu2 %v3028_v0  ;;  %v2165_v32 = vsub.f32 %v4080_v29, %v2109_v36 }
 0xc54   : > { %2152 = vperm.xlu2 %2834, %v1960_v20  }
 0xc55   : > { %v4130_v44 = vmul.f32 %v3956_v58, %v2165_v32 }
 0xc57   : > { %v1961_v23 = vpop.trf.xlu1 }
 0xc5a   : > { %v4115_v5 = vpop.permute.xlu2 %2112 }
 0xc5b   : > { %2825 = vset.pattern.permute.xlu0 %v3028_v0 }
 0xc5c   : > { %2132 = vperm.xlu0 %2825, %v1955_v9   ;;  %2835 = vset.pattern.permute.xlu2 %v3029_v2 }
 0xc5d   : > { %2036 = vperm.xlu2 %2835, %v1961_v23  }
 0xc5f   : > { %v1962_v7 = vpop.trf.xlu1 }
 0xc62   : > { %v4076_v10 = vpop.permute.xlu0 %2104 }
 0xc64   : > { %2826 = vset.pattern.permute.xlu0 %v3029_v2 }
 0xc65   : > { %2011 = vperm.xlu0 %2826, %v1956_v22   ;;  %2838 = vset.pattern.permute.xlu2 %v3028_v0 }
 0xc66   : > { %2160 = vperm.xlu2 %2838, %v1962_v7  }
 0xc6a   : > { %v2121_v37 = vpop.permute.xlu2 %2120 }
 0xc6d   : > { %2828 = vset.pattern.permute.xlu0 %v3028_v0 }
 0xc6e   : > { %2140 = vperm.xlu0 %2828, %v1957_v45   ;;  %2839 = vset.pattern.permute.xlu2 %v3029_v2 }
 0xc76   : > { %2829 = vset.pattern.permute.xlu0 %v3029_v2 }
 0xc77   : > { %2021 = vperm.xlu0 %2829, %v1958_v21  }
 0xc7a   : > { %v2117_v50 = vpop.permute.xlu0 %2116  ;;  %v4137_v26 = vpop.permute.xlu2 %2128 }
 0xc7b   : > { %v2167_v33 = vsub.f32 %v4080_v29, %v2117_v50 }
 0xc7d   : > { %v4092_v38 = vmul.f32 %v4089_v43, %v2167_v33 }
 0xc7f   : > { %v2195_v18 = vmax.f32 %v4087_v48, %v4092_v38  ;;  %2832 = vset.pattern.permute.xlu0 %v3028_v0 }
 0xc80   : > { %2148 = vperm.xlu0 %2832, %v1959_v31  }
 0xc83   : > { %v1967_v39 = vpop.permute.xlu0 %1966 }
 0xc84   : > { %v2044_v35 = vsub.f32 %v4103_v54, %v1967_v39  ;;  %v4164_v39 = vld [vmem:[#allocation5 + $0x8] sm:$0xff] }
 0xc86   : > { %v4108_v42 = vmul.f32 %v4084_v40, %v2044_v35  ;;  %v4170_v35 = vld [vmem:[#allocation5 + $0x40] sm:$0xff] }
 0xc88   : > { %2833 = vset.pattern.permute.xlu0 %v3029_v2 }
 0xc89   : > { %2031 = vperm.xlu0 %2833, %v1960_v20   ;;  %v2168_v20 = vsub.f32 %v4080_v29, %v2121_v37 }
 0xc8a   : > { %v2137_v41 = vpop.permute.xlu2 %2136 }
 0xc8b   : > { %v4098_v17 = vpop.permute.xlu0 %1971  ;;  %v2184_v50 = vmul.f32 %v4160_v15, %v2168_v20 }
 0xc8c   : > { %v2045_v32 = vsub.f32 %v4103_v54, %v4098_v17 }
 0xc8e   : > { %v2061_v17 = vmul.f32 %v4164_v39, %v2045_v32 }
 0xc91   : > { %2836 = vset.pattern.permute.xlu0 %v3028_v0 }
 0xc92   : > { %2156 = vperm.xlu0 %2836, %v1961_v23   ;;  %v2164_v23 = vsub.f32 %v4080_v29, %v4076_v10 }
 0xc93   : > { %v1977_v1 = vpop.permute.xlu0 %1976  ;;  %v4151_v49 = vpop.permute.xlu2 %2016 }
 0xc94   : > { %v2046_v3 = vsub.f32 %v4103_v54, %v1977_v1  ;;  %v2180_v1 = vmul.f32 %v4164_v39, %v2164_v23 }
 0xc96   : > { %v4120_v57 = vmul.f32 %v3956_v58, %v2046_v3  ;;  %v1992_v3 = vpop.permute.xlu1 %1991 }
 0xc9a   : > { %2837 = vset.pattern.permute.xlu0 %v3029_v2 }
 0xc9b   : > { %v1982_v24 = vpop.permute.xlu0 %1981  ;;  %2041 = vperm.xlu0 %2837, %v1962_v7   ;;  %v2172_v7 = vsub.f32 %v4080_v29, %v2137_v41 }
 0xc9c   : > { %v2047_v63 = vsub.f32 %v4103_v54, %v1982_v24  ;;  %v2145_v61 = vpop.permute.xlu2 %2144  ;;  %v4167_v24 = vld [vmem:[#allocation5 + $0x48] sm:$0xff] }
 0xc9d   : > { %v2188_v36 = vmul.f32 %v4167_v24, %v2172_v7 }
 0xc9e   : > { %v4142_v13 = vmul.f32 %v3974_v6, %v2047_v63 }
 0xca3   : > { %v1987_v12 = vpop.permute.xlu0 %1986 }
 0xca4   : > { %v2048_v59 = vsub.f32 %v4103_v54, %v1987_v12 }
 0xca5   : > { %v2027_v22 = vpop.permute.xlu2 %2026 }
 0xca6   : > { %v4111_v46 = vmul.f32 %v4089_v43, %v2048_v59  ;;  %v2196_v59 = vmax.f32 %v2180_v1, %v2184_v50  ;;  %v2056_v48 = vsub.f32 %v4103_v54, %v2027_v22  ;;  %v2170_v1 = vsub.f32 %v4080_v29, %v4137_v26 }
 0xca7   : > { %v2166_v22 = vsub.f32 %v4080_v29, %v4115_v5 }
 0xca8   : > { %v2076_v28 = vmax.f32 %v4108_v42, %v4111_v46  ;;  %v2200_v63 = vmax.f32 %v2196_v59, %v2188_v36 }
 0xca9   : > { %v2182_v32 = vmul.f32 %v3974_v6, %v2166_v22 }
 0xcab   : > { %v1997_v25 = vpop.permute.xlu0 %1996 }
 0xcac   : > { %v2050_v8 = vsub.f32 %v4103_v54, %v1997_v25  ;;  %v4173_v25 = vld [vmem:[#allocation5 + $0x68] sm:$0xff] }
 0xcae   : > { %v4123_v30 = vmul.f32 %v3961_v34, %v2050_v8  ;;  %v2153_v31 = vpop.permute.xlu2 %2152 }
 0xcaf   : > { %v2176_v33 = vsub.f32 %v4080_v29, %v2153_v31 }
 0xcb0   : > { %v2078_v27 = vmax.f32 %v4120_v57, %v4123_v30 }
 0xcb1   : > { %v2192_v8 = vmul.f32 %v4173_v25, %v2176_v33 }
 0xcb3   : > { %v2204_v20 = vmax.f32 %v2200_v63, %v2192_v8 }
 0xcb4   : > { %v2125_v52 = vpop.permute.xlu0 %2124 }
 0xcb5   : > { %v2169_v51 = vsub.f32 %v4080_v29, %v2125_v52 }
 0xcb7   : > { %v4133_v60 = vmul.f32 %v3961_v34, %v2169_v51  ;;  %v2037_v52 = vpop.permute.xlu2 %2036 }
 0xcb9   : > { %v2197_v4 = vmax.f32 %v4130_v44, %v4133_v60 }
 0xcbd   : > { %v2002_v16 = vpop.permute.xlu0 %2001 }
 0xcbe   : > { %v2051_v55 = vsub.f32 %v4103_v54, %v2002_v16 }
 0xcc0   : > { %v4147_v53 = vmul.f32 %v4144_v47, %v2051_v55  ;;  %v4183_v55 = vld [vmem:[#allocation5 + $0x60] sm:$0xff] }
 0xcc1   : > { %v2072_v36 = vmul.f32 %v4183_v55, %v2056_v48 }
 0xcc2   : > { %v2079_v14 = vmax.f32 %v4142_v13, %v4147_v53 }
 0xcc5   : > { %v2007_v62 = vpop.permute.xlu0 %2006 }
 0xcc6   : > { %v2052_v51 = vsub.f32 %v4103_v54, %v2007_v62 }
 0xcc8   : > { %v2068_v7 = vmul.f32 %v4170_v35, %v2052_v51  ;;  %v4208_v51 = vld [vmem:[#allocation5 + $0x58] sm:$0xff] }
 0xcca   : > { %v2080_v33 = vmax.f32 %v2076_v28, %v2068_v7  ;;  %v2186_v28 = vmul.f32 %v4144_v47, %v2170_v1 }
 0xccc   : > { %v2084_v42 = vmax.f32 %v2080_v33, %v2072_v36 }
 0xcce   : > { %v2133_v56 = vpop.permute.xlu0 %2132 }
 0xccf   : > { %v2171_v19 = vsub.f32 %v4080_v29, %v2133_v56  ;;  %v2049_v56 = vsub.f32 %v4103_v54, %v1992_v3  ;;  %v2174_v3 = vsub.f32 %v4080_v29, %v2145_v61 }
 0xcd1   : > { %v2187_v10 = vmul.f32 %v4170_v35, %v2171_v19  ;;  %v2065_v19 = vmul.f32 %v4160_v15, %v2049_v56  ;;  %v2190_v63 = vmul.f32 %v4208_v51, %v2174_v3 }
 0xcd3   : > { %v2199_v16 = vmax.f32 %v2195_v18, %v2187_v10  ;;  %v2077_v50 = vmax.f32 %v2061_v17, %v2065_v19  ;;  %v2161_v10 = vpop.permute.xlu2 %2160  ;;  %v4221_v17 = vld [vmem:[#allocation5 + $0x70] sm:$0xff] }
 0xcd7   : > { %v2012_v9 = vpop.permute.xlu0 %2011 }
 0xcd8   : > { %v2053_v31 = vsub.f32 %v4103_v54, %v2012_v9 }
 0xcda   : > { %v2069_v38 = vmul.f32 %v4167_v24, %v2053_v31 }
 0xce0   : > { %v2141_v45 = vpop.permute.xlu0 %2140 }
 0xce1   : > { %v2173_v8 = vsub.f32 %v4080_v29, %v2141_v45  ;;  %v4214_v45 = vld [vmem:[#allocation5 + $0x78] sm:$0xff] }
 0xce9   : > { %v4153_v21 = vpop.permute.xlu0 %2021 }
 0xcea   : > { %v2055_v19 = vsub.f32 %v4103_v54, %v4153_v21 }
 0xcec   : > { %v2071_v33 = vmul.f32 %v4208_v51, %v2055_v19 }
 0xcf2   : > { %v2149_v12 = vpop.permute.xlu0 %2148 }
 0xcf3   : > { %v2175_v37 = vsub.f32 %v4080_v29, %v2149_v12  ;;  %v2081_v12 = vmax.f32 %v2077_v50, %v2069_v38  ;;  %v2058_v50 = vsub.f32 %v4103_v54, %v2037_v52 }
 0xcf5   : > { %v2191_v41 = vmul.f32 %v4183_v55, %v2175_v37  ;;  %v2178_v37 = vsub.f32 %v4080_v29, %v2161_v10 }
 0xcf7   : > { %v2203_v23 = vmax.f32 %v2199_v16, %v2191_v41  ;;  %v4211_v16 = vld [vmem:[#allocation5 + $0x50] sm:$0xff]  ;;  %v2198_v41 = vmax.f32 %v2182_v32, %v2186_v28  ;;  %v2194_v56 = vmul.f32 %v4214_v45, %v2178_v37 }
 0xcf8   : > { %v2189_v5 = vmul.f32 %v4211_v16, %v2173_v8 }
 0xcf9   : > { %v2207_v62 = vmax.f32 %v2203_v23, %v2204_v20  ;;  %v2202_v20 = vmax.f32 %v2198_v41, %v2190_v63 }
 0xcfa   : > { %v2201_v23 = vmax.f32 %v2197_v4, %v2189_v5  ;;  %v2074_v4 = vmul.f32 %v4221_v17, %v2058_v50 }
 0xcfb   : > { %v2032_v18 = vpop.permute.xlu0 %2031  ;;  %v2206_v48 = vmax.f32 %v2202_v20, %v2194_v56 }
 0xcfc   : > { %v2057_v9 = vsub.f32 %v4103_v54, %v2032_v18  ;;  %v2054_v18 = vsub.f32 %v4103_v54, %v4151_v49  ;;  %v2083_v49 = vmax.f32 %v2079_v14, %v2071_v33 }
 0xcfe   : > { %v2073_v59 = vmul.f32 %v4173_v25, %v2057_v9  ;;  %v2070_v60 = vmul.f32 %v4211_v16, %v2054_v18 }
 0xd00   : > { %v2085_v46 = vmax.f32 %v2081_v12, %v2073_v59  ;;  %v2082_v21 = vmax.f32 %v2078_v27, %v2070_v60 }
 0xd02   : > { %v2088_v26 = vmax.f32 %v2084_v42, %v2085_v46 }
 0xd04   : > { %v2157_v61 = vpop.permute.xlu0 %2156 }
 0xd05   : > { %v2177_v31 = vsub.f32 %v4080_v29, %v2157_v61 }
 0xd07   : > { %v2193_v7 = vmul.f32 %v4221_v17, %v2177_v31 }
 0xd09   : > { %v2205_v38 = vmax.f32 %v2201_v23, %v2193_v7 }
 0xd0b   : > { %v2208_v29 = vmax.f32 %v2205_v38, %v2206_v48 }
 0xd0d   : > { %v2209_v9 = vmax.f32 %v2207_v62, %v2208_v29  ;;  %v2042_v44 = vpop.permute.xlu0 %2041  ;;  %v2086_v62 = vmax.f32 %v2082_v21, %v2074_v4 }
 0xd0e   : > { %v2059_v1 = vsub.f32 %v4103_v54, %v2042_v44 }
 0xd0f   : > { %v2210_v36 = vrot.slane %v2209_v9, 4 }
 0xd10   : > { %v2075_v52 = vmul.f32 %v4214_v45, %v2059_v1 }
 0xd11   : > { %v2211_v10 = vmax.f32 %v2209_v9, %v2210_v36 }
 0xd12   : > { %v2087_v12 = vmax.f32 %v2083_v49, %v2075_v52 }
 0xd13   : > { %v2212_v59 = vrot.slane %v2211_v10, 2 }
 0xd14   : > { %v2089_v22 = vmax.f32 %v2086_v62, %v2087_v12 }
 0xd15   : > { %v2213_v8 = vmax.f32 %v2211_v10, %v2212_v59 }
 0xd16   : > { %v2090_v3 = vmax.f32 %v2088_v26, %v2089_v22 }
 0xd17   : > { %v2214_v46 = vrot.slane %v2213_v8, 1 }
 0xd18   : > { %v2091_v42 = vrot.slane %v2090_v3, 4 }
 0xd19   : > { %v2215_v57 = vmax.f32 %v2213_v8, %v2214_v46 }
 0xd1a   : > { %v2092_v54 = vmax.f32 %v2090_v3, %v2091_v42 }
 0xd1b   : > { %v2216_v32 = vmax.f32 %v2215_v57, 0.0 }
 0xd1c   : > { %v2093_v28 = vrot.slane %v2092_v54, 2 }
 0xd1e   : > { %v2094_v37 = vmax.f32 %v2092_v54, %v2093_v28 }
 0xd20   : > { %v2095_v30 = vrot.slane %v2094_v37, 1 }
 0xd22   : > { %v2096_v27 = vmax.f32 %v2094_v37, %v2095_v30 }
 0xd24   : > { %v2097_v13 = vmax.f32 %v2096_v27, 0.0 }
 0xd26   : > { %v2217_v53 = vsel %vm481_vm0, %v2097_v13, %v2216_v32 }
 0xd27   : > { %v2218_v14 = vsel %vm483_vm1, %v2217_v53, 0.0 }
 0xd28   : > { %v4243_v63 = vsub.f32 %v4059_v11, %v2218_v14 }
 0xd2a   : > { %2220 = vxpose.xlu0.b32.start.end [1/1] (short) %v4243_v63, 128  ;;  %v4263_v1 = vperm.slane %v4243_v63, 0  ;;  %v4277_v12 = vperm.slane %v4243_v63, 1 }
 0xdce   : > { %v2236_v26 = vpop.trf.xlu0 }
 0xdcf   : > { %2389 = vperm.xlu1 %2840, %v2236_v26   ;;  %2255 = vperm.xlu2 %2839, %v2236_v26  }
 0xdd6   : > { %v2237_v5 = vpop.trf.xlu0 }
 0xdd7   : > { %2260 = vperm.xlu2 %2839, %v2237_v5  }
 0xdde   : > { %v2238_v61 = vpop.trf.xlu0 }
 0xddf   : > { %2397 = vperm.xlu1 %2840, %v2238_v61   ;;  %2265 = vperm.xlu2 %2839, %v2238_v61  }
 0xde6   : > { %v2239_v41 = vpop.trf.xlu0 }
 0xde7   : > { %2270 = vperm.xlu2 %2839, %v2239_v41  }
 0xdee   : > { %v2240_v56 = vpop.trf.xlu0 }
 0xdef   : > { %2841 = vset.pattern.permute.xlu2 %v3028_v0  ;;  %2405 = vperm.xlu1 %2840, %v2240_v56  }
 0xdf0   : > { %2393 = vperm.xlu2 %2841, %v2237_v5  }
 0xdf6   : > { %v2241_v31 = vpop.trf.xlu0 }
 0xdf8   : > { %2401 = vperm.xlu2 %2841, %v2239_v41  }
 0xdfe   : > { %v2242_v11 = vpop.trf.xlu0 }
 0xdff   : > { %2413 = vperm.xlu1 %2840, %v2242_v11  }
 0xe00   : > { %2842 = vset.pattern.permute.xlu2 %v3029_v2 }
 0xe01   : > { %2280 = vperm.xlu2 %2842, %v2241_v31  }
 0xe06   : > { %v2243_v20 = vpop.trf.xlu0 }
 0xe09   : > { %2843 = vset.pattern.permute.xlu2 %v3028_v0 }
 0xe0a   : > { %2409 = vperm.xlu2 %2843, %v2241_v31  }
 0xe0e   : > { %v2244_v23 = vpop.trf.xlu0 }
 0xe0f   : > { %2421 = vperm.xlu1 %2840, %v2244_v23  }
 0xe10   : > { %2275 = vperm.xlu0 %2837, %v2240_v56  }
 0xe12   : > { %2844 = vset.pattern.permute.xlu2 %v3029_v2 }
 0xe13   : > { %2285 = vperm.xlu2 %2844, %v2242_v11  }
 0xe16   : > { %v2245_v7 = vpop.trf.xlu0 }
 0xe18   : > { %2858 = vset.pattern.permute.xlu0 %v3028_v0 }
 0xe1b   : > { %2290 = vperm.xlu2 %2844, %v2243_v20  }
 0xe1e   : > { %v2246_v19 = vpop.trf.xlu0 }
 0xe1f   : > { %2429 = vperm.xlu1 %2840, %v2246_v19  }
 0xe23   : > { %2845 = vset.pattern.permute.xlu2 %v3028_v0 }
 0xe24   : > { %2417 = vperm.xlu2 %2845, %v2243_v20  }
 0xe26   : > { %v2247_v48 = vpop.trf.xlu0 }
 0xe27   : > { %2850 = vset.pattern.permute.xlu1 %v3029_v2 }
 0xe29   : > { %v4253_v38 = vpop.permute.xlu2 %2255 }
 0xe2c   : > { %2846 = vset.pattern.permute.xlu2 %v3029_v2 }
 0xe2d   : > { %2295 = vperm.xlu2 %2846, %v2244_v23  }
 0xe2e   : > { %v2248_v18 = vpop.trf.xlu0 }
 0xe2f   : > { %2315 = vperm.xlu1 %2850, %v2248_v18  }
 0xe31   : > { %v2261_v50 = vpop.permute.xlu2 %2260 }
 0xe32   : > { %v2334_v36 = vsub.f32 %v4263_v1, %v2261_v50 }
 0xe34   : > { %v4268_v52 = vmul.f32 %v4164_v39, %v2334_v36 }
 0xe35   : > { %2300 = vperm.xlu2 %2846, %v2245_v7  }
 0xe36   : > { %v2249_v29 = vpop.trf.xlu0 }
 0xe37   : > { %2851 = vset.pattern.permute.xlu1 %v3028_v0 }
 0xe38   : > { %2437 = vperm.xlu1 %2851, %v2248_v18  }
 0xe39   : > { %v2266_v33 = vpop.permute.xlu2 %2265 }
 0xe3a   : > { %v2335_v46 = vsub.f32 %v4263_v1, %v2266_v33 }
 0xe3c   : > { %v4293_v57 = vmul.f32 %v3956_v58, %v2335_v46 }
 0xe3d   : > { %2847 = vset.pattern.permute.xlu2 %v3028_v0 }
 0xe3e   : > { %2425 = vperm.xlu2 %2847, %v2245_v7   ;;  %v2250_v9 = vpop.trf.xlu0 }
 0xe40   : > { %2854 = vset.pattern.permute.xlu1 %v3029_v2 }
 0xe41   : > { %v2271_v44 = vpop.permute.xlu2 %2270  ;;  %2325 = vperm.xlu1 %2854, %v2250_v9   ;;  %v2390_v41 = vpop.permute.xlu1 %2389 }
 0xe42   : > { %v2336_v27 = vsub.f32 %v4263_v1, %v2271_v44 }
 0xe44   : > { %v4304_v53 = vmul.f32 %v3974_v6, %v2336_v27 }
 0xe46   : > { %2848 = vset.pattern.permute.xlu2 %v3029_v2  ;;  %v2251_v30 = vpop.trf.xlu0 }
 0xe47   : > { %2305 = vperm.xlu2 %2848, %v2246_v19  }
 0xe49   : > { %2856 = vset.pattern.permute.xlu1 %v3028_v0 }
 0xe4a   : > { %v2394_v60 = vpop.permute.xlu2 %2393  ;;  %2445 = vperm.xlu1 %2856, %v2250_v9  }
 0xe4b   : > { %v2453_v59 = vsub.f32 %v4277_v12, %v2394_v60 }
 0xe4d   : > { %v4282_v8 = vmul.f32 %v4164_v39, %v2453_v59 }
 0xe4f   : > { %2310 = vperm.xlu2 %2848, %v2247_v48  }
 0xe51   : > { %v4328_v19 = vpop.permute.xlu1 %2397 }
 0xe52   : > { %v2402_v4 = vpop.permute.xlu2 %2401 }
 0xe57   : > { %2849 = vset.pattern.permute.xlu2 %v3028_v0 }
 0xe58   : > { %2433 = vperm.xlu2 %2849, %v2247_v48  }
 0xe5b   : > { %v2281_v21 = vpop.permute.xlu2 %2280 }
 0xe5c   : > { %v2338_v49 = vsub.f32 %v4263_v1, %v2281_v21 }
 0xe5e   : > { %v4271_v10 = vmul.f32 %v4160_v15, %v2338_v49 }
 0xe60   : > { %v2366_v62 = vmax.f32 %v4268_v52, %v4271_v10  ;;  %2852 = vset.pattern.permute.xlu2 %v3029_v2 }
 0xe61   : > { %2320 = vperm.xlu2 %2852, %v2249_v29  }
 0xe64   : > { %v2410_v22 = vpop.permute.xlu2 %2409 }
 0xe65   : > { %v2457_v3 = vsub.f32 %v4277_v12, %v2410_v22 }
 0xe67   : > { %v4285_v42 = vmul.f32 %v4160_v15, %v2457_v3 }
 0xe69   : > { %v2485_v54 = vmax.f32 %v4282_v8, %v4285_v42  ;;  %2853 = vset.pattern.permute.xlu2 %v3028_v0 }
 0xe6a   : > { %2441 = vperm.xlu2 %2853, %v2249_v29   ;;  %v2406_v29 = vpop.permute.xlu1 %2405 }
 0xe6d   : > { %v2286_v28 = vpop.permute.xlu2 %2285 }
 0xe6e   : > { %v2339_v37 = vsub.f32 %v4263_v1, %v2286_v28 }
 0xe70   : > { %v4296_v39 = vmul.f32 %v3961_v34, %v2339_v37 }
 0xe72   : > { %v2367_v15 = vmax.f32 %v4293_v57, %v4296_v39  ;;  %2855 = vset.pattern.permute.xlu2 %v3029_v2  ;;  %v2455_v2 = vsub.f32 %v4277_v12, %v2402_v4  ;;  %v2414_v9 = vpop.permute.xlu1 %2413 }
 0xe73   : > { %2330 = vperm.xlu2 %2855, %v2251_v30  }
 0xe74   : > { %v4315_v5 = vmul.f32 %v3974_v6, %v2455_v2 }
 0xe75   : > { %v2291_v32 = vpop.permute.xlu2 %2290 }
 0xe76   : > { %v2340_v13 = vsub.f32 %v4263_v1, %v2291_v32 }
 0xe78   : > { %v4307_v58 = vmul.f32 %v4144_v47, %v2340_v13  ;;  %v2452_v13 = vsub.f32 %v4277_v12, %v2390_v41 }
 0xe7a   : > { %v2368_v34 = vmax.f32 %v4304_v53, %v4307_v58 }
 0xe7b   : > { %2857 = vset.pattern.permute.xlu2 %v3028_v0  ;;  %v2333_v0 = vsub.f32 %v4263_v1, %v4253_v38 }
 0xe7c   : > { %2449 = vperm.xlu2 %2857, %v2251_v30   ;;  %v2456_v30 = vsub.f32 %v4277_v12, %v2406_v29 }
 0xe7d   : > { %v2349_v7 = vmul.f32 %v4084_v40, %v2333_v0 }
 0xe7e   : > { %v2418_v14 = vpop.permute.xlu2 %2417 }
 0xe7f   : > { %v2459_v26 = vsub.f32 %v4277_v12, %v2418_v14 }
 0xe81   : > { %v4318_v61 = vmul.f32 %v4144_v47, %v2459_v26  ;;  %v2422_v60 = vpop.permute.xlu1 %2421 }
 0xe82   : > { %v2276_v56 = vpop.permute.xlu0 %2275  ;;  %v2460_v2 = vsub.f32 %v4277_v12, %v2422_v60 }
 0xe83   : > { %v2487_v31 = vmax.f32 %v4315_v5, %v4318_v61  ;;  %v2337_v11 = vsub.f32 %v4263_v1, %v2276_v56 }
 0xe84   : > { %v2476_v52 = vmul.f32 %v4170_v35, %v2460_v2 }
 0xe85   : > { %v2353_v20 = vmul.f32 %v4089_v43, %v2337_v11  ;;  %v2472_v11 = vmul.f32 %v4089_v43, %v2456_v30 }
 0xe87   : > { %v2296_v23 = vpop.permute.xlu2 %2295  ;;  %v2365_v47 = vmax.f32 %v2349_v7, %v2353_v20 }
 0xe88   : > { %v2341_v6 = vsub.f32 %v4263_v1, %v2296_v23  ;;  %v2468_v23 = vmul.f32 %v4084_v40, %v2452_v13 }
 0xe8a   : > { %v2357_v48 = vmul.f32 %v4170_v35, %v2341_v6  ;;  %v2484_v7 = vmax.f32 %v2468_v23, %v2472_v11 }
 0xe8c   : > { %v2369_v18 = vmax.f32 %v2365_v47, %v2357_v48  ;;  %v2488_v48 = vmax.f32 %v2484_v7, %v2476_v52 }
 0xe8f   : > { %v2301_v50 = vpop.permute.xlu2 %2300 }
 0xe90   : > { %v2342_v49 = vsub.f32 %v4263_v1, %v2301_v50 }
 0xe91   : > { %v2430_v4 = vpop.permute.xlu1 %2429 }
 0xe92   : > { %v2358_v22 = vmul.f32 %v4167_v24, %v2342_v49 }
 0xe94   : > { %v2370_v27 = vmax.f32 %v2366_v62, %v2358_v22  ;;  %v2462_v22 = vsub.f32 %v4277_v12, %v2430_v4 }
 0xe96   : > { %v2478_v58 = vmul.f32 %v4211_v16, %v2462_v22 }
 0xe98   : > { %v2426_v33 = vpop.permute.xlu2 %2425 }
 0xe99   : > { %v2461_v14 = vsub.f32 %v4277_v12, %v2426_v33 }
 0xe9b   : > { %v2477_v10 = vmul.f32 %v4167_v24, %v2461_v14 }
 0xe9d   : > { %v2489_v43 = vmax.f32 %v2485_v54, %v2477_v10 }
 0xea1   : > { %v2306_v44 = vpop.permute.xlu2 %2305  ;;  %v2316_v36 = vpop.permute.xlu1 %2315 }
 0xea2   : > { %v2345_v59 = vsub.f32 %v4263_v1, %v2316_v36  ;;  %v2343_v40 = vsub.f32 %v4263_v1, %v2306_v44 }
 0xea4   : > { %v2361_v46 = vmul.f32 %v4183_v55, %v2345_v59  ;;  %v2454_v59 = vsub.f32 %v4277_v12, %v4328_v19 }
 0xea6   : > { %v2373_v26 = vmax.f32 %v2369_v18, %v2361_v46  ;;  %v2891_v46 = vld [vmem:[#allocation5 + $0x30] sm:$0xff] }
 0xea9   : > { %v2311_v38 = vpop.permute.xlu2 %2310 }
 0xeaa   : > { %v2438_v28 = vpop.permute.xlu1 %2437  ;;  %v2344_v35 = vsub.f32 %v4263_v1, %v2311_v38 }
 0xeab   : > { %v2464_v0 = vsub.f32 %v4277_v12, %v2438_v28 }
 0xeac   : > { %v2360_v60 = vmul.f32 %v4208_v51, %v2344_v35 }
 0xead   : > { %v2480_v41 = vmul.f32 %v4183_v55, %v2464_v0  ;;  %v2359_v55 = vmul.f32 %v4211_v16, %v2343_v40 }
 0xeae   : > { %v2372_v54 = vmax.f32 %v2368_v34, %v2360_v60 }
 0xeaf   : > { %v2492_v50 = vmax.f32 %v2488_v48, %v2480_v41  ;;  %v2371_v42 = vmax.f32 %v2367_v15, %v2359_v55  ;;  %v2892_v15 = vld [vmem:[#allocation5 + $0x10] sm:$0xff] }
 0xeb0   : > { %v2470_v53 = vmul.f32 %v2892_v15, %v2454_v59 }
 0xeb2   : > { %v2434_v21 = vpop.permute.xlu2 %2433 }
 0xeb3   : > { %v2326_v47 = vpop.permute.xlu1 %2325 }
 0xeb4   : > { %v2347_v29 = vsub.f32 %v4263_v1, %v2326_v47 }
 0xeb6   : > { %v2363_v49 = vmul.f32 %v4221_v17, %v2347_v29 }
 0xebb   : > { %v2321_v3 = vpop.permute.xlu2 %2320 }
 0xebc   : > { %v2346_v37 = vsub.f32 %v4263_v1, %v2321_v3  ;;  %v2446_v44 = vpop.permute.xlu1 %2445  ;;  %v2375_v3 = vmax.f32 %v2371_v42, %v2363_v49 }
 0xebd   : > { %v2466_v57 = vsub.f32 %v4277_v12, %v2446_v44 }
 0xebe   : > { %v2362_v32 = vmul.f32 %v4173_v25, %v2346_v37 }
 0xebf   : > { %v2482_v4 = vmul.f32 %v4221_v17, %v2466_v57 }
 0xec0   : > { %v2374_v56 = vmax.f32 %v2370_v27, %v2362_v32 }
 0xec2   : > { %v2377_v20 = vmax.f32 %v2373_v26, %v2374_v56 }
 0xec4   : > { %v2442_v62 = vpop.permute.xlu2 %2441 }
 0xec5   : > { %v2465_v6 = vsub.f32 %v4277_v12, %v2442_v62 }
 0xec7   : > { %v2481_v18 = vmul.f32 %v4173_v25, %v2465_v6  ;;  %v2458_v25 = vsub.f32 %v4277_v12, %v2414_v9 }
 0xec9   : > { %v2493_v24 = vmax.f32 %v2489_v43, %v2481_v18  ;;  %v2474_v28 = vmul.f32 %v2891_v46, %v2458_v25 }
 0xecb   : > { %v2496_v33 = vmax.f32 %v2492_v50, %v2493_v24  ;;  %v2486_v19 = vmax.f32 %v2470_v53, %v2474_v28 }
 0xecd   : > { %v2331_v36 = vpop.permute.xlu2 %2330  ;;  %v2490_v32 = vmax.f32 %v2486_v19, %v2478_v58 }
 0xece   : > { %v2348_v8 = vsub.f32 %v4263_v1, %v2331_v36  ;;  %v2463_v1 = vsub.f32 %v4277_v12, %v2434_v21 }
 0xecf   : > { %v2494_v16 = vmax.f32 %v2490_v32, %v2482_v4 }
 0xed0   : > { %v2364_v38 = vmul.f32 %v4214_v45, %v2348_v8  ;;  %v2479_v34 = vmul.f32 %v4208_v51, %v2463_v1 }
 0xed2   : > { %v2376_v9 = vmax.f32 %v2372_v54, %v2364_v38  ;;  %v2491_v13 = vmax.f32 %v2487_v31, %v2479_v34 }
 0xed4   : > { %v2378_v39 = vmax.f32 %v2375_v3, %v2376_v9 }
 0xed6   : > { %v2379_v37 = vmax.f32 %v2377_v20, %v2378_v39  ;;  %v2450_v30 = vpop.permute.xlu2 %2449 }
 0xed7   : > { %v2467_v21 = vsub.f32 %v4277_v12, %v2450_v30 }
 0xed8   : > { %v2380_v27 = vrot.slane %v2379_v37, 4 }
 0xed9   : > { %v2483_v2 = vmul.f32 %v4214_v45, %v2467_v21 }
 0xeda   : > { %v2381_v14 = vmax.f32 %v2379_v37, %v2380_v27 }
 0xedb   : > { %v2495_v26 = vmax.f32 %v2491_v13, %v2483_v2 }
 0xedc   : > { %v2382_v51 = vrot.slane %v2381_v14, 2 }
 0xedd   : > { %v2497_v56 = vmax.f32 %v2494_v16, %v2495_v26 }
 0xede   : > { %v2383_v0 = vmax.f32 %v2381_v14, %v2382_v51 }
 0xedf   : > { %v2498_v11 = vmax.f32 %v2496_v33, %v2497_v56 }
 0xee0   : > { %v2384_v12 = vrot.slane %v2383_v0, 1 }
 0xee1   : > { %v2499_v17 = vrot.slane %v2498_v11, 4 }
 0xee2   : > { %v2385_v10 = vmax.f32 %v2383_v0, %v2384_v12 }
 0xee3   : > { %v2500_v20 = vmax.f32 %v2498_v11, %v2499_v17 }
 0xee4   : > { %v2386_v45 = vmax.f32 %v2385_v10, 0.0 }
 0xee5   : > { %v2501_v23 = vrot.slane %v2500_v20, 2 }
 0xee7   : > { %v2502_v52 = vmax.f32 %v2500_v20, %v2501_v23 }
 0xee9   : > { %v2503_v5 = vrot.slane %v2502_v52, 1 }
 0xeeb   : > { %v2504_v61 = vmax.f32 %v2502_v52, %v2503_v5 }
 0xeed   : > { %v2505_v31 = vmax.f32 %v2504_v61, 0.0 }
 0xeef   : > { %v2506_v62 = vsel %vm481_vm0, %v2386_v45, %v2505_v31 }
 0xef0   : > { %v2507_v7 = vsel %vm483_vm1, %v2506_v62, 0.0 }
 0xef1   : > { %v2508_v41 = vsub.f32 %v4243_v63, %v2507_v7 }
 0xef3   : > { %2509 = vst [vmem:[%s177_s13] sm:$0xff] %v2508_v41 }
 0xef4   : > { %2980 = shalt.err (!%p2977_p9)
}
 0xef5   : > { %2626 = dma.vmem_to_hbm [thread:$0]  (%p3105_p13), %s2524_s14, 128, %s2526_s15, %s2511_s16  }
 0xef6 PF: > { %s2537_s3 = sand.u32 1, %s3011_s9   ;;  %p4429_p10 = scmp.ge.s32.totalorder %s3023_s12, 2 }
 0xef7   : > { %s2538_s29 = scalar_lea.sflag [#allocation4], %s2537_s3 }
 0xef8   : > { %p2637_p11 = pnand %p4429_p10, %p3110_p4 }
 0xefa   : > { %p2638_p0 = pneg %p2637_p11 }
 0xefc   : > { %3006 = dma.done.wait (%p2638_p0), %s2538_s29, 128  }
 0xefd   : > { %3008 = vsyncadd (%p2638_p0), %s2538_s29, 4294967168  ;;  %p16_p2 = scmp.ge.s32.totalorder %s3085_s23, 4   ;;  %s4430_s9 = smov %s3015_s10 }
 0xefe   : > { %s4431_s10 = smov %s3019_s11  ;;  %s4432_s11 = smov %s3097_s26 }
 0xeff   : > { %s4433_s12 = smov %s3085_s23  ;;  %18 = sbr.rel (!%p16_p2) target bundleno = 6 (0x6), region = 77 }
 0xf04   :  { %2544 = vsyncpa [#allocation3], 1 }
 0xf05   :  { %2546 = vsyncpa [#allocation3 + $0x1], 1 }
 0xf06   :  { %2547 = vsyncpa [#allocation6], 1 }
 0xf07   :  { %2548 = vsyncpa [#allocation4], 1 }
 0xf08   :  { %2550 = vsyncpa [#allocation4 + $0x1], 1 }

</bundles_post_ra>
